<compile_context>
chip_gen: v7x
topology: tpu7x:2x2x1
jax: 0.10.0
libtpu: 0.0.40
codegen_flags: <defaults>
</compile_context>

<pallas_src>
import numpy as np
import jax
import jax.numpy as jnp
from jax import lax
from jax.experimental import pallas as pl
from jax.experimental.pallas import tpu as pltpu


def _make_disblock_kernel(H, W, Cin, Chid, Cout, nb, downsample, learnable_sc):
    Ho, Wo = (H // 2, W // 2) if downsample else (H, W)

    def kernel(x_ref, w1_ref, b1_ref, w2_ref, b2_ref, wsc_ref, bsc_ref,
               pw_ref, eye_ref, out_ref, pad_ref, h1_ref):
        # --- zero only the halo border of the padded scratch buffers -------------
        # (interior is fully overwritten below; done every step because scratch is
        #  per-core when the parallel grid axis is split across TensorCores)
        def zero_border(buf, c):
            z_row = jnp.zeros((1, W + 2, c), jnp.float32)
            buf[pl.ds(0, 1), :, :] = z_row
            buf[pl.ds(H + 1, 1), :, :] = z_row
            z_col = jnp.zeros((H, 1, c), jnp.float32)
            buf[pl.ds(1, H), pl.ds(0, 1), :] = z_col
            buf[pl.ds(1, H), pl.ds(W + 1, 1), :] = z_col

        zero_border(pad_ref, Cin)
        zero_border(h1_ref, Chid)

        # --- 3x3 "same" conv as 9 whole-image MXU matmuls -------------------------
        def conv3x3(src_ref, w_ref):
            acc = None
            for dy in range(3):
                for dx in range(3):
                    slab = src_ref[pl.ds(dy, H), pl.ds(dx, W), :]        # (H, W, c)
                    slab = slab.reshape(H * W, slab.shape[-1])
                    t = jnp.dot(slab.astype(jnp.bfloat16), w_ref[dy, dx],
                                preferred_element_type=jnp.float32)
                    acc = t if acc is None else acc + t
            return acc                                                    # (H*W, co)

        for b in range(nb):
            x = x_ref[b]                                                  # (H, W, Cin)

            # residual branch: relu -> conv1 -> relu -> conv2
            pad_ref[pl.ds(1, H), pl.ds(1, W), :] = jnp.maximum(x, 0.0)    # slab store
            h1 = conv3x3(pad_ref, w1_ref) + b1_ref[...]                   # (H*W, Chid)
            h1_ref[pl.ds(1, H), pl.ds(1, W), :] = (
                jnp.maximum(h1, 0.0).reshape(H, W, Chid))                 # slab store
            res = conv3x3(h1_ref, w2_ref) + b2_ref[...]                   # (H*W, Cout)

            # shortcut branch (raw x, no activation)
            x_flat = x.reshape(H * W, Cin)
            if learnable_sc:
                sc = jnp.dot(x_flat.astype(jnp.bfloat16), wsc_ref[...],
                             preferred_element_type=jnp.float32) + bsc_ref[...]
            else:
                sc = x_flat        # identity shortcut (only valid when Cin == Cout)

            combined = res + sc                                            # (H*W, Cout)

            if downsample:
                # 2x2 avg pool of (residual + shortcut), exploiting linearity.
                r = combined.reshape(Ho, 2, W, Cout)
                rowsum = r[:, 0] + r[:, 1]                                 # (Ho, W, Cout)
                pwb = jnp.broadcast_to(pw_ref[...], (Ho, Wo, W))           # 0.25 entries
                pooled = lax.dot_general(
                    pwb, rowsum,
                    dimension_numbers=(((2,), (1,)), ((0,), (0,))),
                    preferred_element_type=jnp.float32)                    # (Ho, Wo, Cout)
                out2d = pooled.reshape(Ho * Wo, Cout)
            else:
                out2d = combined                                           # (H*W, Cout)

            # channel-major emit: out2d.T done as identity-matmul on the MXU
            out_ref[b] = lax.dot_general(
                eye_ref[...], out2d,
                dimension_numbers=(((1,), (1,)), ((), ())),
                preferred_element_type=jnp.float32)                        # (Cout, Ho*Wo)

    return kernel, Ho, Wo


def _pick_images_per_step(N, H, W, Cin):
    # fold batch to amortize the ~0.35us/step grid overhead, but keep >= 2 grid
    # steps so the 'parallel' axis can still shard across v7x's 2 TensorCores,
    # and keep the x block comfortably inside VMEM.
    per_img = H * W * max(Cin, 32) * 4
    cap = max(1, (4 << 20) // (2 * per_img))
    best = 1
    for d in range(1, N + 1):
        if N % d == 0 and d <= cap and (N // d >= 2 or N < 2):
            best = d
    return best


def disblock_forward(x_nchw, w1_hwio, b1, w2_hwio, b2, wsc_io, bsc,
                     *, downsample, learnable_sc):
    N, Cin, H, W = x_nchw.shape
    Chid = w1_hwio.shape[-1]
    Cout = w2_hwio.shape[-1]

    nb = _pick_images_per_step(N, H, W, Cin)
    kernel, Ho, Wo = _make_disblock_kernel(H, W, Cin, Chid, Cout, nb,
                                           downsample, learnable_sc)

    # glue: NCHW -> NHWC (small-channel configs stay lane-sparse on input; the
    # heavy math is restructured into whole-image matmuls so this is acceptable)
    x_nhwc = jnp.transpose(x_nchw, (0, 2, 3, 1)).astype(jnp.float32)

    # bf16 matmul operands (f32 accumulation inside the kernel)
    w1_b = w1_hwio.astype(jnp.bfloat16)
    w2_b = w2_hwio.astype(jnp.bfloat16)
    wsc_b = wsc_io.astype(jnp.bfloat16)
    b1_2d = b1.reshape(1, Chid).astype(jnp.float32)
    b2_2d = b2.reshape(1, Cout).astype(jnp.float32)
    bsc_2d = bsc.reshape(1, Cout).astype(jnp.float32)

    # factored pooling: row pairs are summed in-kernel (reshape+add); this small
    # (Wo, W) matrix handles the column pairs with the 1/4 averaging folded in.
    pw = np.zeros((Wo, W), np.float32)
    if downsample:
        for wo in range(Wo):
            pw[wo, 2 * wo] = 0.25
            pw[wo, 2 * wo + 1] = 0.25
    pw = jnp.asarray(pw)

    eye_c = jnp.eye(Cout, dtype=jnp.float32)   # identity used for the MXU transpose

    full = lambda shape: pl.BlockSpec(shape, lambda n: (0,) * len(shape))

    out_flat = pl.pallas_call(
        kernel,
        out_shape=jax.ShapeDtypeStruct((N, Cout, Ho * Wo), jnp.float32),
        grid_spec=pltpu.PrefetchScalarGridSpec(
            num_scalar_prefetch=0,
            grid=(N // nb,),
            in_specs=[
                pl.BlockSpec((nb, H, W, Cin), lambda n: (n, 0, 0, 0)),
                full((3, 3, Cin, Chid)),
                full((1, Chid)),
                full((3, 3, Chid, Cout)),
                full((1, Cout)),
                full((Cin, Cout)),
                full((1, Cout)),
                full((Wo, W)),
                full((Cout, Cout)),
            ],
            out_specs=pl.BlockSpec((nb, Cout, Ho * Wo), lambda n: (n, 0, 0)),
            scratch_shapes=[
                pltpu.VMEM((H + 2, W + 2, Cin), jnp.float32),   # padded relu(x)
                pltpu.VMEM((H + 2, W + 2, Chid), jnp.float32),  # padded relu(conv1)
            ],
        ),
        compiler_params=pltpu.CompilerParams(
            dimension_semantics=("parallel",),
            vmem_limit_bytes=32 * 1024 * 1024,
        ),
    )(x_nhwc, w1_b, b1_2d, w2_b, b2_2d, wsc_b, bsc_2d, pw, eye_c)

    # output is already channel-major; just reshape to NCHW
    return out_flat.reshape(N, Cout, Ho, Wo)


# ----------------------- pure-JAX reference (for checking) -----------------------
def _ref_forward(x, w1_hwio, b1, w2_hwio, b2, wsc_io, bsc, downsample, learnable_sc):
    def conv(h, w, b, pad):
        y = lax.conv_general_dilated(h, w, (1, 1), [(pad, pad), (pad, pad)],
                                     dimension_numbers=('NCHW', 'HWIO', 'NCHW'))
        return y + b.reshape(1, -1, 1, 1)

    def pool(t):
        return lax.reduce_window(t, 0.0, lax.add, (1, 1, 2, 2), (1, 1, 2, 2),
                                 'VALID') / 4.0

    h = jnp.maximum(x, 0.0)
    h = conv(h, w1_hwio, b1, 1)
    h = jnp.maximum(h, 0.0)
    h = conv(h, w2_hwio, b2, 1)
    if downsample:
        h = pool(h)
    if learnable_sc:
        cin, cout = wsc_io.shape
        s = conv(x, wsc_io.reshape(1, 1, cin, cout), bsc, 0)
        if downsample:
            s = pool(s)
    else:
        s = x
    return h + s


def _spectral_normalize(w_oihw, key, n_iter=5):
    # TODO(synk): nn.utils.spectral_norm is a parameter-prep parametrization; it is
    # emulated here on the host (f32 power iteration), not fused into the kernel.
    out = w_oihw.shape[0]
    wmat = w_oihw.reshape(out, -1)
    u = jax.random.normal(key, (out,), jnp.float32)
    u = u / (jnp.linalg.norm(u) + 1e-12)
    v = None
    for _ in range(n_iter):
        v = wmat.T @ u
        v = v / (jnp.linalg.norm(v) + 1e-12)
        u = wmat @ v
        u = u / (jnp.linalg.norm(u) + 1e-12)
    sigma = u @ (wmat @ v)
    return w_oihw / sigma


if __name__ == "__main__":
    key = jax.random.PRNGKey(0)
    ks = jax.random.split(key, 10)

    # DisBlock(d_spectral_norm=True, in_channels=4, out_channels=8, downsample=True)
    N, Cin, H, W = 2, 4, 16, 16
    Chid = Cin          # hidden_channels defaults to in_channels
    Cout = 8
    downsample = True
    d_spectral_norm = True
    learnable_sc = (Cin != Cout) or downsample

    # deterministic parameter init (PyTorch OIHW layout), then spectral norm
    w1 = 0.1 * jax.random.normal(ks[0], (Chid, Cin, 3, 3), jnp.float32)
    b1 = 0.1 * jax.random.normal(ks[1], (Chid,), jnp.float32)
    w2 = 0.1 * jax.random.normal(ks[2], (Cout, Chid, 3, 3), jnp.float32)
    b2 = 0.1 * jax.random.normal(ks[3], (Cout,), jnp.float32)
    wsc = 0.1 * jax.random.normal(ks[4], (Cout, Cin, 1, 1), jnp.float32)
    bsc = 0.1 * jax.random.normal(ks[5], (Cout,), jnp.float32)
    x = jax.random.normal(ks[6], (N, Cin, H, W), jnp.float32)

    if d_spectral_norm:
        w1 = _spectral_normalize(w1, ks[7])
        w2 = _spectral_normalize(w2, ks[8])
        wsc = _spectral_normalize(wsc, ks[9])

    # OIHW -> HWIO for the kernel / reference; 1x1 conv -> plain (Cin, Cout) matrix
    w1_hwio = jnp.transpose(w1, (2, 3, 1, 0))
    w2_hwio = jnp.transpose(w2, (2, 3, 1, 0))
    wsc_io = jnp.transpose(wsc[:, :, 0, 0], (1, 0))

    out = disblock_forward(x, w1_hwio, b1, w2_hwio, b2, wsc_io, bsc,
                           downsample=downsample, learnable_sc=learnable_sc)
    out = jax.block_until_ready(out)

    ref = _ref_forward(x, w1_hwio, b1, w2_hwio, b2, wsc_io, bsc,
                       downsample, learnable_sc)
    # bf16 MXU operands (f32 accumulation) vs the f32 reference -> loosened tolerance
    np.testing.assert_allclose(np.asarray(out), np.asarray(ref),
                               atol=2e-2, rtol=2e-2)
    print("KERNEL_OK")
</pallas_src>

<mosaic_0001>
module attributes {stable_mosaic.version = 11 : i64} {
  func.func @kernel(%arg0: i32, %arg1: memref<1x16x16x4xf32, #tpu.memory_space<vmem>>, %arg2: memref<3x3x4x4xbf16, #tpu.memory_space<vmem>>, %arg3: memref<1x4xf32, #tpu.memory_space<vmem>>, %arg4: memref<3x3x4x8xbf16, #tpu.memory_space<vmem>>, %arg5: memref<1x8xf32, #tpu.memory_space<vmem>>, %arg6: memref<4x8xbf16, #tpu.memory_space<vmem>>, %arg7: memref<1x8xf32, #tpu.memory_space<vmem>>, %arg8: memref<8x16xf32, #tpu.memory_space<vmem>>, %arg9: memref<8x8xf32, #tpu.memory_space<vmem>>, %arg10: memref<1x8x64xf32, #tpu.memory_space<vmem>>, %arg11: memref<18x18x4xf32, #tpu.memory_space<vmem>>, %arg12: memref<18x18x4xf32, #tpu.memory_space<vmem>>) attributes {dimension_semantics = [#tpu.dimension_semantics<parallel>], iteration_bounds = array<i64: 2>, scalar_prefetch = 0 : i64, scratch_operands = 2 : i64, tpu.core_type = #tpu.core_type<tc>, window_params = [{transform_indices = @transform_0, window_bounds = array<i64: 1, 16, 16, 4>}, {pipeline_mode = #tpu.pipeline_mode<synchronous>, transform_indices = @transform_1, window_bounds = array<i64: 3, 3, 4, 4>}, {pipeline_mode = #tpu.pipeline_mode<synchronous>, transform_indices = @transform_2, window_bounds = array<i64: 1, 4>}, {pipeline_mode = #tpu.pipeline_mode<synchronous>, transform_indices = @transform_3, window_bounds = array<i64: 3, 3, 4, 8>}, {pipeline_mode = #tpu.pipeline_mode<synchronous>, transform_indices = @transform_4, window_bounds = array<i64: 1, 8>}, {pipeline_mode = #tpu.pipeline_mode<synchronous>, transform_indices = @transform_5, window_bounds = array<i64: 4, 8>}, {pipeline_mode = #tpu.pipeline_mode<synchronous>, transform_indices = @transform_6, window_bounds = array<i64: 1, 8>}, {pipeline_mode = #tpu.pipeline_mode<synchronous>, transform_indices = @transform_7, window_bounds = array<i64: 8, 16>}, {pipeline_mode = #tpu.pipeline_mode<synchronous>, transform_indices = @transform_8, window_bounds = array<i64: 8, 8>}, {transform_indices = @transform_9, window_bounds = array<i64: 1, 8, 64>}]} {
    %cst = arith.constant 0.000000e+00 : f32
    %0 = vector.broadcast %cst : f32 to vector<1x18x4xf32>
    %c0 = arith.constant 0 : index
    %c0_0 = arith.constant 0 : index
    %c0_1 = arith.constant 0 : index
    %1 = vector.load %arg11[%c0, %c0_0, %c0_1] : memref<18x18x4xf32, #tpu.memory_space<vmem>>, vector<1x18x4xf32>
    tpu.vector_store %arg11[%c0, %c0_0, %c0_1], %0 {strides = array<i32>} : memref<18x18x4xf32, #tpu.memory_space<vmem>>, vector<1x18x4xf32>,
    %c17 = arith.constant 17 : index
    %c0_2 = arith.constant 0 : index
    %c0_3 = arith.constant 0 : index
    %2 = vector.load %arg11[%c17, %c0_2, %c0_3] : memref<18x18x4xf32, #tpu.memory_space<vmem>>, vector<1x18x4xf32>
    tpu.vector_store %arg11[%c17, %c0_2, %c0_3], %0 {strides = array<i32>} : memref<18x18x4xf32, #tpu.memory_space<vmem>>, vector<1x18x4xf32>,
    %cst_4 = arith.constant 0.000000e+00 : f32
    %3 = vector.broadcast %cst_4 : f32 to vector<16x1x4xf32>
    %c1 = arith.constant 1 : index
    %c0_5 = arith.constant 0 : index
    %c0_6 = arith.constant 0 : index
    %4 = vector.load %arg11[%c1, %c0_5, %c0_6] : memref<18x18x4xf32, #tpu.memory_space<vmem>>, vector<16x1x4xf32>
    tpu.vector_store %arg11[%c1, %c0_5, %c0_6], %3 {strides = array<i32>} : memref<18x18x4xf32, #tpu.memory_space<vmem>>, vector<16x1x4xf32>,
    %c1_7 = arith.constant 1 : index
    %c17_8 = arith.constant 17 : index
    %c0_9 = arith.constant 0 : index
    %5 = vector.load %arg11[%c1_7, %c17_8, %c0_9] : memref<18x18x4xf32, #tpu.memory_space<vmem>>, vector<16x1x4xf32>
    tpu.vector_store %arg11[%c1_7, %c17_8, %c0_9], %3 {strides = array<i32>} : memref<18x18x4xf32, #tpu.memory_space<vmem>>, vector<16x1x4xf32>,
    %cst_10 = arith.constant 0.000000e+00 : f32
    %6 = vector.broadcast %cst_10 : f32 to vector<1x18x4xf32>
    %c0_11 = arith.constant 0 : index
    %c0_12 = arith.constant 0 : index
    %c0_13 = arith.constant 0 : index
    %7 = vector.load %arg12[%c0_11, %c0_12, %c0_13] : memref<18x18x4xf32, #tpu.memory_space<vmem>>, vector<1x18x4xf32>
    tpu.vector_store %arg12[%c0_11, %c0_12, %c0_13], %6 {strides = array<i32>} : memref<18x18x4xf32, #tpu.memory_space<vmem>>, vector<1x18x4xf32>,
    %c17_14 = arith.constant 17 : index
    %c0_15 = arith.constant 0 : index
    %c0_16 = arith.constant 0 : index
    %8 = vector.load %arg12[%c17_14, %c0_15, %c0_16] : memref<18x18x4xf32, #tpu.memory_space<vmem>>, vector<1x18x4xf32>
    tpu.vector_store %arg12[%c17_14, %c0_15, %c0_16], %6 {strides = array<i32>} : memref<18x18x4xf32, #tpu.memory_space<vmem>>, vector<1x18x4xf32>,
    %cst_17 = arith.constant 0.000000e+00 : f32
    %9 = vector.broadcast %cst_17 : f32 to vector<16x1x4xf32>
    %c1_18 = arith.constant 1 : index
    %c0_19 = arith.constant 0 : index
    %c0_20 = arith.constant 0 : index
    %10 = vector.load %arg12[%c1_18, %c0_19, %c0_20] : memref<18x18x4xf32, #tpu.memory_space<vmem>>, vector<16x1x4xf32>
    tpu.vector_store %arg12[%c1_18, %c0_19, %c0_20], %9 {strides = array<i32>} : memref<18x18x4xf32, #tpu.memory_space<vmem>>, vector<16x1x4xf32>,
    %c1_21 = arith.constant 1 : index
    %c17_22 = arith.constant 17 : index
    %c0_23 = arith.constant 0 : index
    %11 = vector.load %arg12[%c1_21, %c17_22, %c0_23] : memref<18x18x4xf32, #tpu.memory_space<vmem>>, vector<16x1x4xf32>
    tpu.vector_store %arg12[%c1_21, %c17_22, %c0_23], %9 {strides = array<i32>} : memref<18x18x4xf32, #tpu.memory_space<vmem>>, vector<16x1x4xf32>,
    %c0_24 = arith.constant 0 : index
    %c0_25 = arith.constant 0 : index
    %c0_26 = arith.constant 0 : index
    %c0_27 = arith.constant 0 : index
    %12 = vector.load %arg1[%c0_24, %c0_25, %c0_26, %c0_27] : memref<1x16x16x4xf32, #tpu.memory_space<vmem>>, vector<1x16x16x4xf32>
    %13 = vector.shape_cast %12 : vector<1x16x16x4xf32> to vector<16x16x4xf32>
    %cst_28 = arith.constant 0.000000e+00 : f32
    %14 = vector.broadcast %cst_28 : f32 to vector<16x16x4xf32>
    %15 = arith.maximumf %13, %14 : vector<16x16x4xf32>
    %c1_29 = arith.constant 1 : index
    %c1_30 = arith.constant 1 : index
    %c0_31 = arith.constant 0 : index
    %16 = vector.load %arg11[%c1_29, %c1_30, %c0_31] : memref<18x18x4xf32, #tpu.memory_space<vmem>>, vector<16x16x4xf32>
    tpu.vector_store %arg11[%c1_29, %c1_30, %c0_31], %15 {strides = array<i32>} : memref<18x18x4xf32, #tpu.memory_space<vmem>>, vector<16x16x4xf32>,
    %c0_32 = arith.constant 0 : index
    %c0_33 = arith.constant 0 : index
    %c0_34 = arith.constant 0 : index
    %17 = vector.load %arg11[%c0_32, %c0_33, %c0_34] : memref<18x18x4xf32, #tpu.memory_space<vmem>>, vector<16x16x4xf32>
    %18 = vector.shape_cast %17 : vector<16x16x4xf32> to vector<256x4xf32>
    %19 = arith.truncf %18 : vector<256x4xf32> to vector<256x4xbf16>
    %c0_35 = arith.constant 0 : index
    %c0_36 = arith.constant 0 : index
    %c0_37 = arith.constant 0 : index
    %c0_38 = arith.constant 0 : index
    %20 = vector.load %arg2[%c0_35, %c0_36, %c0_37, %c0_38] : memref<3x3x4x4xbf16, #tpu.memory_space<vmem>>, vector<1x1x4x4xbf16>
    %21 = vector.shape_cast %20 : vector<1x1x4x4xbf16> to vector<4x4xbf16>
    %cst_39 = arith.constant dense<0.000000e+00> : vector<256x4xf32>
    %22 = tpu.matmul %19, %21, %cst_39 {dimension_numbers = #tpu.dot_dimension_numbers<[1], [0], [0], [1], [0, 0, 1, 1], [], []>} : vector<256x4xbf16>, vector<4x4xbf16>, vector<256x4xf32> -> vector<256x4xf32>
    %c0_40 = arith.constant 0 : index
    %c1_41 = arith.constant 1 : index
    %c0_42 = arith.constant 0 : index
    %23 = vector.load %arg11[%c0_40, %c1_41, %c0_42] : memref<18x18x4xf32, #tpu.memory_space<vmem>>, vector<16x16x4xf32>
    %24 = vector.shape_cast %23 : vector<16x16x4xf32> to vector<256x4xf32>
    %25 = arith.truncf %24 : vector<256x4xf32> to vector<256x4xbf16>
    %c0_43 = arith.constant 0 : index
    %c1_44 = arith.constant 1 : index
    %c0_45 = arith.constant 0 : index
    %c0_46 = arith.constant 0 : index
    %26 = vector.load %arg2[%c0_43, %c1_44, %c0_45, %c0_46] : memref<3x3x4x4xbf16, #tpu.memory_space<vmem>>, vector<1x1x4x4xbf16>
    %27 = vector.shape_cast %26 : vector<1x1x4x4xbf16> to vector<4x4xbf16>
    %cst_47 = arith.constant dense<0.000000e+00> : vector<256x4xf32>
    %28 = tpu.matmul %25, %27, %cst_47 {dimension_numbers = #tpu.dot_dimension_numbers<[1], [0], [0], [1], [0, 0, 1, 1], [], []>} : vector<256x4xbf16>, vector<4x4xbf16>, vector<256x4xf32> -> vector<256x4xf32>
    %29 = arith.addf %22, %28 : vector<256x4xf32>
    %c0_48 = arith.constant 0 : index
    %c2 = arith.constant 2 : index
    %c0_49 = arith.constant 0 : index
    %30 = vector.load %arg11[%c0_48, %c2, %c0_49] : memref<18x18x4xf32, #tpu.memory_space<vmem>>, vector<16x16x4xf32>
    %31 = vector.shape_cast %30 : vector<16x16x4xf32> to vector<256x4xf32>
    %32 = arith.truncf %31 : vector<256x4xf32> to vector<256x4xbf16>
    %c0_50 = arith.constant 0 : index
    %c2_51 = arith.constant 2 : index
    %c0_52 = arith.constant 0 : index
    %c0_53 = arith.constant 0 : index
    %33 = vector.load %arg2[%c0_50, %c2_51, %c0_52, %c0_53] : memref<3x3x4x4xbf16, #tpu.memory_space<vmem>>, vector<1x1x4x4xbf16>
    %34 = vector.shape_cast %33 : vector<1x1x4x4xbf16> to vector<4x4xbf16>
    %cst_54 = arith.constant dense<0.000000e+00> : vector<256x4xf32>
    %35 = tpu.matmul %32, %34, %cst_54 {dimension_numbers = #tpu.dot_dimension_numbers<[1], [0], [0], [1], [0, 0, 1, 1], [], []>} : vector<256x4xbf16>, vector<4x4xbf16>, vector<256x4xf32> -> vector<256x4xf32>
    %36 = arith.addf %29, %35 : vector<256x4xf32>
    %c1_55 = arith.constant 1 : index
    %c0_56 = arith.constant 0 : index
    %c0_57 = arith.constant 0 : index
    %37 = vector.load %arg11[%c1_55, %c0_56, %c0_57] : memref<18x18x4xf32, #tpu.memory_space<vmem>>, vector<16x16x4xf32>
    %38 = vector.shape_cast %37 : vector<16x16x4xf32> to vector<256x4xf32>
    %39 = arith.truncf %38 : vector<256x4xf32> to vector<256x4xbf16>
    %c1_58 = arith.constant 1 : index
    %c0_59 = arith.constant 0 : index
    %c0_60 = arith.constant 0 : index
    %c0_61 = arith.constant 0 : index
    %40 = vector.load %arg2[%c1_58, %c0_59, %c0_60, %c0_61] : memref<3x3x4x4xbf16, #tpu.memory_space<vmem>>, vector<1x1x4x4xbf16>
    %41 = vector.shape_cast %40 : vector<1x1x4x4xbf16> to vector<4x4xbf16>
    %cst_62 = arith.constant dense<0.000000e+00> : vector<256x4xf32>
    %42 = tpu.matmul %39, %41, %cst_62 {dimension_numbers = #tpu.dot_dimension_numbers<[1], [0], [0], [1], [0, 0, 1, 1], [], []>} : vector<256x4xbf16>, vector<4x4xbf16>, vector<256x4xf32> -> vector<256x4xf32>
    %43 = arith.addf %36, %42 : vector<256x4xf32>
    %c1_63 = arith.constant 1 : index
    %c1_64 = arith.constant 1 : index
    %c0_65 = arith.constant 0 : index
    %44 = vector.load %arg11[%c1_63, %c1_64, %c0_65] : memref<18x18x4xf32, #tpu.memory_space<vmem>>, vector<16x16x4xf32>
    %45 = vector.shape_cast %44 : vector<16x16x4xf32> to vector<256x4xf32>
    %46 = arith.truncf %45 : vector<256x4xf32> to vector<256x4xbf16>
    %c1_66 = arith.constant 1 : index
    %c1_67 = arith.constant 1 : index
    %c0_68 = arith.constant 0 : index
    %c0_69 = arith.constant 0 : index
    %47 = vector.load %arg2[%c1_66, %c1_67, %c0_68, %c0_69] : memref<3x3x4x4xbf16, #tpu.memory_space<vmem>>, vector<1x1x4x4xbf16>
    %48 = vector.shape_cast %47 : vector<1x1x4x4xbf16> to vector<4x4xbf16>
    %cst_70 = arith.constant dense<0.000000e+00> : vector<256x4xf32>
    %49 = tpu.matmul %46, %48, %cst_70 {dimension_numbers = #tpu.dot_dimension_numbers<[1], [0], [0], [1], [0, 0, 1, 1], [], []>} : vector<256x4xbf16>, vector<4x4xbf16>, vector<256x4xf32> -> vector<256x4xf32>
    %50 = arith.addf %43, %49 : vector<256x4xf32>
    %c1_71 = arith.constant 1 : index
    %c2_72 = arith.constant 2 : index
    %c0_73 = arith.constant 0 : index
    %51 = vector.load %arg11[%c1_71, %c2_72, %c0_73] : memref<18x18x4xf32, #tpu.memory_space<vmem>>, vector<16x16x4xf32>
    %52 = vector.shape_cast %51 : vector<16x16x4xf32> to vector<256x4xf32>
    %53 = arith.truncf %52 : vector<256x4xf32> to vector<256x4xbf16>
    %c1_74 = arith.constant 1 : index
    %c2_75 = arith.constant 2 : index
    %c0_76 = arith.constant 0 : index
    %c0_77 = arith.constant 0 : index
    %54 = vector.load %arg2[%c1_74, %c2_75, %c0_76, %c0_77] : memref<3x3x4x4xbf16, #tpu.memory_space<vmem>>, vector<1x1x4x4xbf16>
    %55 = vector.shape_cast %54 : vector<1x1x4x4xbf16> to vector<4x4xbf16>
    %cst_78 = arith.constant dense<0.000000e+00> : vector<256x4xf32>
    %56 = tpu.matmul %53, %55, %cst_78 {dimension_numbers = #tpu.dot_dimension_numbers<[1], [0], [0], [1], [0, 0, 1, 1], [], []>} : vector<256x4xbf16>, vector<4x4xbf16>, vector<256x4xf32> -> vector<256x4xf32>
    %57 = arith.addf %50, %56 : vector<256x4xf32>
    %c2_79 = arith.constant 2 : index
    %c0_80 = arith.constant 0 : index
    %c0_81 = arith.constant 0 : index
    %58 = vector.load %arg11[%c2_79, %c0_80, %c0_81] : memref<18x18x4xf32, #tpu.memory_space<vmem>>, vector<16x16x4xf32>
    %59 = vector.shape_cast %58 : vector<16x16x4xf32> to vector<256x4xf32>
    %60 = arith.truncf %59 : vector<256x4xf32> to vector<256x4xbf16>
    %c2_82 = arith.constant 2 : index
    %c0_83 = arith.constant 0 : index
    %c0_84 = arith.constant 0 : index
    %c0_85 = arith.constant 0 : index
    %61 = vector.load %arg2[%c2_82, %c0_83, %c0_84, %c0_85] : memref<3x3x4x4xbf16, #tpu.memory_space<vmem>>, vector<1x1x4x4xbf16>
    %62 = vector.shape_cast %61 : vector<1x1x4x4xbf16> to vector<4x4xbf16>
    %cst_86 = arith.constant dense<0.000000e+00> : vector<256x4xf32>
    %63 = tpu.matmul %60, %62, %cst_86 {dimension_numbers = #tpu.dot_dimension_numbers<[1], [0], [0], [1], [0, 0, 1, 1], [], []>} : vector<256x4xbf16>, vector<4x4xbf16>, vector<256x4xf32> -> vector<256x4xf32>
    %64 = arith.addf %57, %63 : vector<256x4xf32>
    %c2_87 = arith.constant 2 : index
    %c1_88 = arith.constant 1 : index
    %c0_89 = arith.constant 0 : index
    %65 = vector.load %arg11[%c2_87, %c1_88, %c0_89] : memref<18x18x4xf32, #tpu.memory_space<vmem>>, vector<16x16x4xf32>
    %66 = vector.shape_cast %65 : vector<16x16x4xf32> to vector<256x4xf32>
    %67 = arith.truncf %66 : vector<256x4xf32> to vector<256x4xbf16>
    %c2_90 = arith.constant 2 : index
    %c1_91 = arith.constant 1 : index
    %c0_92 = arith.constant 0 : index
    %c0_93 = arith.constant 0 : index
    %68 = vector.load %arg2[%c2_90, %c1_91, %c0_92, %c0_93] : memref<3x3x4x4xbf16, #tpu.memory_space<vmem>>, vector<1x1x4x4xbf16>
    %69 = vector.shape_cast %68 : vector<1x1x4x4xbf16> to vector<4x4xbf16>
    %cst_94 = arith.constant dense<0.000000e+00> : vector<256x4xf32>
    %70 = tpu.matmul %67, %69, %cst_94 {dimension_numbers = #tpu.dot_dimension_numbers<[1], [0], [0], [1], [0, 0, 1, 1], [], []>} : vector<256x4xbf16>, vector<4x4xbf16>, vector<256x4xf32> -> vector<256x4xf32>
    %71 = arith.addf %64, %70 : vector<256x4xf32>
    %c2_95 = arith.constant 2 : index
    %c2_96 = arith.constant 2 : index
    %c0_97 = arith.constant 0 : index
    %72 = vector.load %arg11[%c2_95, %c2_96, %c0_97] : memref<18x18x4xf32, #tpu.memory_space<vmem>>, vector<16x16x4xf32>
    %73 = vector.shape_cast %72 : vector<16x16x4xf32> to vector<256x4xf32>
    %74 = arith.truncf %73 : vector<256x4xf32> to vector<256x4xbf16>
    %c2_98 = arith.constant 2 : index
    %c2_99 = arith.constant 2 : index
    %c0_100 = arith.constant 0 : index
    %c0_101 = arith.constant 0 : index
    %75 = vector.load %arg2[%c2_98, %c2_99, %c0_100, %c0_101] : memref<3x3x4x4xbf16, #tpu.memory_space<vmem>>, vector<1x1x4x4xbf16>
    %76 = vector.shape_cast %75 : vector<1x1x4x4xbf16> to vector<4x4xbf16>
    %cst_102 = arith.constant dense<0.000000e+00> : vector<256x4xf32>
    %77 = tpu.matmul %74, %76, %cst_102 {dimension_numbers = #tpu.dot_dimension_numbers<[1], [0], [0], [1], [0, 0, 1, 1], [], []>} : vector<256x4xbf16>, vector<4x4xbf16>, vector<256x4xf32> -> vector<256x4xf32>
    %78 = arith.addf %71, %77 : vector<256x4xf32>
    %c0_103 = arith.constant 0 : index
    %c0_104 = arith.constant 0 : index
    %79 = vector.load %arg3[%c0_103, %c0_104] : memref<1x4xf32, #tpu.memory_space<vmem>>, vector<1x4xf32>
    %80 = vector.broadcast %79 : vector<1x4xf32> to vector<256x4xf32>
    %81 = arith.addf %78, %80 : vector<256x4xf32>
    %cst_105 = arith.constant 0.000000e+00 : f32
    %82 = vector.broadcast %cst_105 : f32 to vector<256x4xf32>
    %83 = arith.maximumf %81, %82 : vector<256x4xf32>
    %84 = vector.shape_cast %83 : vector<256x4xf32> to vector<16x16x4xf32>
    %c1_106 = arith.constant 1 : index
    %c1_107 = arith.constant 1 : index
    %c0_108 = arith.constant 0 : index
    %85 = vector.load %arg12[%c1_106, %c1_107, %c0_108] : memref<18x18x4xf32, #tpu.memory_space<vmem>>, vector<16x16x4xf32>
    tpu.vector_store %arg12[%c1_106, %c1_107, %c0_108], %84 {strides = array<i32>} : memref<18x18x4xf32, #tpu.memory_space<vmem>>, vector<16x16x4xf32>,
    %c0_109 = arith.constant 0 : index
    %c0_110 = arith.constant 0 : index
    %c0_111 = arith.constant 0 : index
    %86 = vector.load %arg12[%c0_109, %c0_110, %c0_111] : memref<18x18x4xf32, #tpu.memory_space<vmem>>, vector<16x16x4xf32>
    %87 = vector.shape_cast %86 : vector<16x16x4xf32> to vector<256x4xf32>
    %88 = arith.truncf %87 : vector<256x4xf32> to vector<256x4xbf16>
    %c0_112 = arith.constant 0 : index
    %c0_113 = arith.constant 0 : index
    %c0_114 = arith.constant 0 : index
    %c0_115 = arith.constant 0 : index
    %89 = vector.load %arg4[%c0_112, %c0_113, %c0_114, %c0_115] : memref<3x3x4x8xbf16, #tpu.memory_space<vmem>>, vector<1x1x4x8xbf16>
    %90 = vector.shape_cast %89 : vector<1x1x4x8xbf16> to vector<4x8xbf16>
    %cst_116 = arith.constant dense<0.000000e+00> : vector<256x8xf32>
    %91 = tpu.matmul %88, %90, %cst_116 {dimension_numbers = #tpu.dot_dimension_numbers<[1], [0], [0], [1], [0, 0, 1, 1], [], []>} : vector<256x4xbf16>, vector<4x8xbf16>, vector<256x8xf32> -> vector<256x8xf32>
    %c0_117 = arith.constant 0 : index
    %c1_118 = arith.constant 1 : index
    %c0_119 = arith.constant 0 : index
    %92 = vector.load %arg12[%c0_117, %c1_118, %c0_119] : memref<18x18x4xf32, #tpu.memory_space<vmem>>, vector<16x16x4xf32>
    %93 = vector.shape_cast %92 : vector<16x16x4xf32> to vector<256x4xf32>
    %94 = arith.truncf %93 : vector<256x4xf32> to vector<256x4xbf16>
    %c0_120 = arith.constant 0 : index
    %c1_121 = arith.constant 1 : index
    %c0_122 = arith.constant 0 : index
    %c0_123 = arith.constant 0 : index
    %95 = vector.load %arg4[%c0_120, %c1_121, %c0_122, %c0_123] : memref<3x3x4x8xbf16, #tpu.memory_space<vmem>>, vector<1x1x4x8xbf16>
    %96 = vector.shape_cast %95 : vector<1x1x4x8xbf16> to vector<4x8xbf16>
    %cst_124 = arith.constant dense<0.000000e+00> : vector<256x8xf32>
    %97 = tpu.matmul %94, %96, %cst_124 {dimension_numbers = #tpu.dot_dimension_numbers<[1], [0], [0], [1], [0, 0, 1, 1], [], []>} : vector<256x4xbf16>, vector<4x8xbf16>, vector<256x8xf32> -> vector<256x8xf32>
    %98 = arith.addf %91, %97 : vector<256x8xf32>
    %c0_125 = arith.constant 0 : index
    %c2_126 = arith.constant 2 : index
    %c0_127 = arith.constant 0 : index
    %99 = vector.load %arg12[%c0_125, %c2_126, %c0_127] : memref<18x18x4xf32, #tpu.memory_space<vmem>>, vector<16x16x4xf32>
    %100 = vector.shape_cast %99 : vector<16x16x4xf32> to vector<256x4xf32>
    %101 = arith.truncf %100 : vector<256x4xf32> to vector<256x4xbf16>
    %c0_128 = arith.constant 0 : index
    %c2_129 = arith.constant 2 : index
    %c0_130 = arith.constant 0 : index
    %c0_131 = arith.constant 0 : index
    %102 = vector.load %arg4[%c0_128, %c2_129, %c0_130, %c0_131] : memref<3x3x4x8xbf16, #tpu.memory_space<vmem>>, vector<1x1x4x8xbf16>
    %103 = vector.shape_cast %102 : vector<1x1x4x8xbf16> to vector<4x8xbf16>
    %cst_132 = arith.constant dense<0.000000e+00> : vector<256x8xf32>
    %104 = tpu.matmul %101, %103, %cst_132 {dimension_numbers = #tpu.dot_dimension_numbers<[1], [0], [0], [1], [0, 0, 1, 1], [], []>} : vector<256x4xbf16>, vector<4x8xbf16>, vector<256x8xf32> -> vector<256x8xf32>
    %105 = arith.addf %98, %104 : vector<256x8xf32>
    %c1_133 = arith.constant 1 : index
    %c0_134 = arith.constant 0 : index
    %c0_135 = arith.constant 0 : index
    %106 = vector.load %arg12[%c1_133, %c0_134, %c0_135] : memref<18x18x4xf32, #tpu.memory_space<vmem>>, vector<16x16x4xf32>
    %107 = vector.shape_cast %106 : vector<16x16x4xf32> to vector<256x4xf32>
    %108 = arith.truncf %107 : vector<256x4xf32> to vector<256x4xbf16>
    %c1_136 = arith.constant 1 : index
    %c0_137 = arith.constant 0 : index
    %c0_138 = arith.constant 0 : index
    %c0_139 = arith.constant 0 : index
    %109 = vector.load %arg4[%c1_136, %c0_137, %c0_138, %c0_139] : memref<3x3x4x8xbf16, #tpu.memory_space<vmem>>, vector<1x1x4x8xbf16>
    %110 = vector.shape_cast %109 : vector<1x1x4x8xbf16> to vector<4x8xbf16>
    %cst_140 = arith.constant dense<0.000000e+00> : vector<256x8xf32>
    %111 = tpu.matmul %108, %110, %cst_140 {dimension_numbers = #tpu.dot_dimension_numbers<[1], [0], [0], [1], [0, 0, 1, 1], [], []>} : vector<256x4xbf16>, vector<4x8xbf16>, vector<256x8xf32> -> vector<256x8xf32>
    %112 = arith.addf %105, %111 : vector<256x8xf32>
    %c1_141 = arith.constant 1 : index
    %c1_142 = arith.constant 1 : index
    %c0_143 = arith.constant 0 : index
    %113 = vector.load %arg12[%c1_141, %c1_142, %c0_143] : memref<18x18x4xf32, #tpu.memory_space<vmem>>, vector<16x16x4xf32>
    %114 = vector.shape_cast %113 : vector<16x16x4xf32> to vector<256x4xf32>
    %115 = arith.truncf %114 : vector<256x4xf32> to vector<256x4xbf16>
    %c1_144 = arith.constant 1 : index
    %c1_145 = arith.constant 1 : index
    %c0_146 = arith.constant 0 : index
    %c0_147 = arith.constant 0 : index
    %116 = vector.load %arg4[%c1_144, %c1_145, %c0_146, %c0_147] : memref<3x3x4x8xbf16, #tpu.memory_space<vmem>>, vector<1x1x4x8xbf16>
    %117 = vector.shape_cast %116 : vector<1x1x4x8xbf16> to vector<4x8xbf16>
    %cst_148 = arith.constant dense<0.000000e+00> : vector<256x8xf32>
    %118 = tpu.matmul %115, %117, %cst_148 {dimension_numbers = #tpu.dot_dimension_numbers<[1], [0], [0], [1], [0, 0, 1, 1], [], []>} : vector<256x4xbf16>, vector<4x8xbf16>, vector<256x8xf32> -> vector<256x8xf32>
    %119 = arith.addf %112, %118 : vector<256x8xf32>
    %c1_149 = arith.constant 1 : index
    %c2_150 = arith.constant 2 : index
    %c0_151 = arith.constant 0 : index
    %120 = vector.load %arg12[%c1_149, %c2_150, %c0_151] : memref<18x18x4xf32, #tpu.memory_space<vmem>>, vector<16x16x4xf32>
    %121 = vector.shape_cast %120 : vector<16x16x4xf32> to vector<256x4xf32>
    %122 = arith.truncf %121 : vector<256x4xf32> to vector<256x4xbf16>
    %c1_152 = arith.constant 1 : index
    %c2_153 = arith.constant 2 : index
    %c0_154 = arith.constant 0 : index
    %c0_155 = arith.constant 0 : index
    %123 = vector.load %arg4[%c1_152, %c2_153, %c0_154, %c0_155] : memref<3x3x4x8xbf16, #tpu.memory_space<vmem>>, vector<1x1x4x8xbf16>
    %124 = vector.shape_cast %123 : vector<1x1x4x8xbf16> to vector<4x8xbf16>
    %cst_156 = arith.constant dense<0.000000e+00> : vector<256x8xf32>
    %125 = tpu.matmul %122, %124, %cst_156 {dimension_numbers = #tpu.dot_dimension_numbers<[1], [0], [0], [1], [0, 0, 1, 1], [], []>} : vector<256x4xbf16>, vector<4x8xbf16>, vector<256x8xf32> -> vector<256x8xf32>
    %126 = arith.addf %119, %125 : vector<256x8xf32>
    %c2_157 = arith.constant 2 : index
    %c0_158 = arith.constant 0 : index
    %c0_159 = arith.constant 0 : index
    %127 = vector.load %arg12[%c2_157, %c0_158, %c0_159] : memref<18x18x4xf32, #tpu.memory_space<vmem>>, vector<16x16x4xf32>
    %128 = vector.shape_cast %127 : vector<16x16x4xf32> to vector<256x4xf32>
    %129 = arith.truncf %128 : vector<256x4xf32> to vector<256x4xbf16>
    %c2_160 = arith.constant 2 : index
    %c0_161 = arith.constant 0 : index
    %c0_162 = arith.constant 0 : index
    %c0_163 = arith.constant 0 : index
    %130 = vector.load %arg4[%c2_160, %c0_161, %c0_162, %c0_163] : memref<3x3x4x8xbf16, #tpu.memory_space<vmem>>, vector<1x1x4x8xbf16>
    %131 = vector.shape_cast %130 : vector<1x1x4x8xbf16> to vector<4x8xbf16>
    %cst_164 = arith.constant dense<0.000000e+00> : vector<256x8xf32>
    %132 = tpu.matmul %129, %131, %cst_164 {dimension_numbers = #tpu.dot_dimension_numbers<[1], [0], [0], [1], [0, 0, 1, 1], [], []>} : vector<256x4xbf16>, vector<4x8xbf16>, vector<256x8xf32> -> vector<256x8xf32>
    %133 = arith.addf %126, %132 : vector<256x8xf32>
    %c2_165 = arith.constant 2 : index
    %c1_166 = arith.constant 1 : index
    %c0_167 = arith.constant 0 : index
    %134 = vector.load %arg12[%c2_165, %c1_166, %c0_167] : memref<18x18x4xf32, #tpu.memory_space<vmem>>, vector<16x16x4xf32>
    %135 = vector.shape_cast %134 : vector<16x16x4xf32> to vector<256x4xf32>
    %136 = arith.truncf %135 : vector<256x4xf32> to vector<256x4xbf16>
    %c2_168 = arith.constant 2 : index
    %c1_169 = arith.constant 1 : index
    %c0_170 = arith.constant 0 : index
    %c0_171 = arith.constant 0 : index
    %137 = vector.load %arg4[%c2_168, %c1_169, %c0_170, %c0_171] : memref<3x3x4x8xbf16, #tpu.memory_space<vmem>>, vector<1x1x4x8xbf16>
    %138 = vector.shape_cast %137 : vector<1x1x4x8xbf16> to vector<4x8xbf16>
    %cst_172 = arith.constant dense<0.000000e+00> : vector<256x8xf32>
    %139 = tpu.matmul %136, %138, %cst_172 {dimension_numbers = #tpu.dot_dimension_numbers<[1], [0], [0], [1], [0, 0, 1, 1], [], []>} : vector<256x4xbf16>, vector<4x8xbf16>, vector<256x8xf32> -> vector<256x8xf32>
    %140 = arith.addf %133, %139 : vector<256x8xf32>
    %c2_173 = arith.constant 2 : index
    %c2_174 = arith.constant 2 : index
    %c0_175 = arith.constant 0 : index
    %141 = vector.load %arg12[%c2_173, %c2_174, %c0_175] : memref<18x18x4xf32, #tpu.memory_space<vmem>>, vector<16x16x4xf32>
    %142 = vector.shape_cast %141 : vector<16x16x4xf32> to vector<256x4xf32>
    %143 = arith.truncf %142 : vector<256x4xf32> to vector<256x4xbf16>
    %c2_176 = arith.constant 2 : index
    %c2_177 = arith.constant 2 : index
    %c0_178 = arith.constant 0 : index
    %c0_179 = arith.constant 0 : index
    %144 = vector.load %arg4[%c2_176, %c2_177, %c0_178, %c0_179] : memref<3x3x4x8xbf16, #tpu.memory_space<vmem>>, vector<1x1x4x8xbf16>
    %145 = vector.shape_cast %144 : vector<1x1x4x8xbf16> to vector<4x8xbf16>
    %cst_180 = arith.constant dense<0.000000e+00> : vector<256x8xf32>
    %146 = tpu.matmul %143, %145, %cst_180 {dimension_numbers = #tpu.dot_dimension_numbers<[1], [0], [0], [1], [0, 0, 1, 1], [], []>} : vector<256x4xbf16>, vector<4x8xbf16>, vector<256x8xf32> -> vector<256x8xf32>
    %147 = arith.addf %140, %146 : vector<256x8xf32>
    %c0_181 = arith.constant 0 : index
    %c0_182 = arith.constant 0 : index
    %148 = vector.load %arg5[%c0_181, %c0_182] : memref<1x8xf32, #tpu.memory_space<vmem>>, vector<1x8xf32>
    %149 = vector.broadcast %148 : vector<1x8xf32> to vector<256x8xf32>
    %150 = arith.addf %147, %149 : vector<256x8xf32>
    %151 = vector.shape_cast %13 : vector<16x16x4xf32> to vector<256x4xf32>
    %152 = arith.truncf %151 : vector<256x4xf32> to vector<256x4xbf16>
    %c0_183 = arith.constant 0 : index
    %c0_184 = arith.constant 0 : index
    %153 = vector.load %arg6[%c0_183, %c0_184] : memref<4x8xbf16, #tpu.memory_space<vmem>>, vector<4x8xbf16>
    %cst_185 = arith.constant dense<0.000000e+00> : vector<256x8xf32>
    %154 = tpu.matmul %152, %153, %cst_185 {dimension_numbers = #tpu.dot_dimension_numbers<[1], [0], [0], [1], [0, 0, 1, 1], [], []>} : vector<256x4xbf16>, vector<4x8xbf16>, vector<256x8xf32> -> vector<256x8xf32>
    %c0_186 = arith.constant 0 : index
    %c0_187 = arith.constant 0 : index
    %155 = vector.load %arg7[%c0_186, %c0_187] : memref<1x8xf32, #tpu.memory_space<vmem>>, vector<1x8xf32>
    %156 = vector.broadcast %155 : vector<1x8xf32> to vector<256x8xf32>
    %157 = arith.addf %154, %156 : vector<256x8xf32>
    %158 = arith.addf %150, %157 : vector<256x8xf32>
    %159 = vector.shape_cast %158 : vector<256x8xf32> to vector<8x2x16x8xf32>
    %160 = vector.extract_strided_slice %159 {offsets = [0, 0, 0, 0], sizes = [8, 1, 16, 8], strides = [1, 1, 1, 1]} : vector<8x2x16x8xf32> to vector<8x1x16x8xf32>
    %161 = vector.shape_cast %160 : vector<8x1x16x8xf32> to vector<8x16x8xf32>
    %162 = vector.extract_strided_slice %159 {offsets = [0, 1, 0, 0], sizes = [8, 1, 16, 8], strides = [1, 1, 1, 1]} : vector<8x2x16x8xf32> to vector<8x1x16x8xf32>
    %163 = vector.shape_cast %162 : vector<8x1x16x8xf32> to vector<8x16x8xf32>
    %164 = arith.addf %161, %163 : vector<8x16x8xf32>
    %c0_188 = arith.constant 0 : index
    %c0_189 = arith.constant 0 : index
    %165 = vector.load %arg8[%c0_188, %c0_189] : memref<8x16xf32, #tpu.memory_space<vmem>>, vector<8x16xf32>
    %166 = vector.shape_cast %165 : vector<8x16xf32> to vector<1x8x16xf32>
    %167 = vector.broadcast %166 : vector<1x8x16xf32> to vector<8x8x16xf32>
    %cst_190 = arith.constant dense<0.000000e+00> : vector<8x8x8xf32>
    %168 = tpu.matmul %167, %164, %cst_190 {dimension_numbers = #tpu.dot_dimension_numbers<[2], [1], [1], [2], [0, 0, 0, 1, 1, 2], [0], [0]>} : vector<8x8x16xf32>, vector<8x16x8xf32>, vector<8x8x8xf32> -> vector<8x8x8xf32>
    %169 = vector.shape_cast %168 : vector<8x8x8xf32> to vector<64x8xf32>
    %c0_191 = arith.constant 0 : index
    %c0_192 = arith.constant 0 : index
    %170 = vector.load %arg9[%c0_191, %c0_192] : memref<8x8xf32, #tpu.memory_space<vmem>>, vector<8x8xf32>
    %cst_193 = arith.constant dense<0.000000e+00> : vector<8x64xf32>
    %171 = tpu.matmul %170, %169, %cst_193 {dimension_numbers = #tpu.dot_dimension_numbers<[1], [1], [0], [0], [0, 0, 1, 0], [], []>} : vector<8x8xf32>, vector<64x8xf32>, vector<8x64xf32> -> vector<8x64xf32>
    %c0_194 = arith.constant 0 : index
    %c0_195 = arith.constant 0 : index
    %c0_196 = arith.constant 0 : index
    %172 = vector.load %arg10[%c0_194, %c0_195, %c0_196] : memref<1x8x64xf32, #tpu.memory_space<vmem>>, vector<1x8x64xf32>
    %173 = vector.shape_cast %172 : vector<1x8x64xf32> to vector<8x64xf32>
    %174 = vector.shape_cast %171 : vector<8x64xf32> to vector<1x8x64xf32>
    tpu.vector_store %arg10[%c0_194, %c0_195, %c0_196], %174 {strides = array<i32>} : memref<1x8x64xf32, #tpu.memory_space<vmem>>, vector<1x8x64xf32>,
    return
  }
  func.func @transform_0(%arg0: i32) -> (i32, i32, i32, i32) {
    %c0_i32 = arith.constant 0 : i32
    %c0_i32_0 = arith.constant 0 : i32
    %c0_i32_1 = arith.constant 0 : i32
    %c0_i32_2 = arith.constant 0 : i32
    return %arg0, %c0_i32, %c0_i32_0, %c0_i32_1 : i32, i32, i32, i32
  }
  func.func @transform_1(%arg0: i32) -> (i32, i32, i32, i32) {
    %c0_i32 = arith.constant 0 : i32
    %c0_i32_0 = arith.constant 0 : i32
    %c0_i32_1 = arith.constant 0 : i32
    %c0_i32_2 = arith.constant 0 : i32
    %c0_i32_3 = arith.constant 0 : i32
    return %c0_i32, %c0_i32_0, %c0_i32_1, %c0_i32_2 : i32, i32, i32, i32
  }
  func.func @transform_2(%arg0: i32) -> (i32, i32) {
    %c0_i32 = arith.constant 0 : i32
    %c0_i32_0 = arith.constant 0 : i32
    %c0_i32_1 = arith.constant 0 : i32
    return %c0_i32, %c0_i32_0 : i32, i32
  }
  func.func @transform_3(%arg0: i32) -> (i32, i32, i32, i32) {
    %c0_i32 = arith.constant 0 : i32
    %c0_i32_0 = arith.constant 0 : i32
    %c0_i32_1 = arith.constant 0 : i32
    %c0_i32_2 = arith.constant 0 : i32
    %c0_i32_3 = arith.constant 0 : i32
    return %c0_i32, %c0_i32_0, %c0_i32_1, %c0_i32_2 : i32, i32, i32, i32
  }
  func.func @transform_4(%arg0: i32) -> (i32, i32) {
    %c0_i32 = arith.constant 0 : i32
    %c0_i32_0 = arith.constant 0 : i32
    %c0_i32_1 = arith.constant 0 : i32
    return %c0_i32, %c0_i32_0 : i32, i32
  }
  func.func @transform_5(%arg0: i32) -> (i32, i32) {
    %c0_i32 = arith.constant 0 : i32
    %c0_i32_0 = arith.constant 0 : i32
    %c0_i32_1 = arith.constant 0 : i32
    return %c0_i32, %c0_i32_0 : i32, i32
  }
  func.func @transform_6(%arg0: i32) -> (i32, i32) {
    %c0_i32 = arith.constant 0 : i32
    %c0_i32_0 = arith.constant 0 : i32
    %c0_i32_1 = arith.constant 0 : i32
    return %c0_i32, %c0_i32_0 : i32, i32
  }
  func.func @transform_7(%arg0: i32) -> (i32, i32) {
    %c0_i32 = arith.constant 0 : i32
    %c0_i32_0 = arith.constant 0 : i32
    %c0_i32_1 = arith.constant 0 : i32
    return %c0_i32, %c0_i32_0 : i32, i32
  }
  func.func @transform_8(%arg0: i32) -> (i32, i32) {
    %c0_i32 = arith.constant 0 : i32
    %c0_i32_0 = arith.constant 0 : i32
    %c0_i32_1 = arith.constant 0 : i32
    return %c0_i32, %c0_i32_0 : i32, i32
  }
  func.func @transform_9(%arg0: i32) -> (i32, i32, i32) {
    %c0_i32 = arith.constant 0 : i32
    %c0_i32_0 = arith.constant 0 : i32
    %c0_i32_1 = arith.constant 0 : i32
    return %arg0, %c0_i32, %c0_i32_0 : i32, i32, i32
  }
}

</mosaic_0001>

<bundles_post_ra>
// kernel: tpu_custom_call.1
= control target key start
LH: loop header
LB: loop body
LE: loop exit
PB: predicated region body
PF: predicated region fallthrough
CT: control target
= control target key end

     0   :  { %14 = vsyncpa [#allocation5], 0  ;;  %s10521_s0 = inlined_call_operand.vmem [shape: f32[2,16,16,4], index: 0, kind: input, shape index: {}]   ;;  %s10522_s1 = inlined_call_operand.vmem [shape: bf16[3,3,4,4], index: 1, kind: input, shape index: {}]   ;;  %s10523_s2 = inlined_call_operand.vmem [shape: f32[1,4], index: 2, kind: input, shape index: {}]   ;;  %s10524_s3 = inlined_call_operand.vmem [shape: bf16[3,3,4,8], index: 3, kind: input, shape index: {}]   ;;  %s10525_s4 = inlined_call_operand.vmem [shape: f32[1,8], index: 4, kind: input, shape index: {}]   ;;  %s10526_s5 = inlined_call_operand.vmem [shape: bf16[4,8], index: 5, kind: input, shape index: {}]   ;;  %s10527_s6 = inlined_call_operand.vmem [shape: f32[1,8], index: 6, kind: input, shape index: {}]   ;;  %s10528_s7 = inlined_call_operand.vmem [shape: f32[8,16], index: 7, kind: input, shape index: {}]   ;;  %s10529_s8 = inlined_call_operand.vmem [shape: f32[8,8], index: 8, kind: input, shape index: {}]   ;;  %s10530_s9 = inlined_call_operand.hbm [shape: f32[2,8,64], index: 9, kind: output, shape index: {}]  }
   0x1   :  { %16 = vsyncpa [#allocation5 + $0x1], 0  ;;  %s9129_s30 = smov 0   ;;  %s9131_s10 = smov 0  }
   0x2   :  { %s9133_s11 = smov 0   ;;  %s9135_s12 = smov 0  }
   0x3 LB: > { %s9150_s13 = sadd.s32 4294967295, %s9073_s12   ;;  %s6841_s14 = sadd.s32 4294967294, %s9073_s12   ;;  %s9073_s12 = sphi %s9135_s12, %s10538_s12   ;;  %s9069_s11 = sphi %s9133_s11, %s10537_s11   ;;  %s9065_s10 = sphi %s9131_s10, %s10536_s10   ;;  %s9061_s30 = sphi %s9129_s30, %s10535_s30  }
   0x4   : > { %s9154_s15 = sadd.s32 1, %s9073_s12   ;;  %s223_s16 = sadd.s32 1, %s9069_s11 }
   0x5   : > { %s220_s17 = ssub.s32 %s9073_s12, %s9154_s15  ;;  %p233_p0 = scmp.ne.s32.totalorder %s9069_s11, %s9065_s10 }
   0x6   : > { %p221_p1 = scmp.eq.s32.totalorder %s220_s17, 0  ;;  %p234_p2 = scmp.eq.s32.totalorder %s9150_s13, 1 }
   0x7   : > { %p239_p3 = scmp.ne.s32.totalorder %s9065_s10, %s9061_s30  ;;  %p240_p4 = scmp.eq.s32.totalorder %s6841_s14, 1 }
   0x8   : > { %s9165_s18 = scalar_select %p221_p1, %s9069_s11, %s223_s16  }
   0x9   : > { %p9167_p5 = por %p234_p2, %p233_p0  ;;  %p9171_p6 = por %p240_p4, %p239_p3 }
   0xa   : > { %p6844_p7 = scmp.ge.s32.totalorder %s9073_s12, 1  ;;  %p290_p8 = scmp.lt.s32.totalorder %s9073_s12, 3 }
   0xc   : > { %p291_p9 = pnand %p6844_p7, %p290_p8 }
   0xd   : > { %v6848_v0 = vld [vmem:[%s10522_s1 + $0x2] sm:$0x3] (!%p291_p9)  ;;  %vm658_vm0 = vcmask (!%p291_p9), 1041408   ;;  %vm332_vm1 = vcmask (!%p291_p9), 31744   ;;  %vm335_vm2 = vcmask (!%p291_p9), 25600   ;;  %v9075_v2 = vmov (!%p291_p9), 0.0  }
   0xe   : > { %294 = sbr.rel (%p291_p9) target bundleno = 2106 (0x83a), region = 56  ;;  %8918 = vmatprep.subr.msk.bf16.mxu0 (!%p291_p9), %vm658_vm0, %v6848_v0  ;;  %v660_v1 = vsel (!%p291_p9), %vm658_vm0, %v6848_v0, 0  ;;  %333 = vst.msk [vmem:[#allocation2] sm:$0xff] (!%p291_p9), %vm332_vm1, %v9075_v2  ;;  %334 = vst.msk [vmem:[#allocation2 + $0x8] sm:$0xff] (!%p291_p9), %vm332_vm1, %v9075_v2  ;;  %p326_p10 = scmp.lt.s32.totalorder (!%p291_p9), %s9150_s13, 1  ;;  %vm342_vm3 = vcmask (!%p291_p9), 24576  }
   0xf   : > { %336 = vst.msk [vmem:[#allocation2 + $0x10] sm:$0x3] (!%p291_p9), %vm335_vm2, %v9075_v2  ;;  %340 = vst.msk [vmem:[#allocation2 + $0x1a8] sm:$0x3] (!%p291_p9), %vm335_vm2, %v9075_v2  ;;  %v9206_v3 = vld [vmem:[%s10522_s1] sm:$0x3] (!%p291_p9)  ;;  %7550 = vmatpush3.bf16.msra.mxu0 (!%p291_p9), %v660_v1 }
  0x10   : > { %338 = vst.msk [vmem:[#allocation2 + $0x198] sm:$0xff] (!%p291_p9), %vm332_vm1, %v9075_v2  ;;  %339 = vst.msk [vmem:[#allocation2 + $0x1a0] sm:$0xff] (!%p291_p9), %vm332_vm1, %v9075_v2  ;;  %8919 = vmatprep.subr.msk.bf16.mxu0 (!%p291_p9), %vm658_vm0, %v9206_v3  ;;  %vm9077_vm4 = vmmov (!%p291_p9), 0   ;;  %vm6103_vm5 = vcmask (!%p291_p9), 130048   ;;  %vm6668_vm6 = vcmask (!%p291_p9), 64512   ;;  %s323_s28 = sand.u32 (!%p291_p9), 1, %s9065_s10  }
  0x11   : > { %375 = vst.msk [vmem:[#allocation3] sm:$0xff] (!%p291_p9), %vm332_vm1, %v9075_v2  ;;  %376 = vst.msk [vmem:[#allocation3 + $0x8] sm:$0xff] (!%p291_p9), %vm332_vm1, %v9075_v2  ;;  %s6845_s14 = sshll.u32 (!%p291_p9), %s323_s28, 3  ;;  %s7189_s16 = sshll.u32 (!%p291_p9), %s9150_s13, 7  ;;  %vm6766_vm8 = vcmask (!%p291_p9), 523264  }
  0x12   : > { %377 = vst.msk [vmem:[#allocation3 + $0x10] sm:$0x3] (!%p291_p9), %vm335_vm2, %v9075_v2  ;;  %381 = vst.msk [vmem:[#allocation3 + $0x1a8] sm:$0x3] (!%p291_p9), %vm335_vm2, %v9075_v2  ;;  %s325_s17 = scalar_lea.vmem (!%p291_p9), [#allocation4], %s6845_s14  ;;  %s10479_s24 = scalar_lea.hbm (!%p291_p9), %s10530_s9, %s7189_s16 }
  0x13   : > { %379 = vst.msk [vmem:[#allocation3 + $0x198] sm:$0xff] (!%p291_p9), %vm332_vm1, %v9075_v2  ;;  %380 = vst.msk [vmem:[#allocation3 + $0x1a0] sm:$0xff] (!%p291_p9), %vm332_vm1, %v9075_v2  ;;  %s6782_s21 = sshll.u32 (!%p291_p9), %s325_s17, 4  ;;  %s10481_s21 = int_to_ptr.vmem [resolvable:$true] %s6782_s21 }
  0x14   : > { %343 = vst.msk [vmem:[#allocation2 + $0x18] sm:$0x1] (!%p291_p9), %vm342_vm3, %v9075_v2  ;;  %344 = vst.msk [vmem:[#allocation2 + $0x30] sm:$0x1] (!%p291_p9), %vm342_vm3, %v9075_v2 }
  0x15   : > { %345 = vst.msk [vmem:[#allocation2 + $0x48] sm:$0x1] %vm342_vm3, %v9075_v2  ;;  %346 = vst.msk [vmem:[#allocation2 + $0x60] sm:$0x1] %vm342_vm3, %v9075_v2  ;;  %s327_s25 = scalar_select %p326_p10, %s9150_s13, 1  ;;  %v560_v7 = vld [vmem:[#allocation2 + $0x1] sm:$0xff] }
  0x16   : > { %347 = vst.msk [vmem:[#allocation2 + $0x78] sm:$0x1] %vm342_vm3, %v9075_v2  ;;  %348 = vst.msk [vmem:[#allocation2 + $0x90] sm:$0x1] %vm342_vm3, %v9075_v2  ;;  %v561_v8 = vld [vmem:[#allocation2 + $0x9] sm:$0xff]  ;;  %s9078_s13 = smov [#allocation4]  }
  0x17   : > { %349 = vst.msk [vmem:[#allocation2 + $0xa8] sm:$0x1] %vm342_vm3, %v9075_v2  ;;  %350 = vst.msk [vmem:[#allocation2 + $0xc0] sm:$0x1] %vm342_vm3, %v9075_v2  ;;  %s7192_s26 = sshll.u32 %s327_s25, 8  ;;  %v592_v13 = vpack.c.bf16 %v561_v8, %v560_v7  ;;  %s9011_s25 = scalar_lea.vmem %s10481_s21, 128 }
  0x18   : > { %351 = vst.msk [vmem:[#allocation2 + $0xd8] sm:$0x1] %vm342_vm3, %v9075_v2  ;;  %352 = vst.msk [vmem:[#allocation2 + $0xf0] sm:$0x1] %vm342_vm3, %v9075_v2  ;;  %s9344_s29 = scalar_lea.vmem %s10521_s0, %s7192_s26  ;;  %p9012_p11 = scmp.ne.s32.totalorder %s10481_s21, %s9011_s25 }
  0x19   : > { %353 = vst.msk [vmem:[#allocation2 + $0x108] sm:$0x1] %vm342_vm3, %v9075_v2  ;;  %354 = vst.msk [vmem:[#allocation2 + $0x120] sm:$0x1] %vm342_vm3, %v9075_v2  ;;  %v415_v4 = vld [vmem:[%s9344_s29] sm:$0xff]  ;;  %v416_v5 = vld [vmem:[%s9344_s29 + $0x8] sm:$0xff]  ;;  %7551 = vmatprep.mubr.msk.bf16.mxu0 %vm332_vm1, %v592_v13 }
  0x1a   : > { %355 = vst.msk [vmem:[#allocation2 + $0x138] sm:$0x1] %vm342_vm3, %v9075_v2  ;;  %356 = vst.msk [vmem:[#allocation2 + $0x150] sm:$0x1] %vm342_vm3, %v9075_v2  ;;  %v417_v6 = vld [vmem:[%s9344_s29 + $0x10] sm:$0xff]  ;;  %v447_v9 = vmax.f32 %v415_v4, 0.0  ;;  %p9013_p12 = pnand %p9012_p11, %p9167_p5 }
  0x1b   : > { %357 = vst.msk [vmem:[#allocation2 + $0x168] sm:$0x1] %vm342_vm3, %v9075_v2  ;;  %358 = vst.msk [vmem:[#allocation2 + $0x180] sm:$0x1] %vm342_vm3, %v9075_v2  ;;  %v448_v10 = vmax.f32 %v416_v5, 0.0  ;;  %v418_v11 = vld [vmem:[%s9344_s29 + $0x18] sm:$0xff] }
  0x1c   : > { %359 = vst.msk [vmem:[#allocation2 + $0x29] sm:$0x1] %vm342_vm3, %v9075_v2  ;;  %360 = vst.msk [vmem:[#allocation2 + $0x41] sm:$0x1] %vm342_vm3, %v9075_v2  ;;  %v449_v12 = vmax.f32 %v417_v6, 0.0  ;;  %v450_v14 = vmax.f32 %v418_v11, 0.0  ;;  %p9014_p13 = pneg %p9013_p12 }
  0x1d   : > { %361 = vst.msk [vmem:[#allocation2 + $0x59] sm:$0x1] %vm342_vm3, %v9075_v2  ;;  %362 = vst.msk [vmem:[#allocation2 + $0x71] sm:$0x1] %vm342_vm3, %v9075_v2  ;;  %v419_v15 = vld [vmem:[%s9344_s29 + $0x20] sm:$0xff]  ;;  %v420_v16 = vld [vmem:[%s9344_s29 + $0x28] sm:$0xff] }
  0x1e   : > { %363 = vst.msk [vmem:[#allocation2 + $0x89] sm:$0x1] %vm342_vm3, %v9075_v2  ;;  %364 = vst.msk [vmem:[#allocation2 + $0xa1] sm:$0x1] %vm342_vm3, %v9075_v2  ;;  %v421_v17 = vld [vmem:[%s9344_s29 + $0x30] sm:$0xff]  ;;  %v451_v18 = vmax.f32 %v419_v15, 0.0 }
  0x1f   : > { %365 = vst.msk [vmem:[#allocation2 + $0xb9] sm:$0x1] %vm342_vm3, %v9075_v2  ;;  %366 = vst.msk [vmem:[#allocation2 + $0xd1] sm:$0x1] %vm342_vm3, %v9075_v2  ;;  %v452_v19 = vmax.f32 %v420_v16, 0.0  ;;  %v422_v20 = vld [vmem:[%s9344_s29 + $0x38] sm:$0xff] }
  0x20   : > { %367 = vst.msk [vmem:[#allocation2 + $0xe9] sm:$0x1] %vm342_vm3, %v9075_v2  ;;  %368 = vst.msk [vmem:[#allocation2 + $0x101] sm:$0x1] %vm342_vm3, %v9075_v2  ;;  %v453_v21 = vmax.f32 %v421_v17, 0.0  ;;  %v423_v22 = vld [vmem:[%s9344_s29 + $0x40] sm:$0xff] }
  0x21   : > { %369 = vst.msk [vmem:[#allocation2 + $0x119] sm:$0x1] %vm342_vm3, %v9075_v2  ;;  %370 = vst.msk [vmem:[#allocation2 + $0x131] sm:$0x1] %vm342_vm3, %v9075_v2  ;;  %v424_v23 = vld [vmem:[%s9344_s29 + $0x48] sm:$0xff]  ;;  %v454_v24 = vmax.f32 %v422_v20, 0.0 }
  0x22   : > { %371 = vst.msk [vmem:[#allocation2 + $0x149] sm:$0x1] %vm342_vm3, %v9075_v2  ;;  %372 = vst.msk [vmem:[#allocation2 + $0x161] sm:$0x1] %vm342_vm3, %v9075_v2  ;;  %v455_v25 = vmax.f32 %v423_v22, 0.0  ;;  %v456_v26 = vmax.f32 %v424_v23, 0.0 }
  0x23   : > { %373 = vst.msk [vmem:[#allocation2 + $0x179] sm:$0x1] %vm342_vm3, %v9075_v2  ;;  %374 = vst.msk [vmem:[#allocation2 + $0x191] sm:$0x1] %vm342_vm3, %v9075_v2  ;;  %v425_v27 = vld [vmem:[%s9344_s29 + $0x50] sm:$0xff]  ;;  %v426_v28 = vld [vmem:[%s9344_s29 + $0x58] sm:$0xff] }
  0x24   : > { %383 = vst.msk [vmem:[#allocation3 + $0x18] sm:$0x1] %vm342_vm3, %v9075_v2  ;;  %384 = vst.msk [vmem:[#allocation3 + $0x30] sm:$0x1] %vm342_vm3, %v9075_v2  ;;  %v427_v29 = vld [vmem:[%s9344_s29 + $0x60] sm:$0xff]  ;;  %v457_v30 = vmax.f32 %v425_v27, 0.0 }
  0x25   : > { %385 = vst.msk [vmem:[#allocation3 + $0x48] sm:$0x1] %vm342_vm3, %v9075_v2  ;;  %386 = vst.msk [vmem:[#allocation3 + $0x60] sm:$0x1] %vm342_vm3, %v9075_v2  ;;  %v458_v31 = vmax.f32 %v426_v28, 0.0  ;;  %v428_v32 = vld [vmem:[%s9344_s29 + $0x68] sm:$0xff] }
  0x26   : > { %387 = vst.msk [vmem:[#allocation3 + $0x78] sm:$0x1] %vm342_vm3, %v9075_v2  ;;  %388 = vst.msk [vmem:[#allocation3 + $0x90] sm:$0x1] %vm342_vm3, %v9075_v2  ;;  %v459_v33 = vmax.f32 %v427_v29, 0.0  ;;  %v429_v34 = vld [vmem:[%s9344_s29 + $0x70] sm:$0xff] }
  0x27   : > { %389 = vst.msk [vmem:[#allocation3 + $0xa8] sm:$0x1] %vm342_vm3, %v9075_v2  ;;  %390 = vst.msk [vmem:[#allocation3 + $0xc0] sm:$0x1] %vm342_vm3, %v9075_v2  ;;  %v430_v35 = vld [vmem:[%s9344_s29 + $0x78] sm:$0xff]  ;;  %v460_v36 = vmax.f32 %v428_v32, 0.0 }
  0x28   : > { %391 = vst.msk [vmem:[#allocation3 + $0xd8] sm:$0x1] %vm342_vm3, %v9075_v2  ;;  %392 = vst.msk [vmem:[#allocation3 + $0xf0] sm:$0x1] %vm342_vm3, %v9075_v2  ;;  %v461_v37 = vmax.f32 %v429_v34, 0.0  ;;  %v462_v38 = vmax.f32 %v430_v35, 0.0 }
  0x29   : > { %393 = vst.msk [vmem:[#allocation3 + $0x108] sm:$0x1] %vm342_vm3, %v9075_v2  ;;  %394 = vst.msk [vmem:[#allocation3 + $0x120] sm:$0x1] %vm342_vm3, %v9075_v2  ;;  %v431_v39 = vld [vmem:[%s9344_s29 + $0x80] sm:$0xff]  ;;  %v432_v40 = vld [vmem:[%s9344_s29 + $0x88] sm:$0xff] }
  0x2a   : > { %395 = vst.msk [vmem:[#allocation3 + $0x138] sm:$0x1] %vm342_vm3, %v9075_v2  ;;  %396 = vst.msk [vmem:[#allocation3 + $0x150] sm:$0x1] %vm342_vm3, %v9075_v2  ;;  %v433_v41 = vld [vmem:[%s9344_s29 + $0x90] sm:$0xff]  ;;  %v463_v42 = vmax.f32 %v431_v39, 0.0 }
  0x2b   : > { %397 = vst.msk [vmem:[#allocation3 + $0x168] sm:$0x1] %vm342_vm3, %v9075_v2  ;;  %398 = vst.msk [vmem:[#allocation3 + $0x180] sm:$0x1] %vm342_vm3, %v9075_v2  ;;  %v464_v43 = vmax.f32 %v432_v40, 0.0  ;;  %v434_v44 = vld [vmem:[%s9344_s29 + $0x98] sm:$0xff] }
  0x2c   : > { %399 = vst.msk [vmem:[#allocation3 + $0x29] sm:$0x1] %vm342_vm3, %v9075_v2  ;;  %400 = vst.msk [vmem:[#allocation3 + $0x41] sm:$0x1] %vm342_vm3, %v9075_v2  ;;  %v465_v45 = vmax.f32 %v433_v41, 0.0  ;;  %v435_v46 = vld [vmem:[%s9344_s29 + $0xa0] sm:$0xff] }
  0x2d   : > { %401 = vst.msk [vmem:[#allocation3 + $0x59] sm:$0x1] %vm342_vm3, %v9075_v2  ;;  %402 = vst.msk [vmem:[#allocation3 + $0x71] sm:$0x1] %vm342_vm3, %v9075_v2  ;;  %v436_v47 = vld [vmem:[%s9344_s29 + $0xa8] sm:$0xff]  ;;  %v466_v48 = vmax.f32 %v434_v44, 0.0 }
  0x2e   : > { %403 = vst.msk [vmem:[#allocation3 + $0x89] sm:$0x1] %vm342_vm3, %v9075_v2  ;;  %404 = vst.msk [vmem:[#allocation3 + $0xa1] sm:$0x1] %vm342_vm3, %v9075_v2  ;;  %v467_v49 = vmax.f32 %v435_v46, 0.0  ;;  %v468_v50 = vmax.f32 %v436_v47, 0.0 }
  0x2f   : > { %405 = vst.msk [vmem:[#allocation3 + $0xb9] sm:$0x1] %vm342_vm3, %v9075_v2  ;;  %406 = vst.msk [vmem:[#allocation3 + $0xd1] sm:$0x1] %vm342_vm3, %v9075_v2  ;;  %v437_v51 = vld [vmem:[%s9344_s29 + $0xb0] sm:$0xff]  ;;  %v438_v52 = vld [vmem:[%s9344_s29 + $0xb8] sm:$0xff] }
  0x30   : > { %407 = vst.msk [vmem:[#allocation3 + $0xe9] sm:$0x1] %vm342_vm3, %v9075_v2  ;;  %408 = vst.msk [vmem:[#allocation3 + $0x101] sm:$0x1] %vm342_vm3, %v9075_v2  ;;  %v439_v53 = vld [vmem:[%s9344_s29 + $0xc0] sm:$0xff]  ;;  %v469_v54 = vmax.f32 %v437_v51, 0.0 }
  0x31   : > { %409 = vst.msk [vmem:[#allocation3 + $0x119] sm:$0x1] %vm342_vm3, %v9075_v2  ;;  %410 = vst.msk [vmem:[#allocation3 + $0x131] sm:$0x1] %vm342_vm3, %v9075_v2  ;;  %v470_v55 = vmax.f32 %v438_v52, 0.0  ;;  %v440_v56 = vld [vmem:[%s9344_s29 + $0xc8] sm:$0xff] }
  0x32   : > { %411 = vst.msk [vmem:[#allocation3 + $0x149] sm:$0x1] %vm342_vm3, %v9075_v2  ;;  %412 = vst.msk [vmem:[#allocation3 + $0x161] sm:$0x1] %vm342_vm3, %v9075_v2  ;;  %v471_v57 = vmax.f32 %v439_v53, 0.0  ;;  %v441_v58 = vld [vmem:[%s9344_s29 + $0xd0] sm:$0xff] }
  0x33   : > { %413 = vst.msk [vmem:[#allocation3 + $0x179] sm:$0x1] %vm342_vm3, %v9075_v2  ;;  %414 = vst.msk [vmem:[#allocation3 + $0x191] sm:$0x1] %vm342_vm3, %v9075_v2  ;;  %v442_v59 = vld [vmem:[%s9344_s29 + $0xd8] sm:$0xff]  ;;  %v472_v63 = vmax.f32 %v440_v56, 0.0 }
  0x34   : > { %479 = vst.msk [vmem:[#allocation2 + $0x19] sm:$0xff] %vm332_vm1, %v447_v9  ;;  %480 = vst.msk [vmem:[#allocation2 + $0x21] sm:$0xff] %vm332_vm1, %v448_v10  ;;  %v473_v0 = vmax.f32 %v441_v58, 0.0  ;;  %v474_v1 = vmax.f32 %v442_v59, 0.0  ;;  %v872_v6 = vsel %vm658_vm0, %v9206_v3, 0  ;;  %v443_v7 = vld [vmem:[%s9344_s29 + $0xe0] sm:$0xff] }
  0x35   : > { %481 = vst.msk [vmem:[#allocation2 + $0x31] sm:$0xff] %vm332_vm1, %v449_v12  ;;  %482 = vst.msk [vmem:[#allocation2 + $0x39] sm:$0xff] %vm332_vm1, %v450_v14  ;;  %v444_v8 = vld [vmem:[%s9344_s29 + $0xe8] sm:$0xff]  ;;  %v475_v10 = vmax.f32 %v443_v7, 0.0  ;;  %v9414_v3 = vld [vmem:[%s10522_s1 + $0x4] sm:$0x3] }
  0x36   : > { %483 = vst.msk [vmem:[#allocation2 + $0x49] sm:$0xff] %vm332_vm1, %v451_v18  ;;  %484 = vst.msk [vmem:[#allocation2 + $0x51] sm:$0xff] %vm332_vm1, %v452_v19  ;;  %v476_v11 = vmax.f32 %v444_v8, 0.0  ;;  %v512_v51 = vld [vmem:[#allocation2 + $0x8] sm:$0xff]  ;;  %s9015_s26 = sshll.u32 %s9078_s13, 4  ;;  %s9016_s26 = int_to_ptr.vmem [resolvable:$false] %s9015_s26 }
  0x37   : > { %485 = vst.msk [vmem:[#allocation2 + $0x61] sm:$0xff] %vm332_vm1, %v453_v21  ;;  %486 = vst.msk [vmem:[#allocation2 + $0x69] sm:$0xff] %vm332_vm1, %v454_v24  ;;  %s9017_s27 = scalar_lea.vmem %s9016_s26, 256  ;;  %p9018_p0 = scmp.lt.s32.totalorder %s10481_s21, %s9016_s26 }
  0x38   : > { %487 = vst.msk [vmem:[#allocation2 + $0x79] sm:$0xff] %vm332_vm1, %v455_v25  ;;  %488 = vst.msk [vmem:[#allocation2 + $0x81] sm:$0xff] %vm332_vm1, %v456_v26  ;;  %p9019_p1 = scmp.lt.s32.totalorder %s9017_s27, %s9011_s25 }
  0x39   : > { %489 = vst.msk [vmem:[#allocation2 + $0x91] sm:$0xff] %vm332_vm1, %v457_v30  ;;  %490 = vst.msk [vmem:[#allocation2 + $0x99] sm:$0xff] %vm332_vm1, %v458_v31 }
  0x3a   : > { %491 = vst.msk [vmem:[#allocation2 + $0xa9] sm:$0xff] %vm332_vm1, %v459_v33  ;;  %492 = vst.msk [vmem:[#allocation2 + $0xb1] sm:$0xff] %vm332_vm1, %v460_v36  ;;  %p9020_p2 = por %p9019_p1, %p9018_p0 }
  0x3b   : > { %493 = vst.msk [vmem:[#allocation2 + $0xc1] sm:$0xff] %vm332_vm1, %v461_v37  ;;  %494 = vst.msk [vmem:[#allocation2 + $0xc9] sm:$0xff] %vm332_vm1, %v462_v38  ;;  %v562_v60 = vld [vmem:[#allocation2 + $0x19] sm:$0xff]  ;;  %v563_v61 = vld [vmem:[#allocation2 + $0x21] sm:$0xff] }
  0x3c   : > { %495 = vst.msk [vmem:[#allocation2 + $0xd9] sm:$0xff] %vm332_vm1, %v463_v42  ;;  %496 = vst.msk [vmem:[#allocation2 + $0xe1] sm:$0xff] %vm332_vm1, %v464_v43  ;;  %v564_v62 = vld [vmem:[#allocation2 + $0x31] sm:$0xff]  ;;  %v9397_v4 = vpack.c.bf16 %v563_v61, %v562_v60  ;;  %v565_v5 = vld [vmem:[#allocation2 + $0x39] sm:$0xff]  ;;  %v1134_v60 = vsel %vm658_vm0, %v9414_v3, 0  ;;  %p9021_p3 = pnand %p9020_p2, %p9014_p13 }
  0x3d   : > { %497 = vst.msk [vmem:[#allocation2 + $0xf1] sm:$0xff] %vm332_vm1, %v465_v45  ;;  %498 = vst.msk [vmem:[#allocation2 + $0xf9] sm:$0xff] %vm332_vm1, %v466_v48  ;;  %v9406_v9 = vpack.c.bf16 %v565_v5, %v564_v62  ;;  %v566_v12 = vld [vmem:[#allocation2 + $0x49] sm:$0xff]  ;;  %v567_v13 = vld [vmem:[#allocation2 + $0x51] sm:$0xff] }
  0x3e   : > { %499 = vst.msk [vmem:[#allocation2 + $0x109] sm:$0xff] %vm332_vm1, %v467_v49  ;;  %500 = vst.msk [vmem:[#allocation2 + $0x111] sm:$0xff] %vm332_vm1, %v468_v50  ;;  %7552 = vmatmul.mubr.msk.bf16.vlgmr.msra.gmra.mrb[0].mxu0 %vm332_vm1, %v9397_v4  ;;  %v568_v14 = vld [vmem:[#allocation2 + $0x61] sm:$0xff]  ;;  %v569_v15 = vld [vmem:[#allocation2 + $0x69] sm:$0xff]  ;;  %v9424_v16 = vpack.c.bf16 %v567_v13, %v566_v12 }
  0x3f   : > { %501 = vst.msk [vmem:[#allocation2 + $0x121] sm:$0xff] %vm332_vm1, %v469_v54  ;;  %502 = vst.msk [vmem:[#allocation2 + $0x129] sm:$0xff] %vm332_vm1, %v470_v55  ;;  %7555 = vmatprep.mubr.msk.bf16.mxu0 %vm332_vm1, %v9406_v9  ;;  %7584 = vmatpush3.bf16.msra.mxu0 %v872_v6  ;;  %v9426_v17 = vpack.c.bf16 %v569_v15, %v568_v14  ;;  %v570_v18 = vld [vmem:[#allocation2 + $0x79] sm:$0xff]  ;;  %v571_v19 = vld [vmem:[#allocation2 + $0x81] sm:$0xff] }
  0x40   : > { %503 = vst.msk [vmem:[#allocation2 + $0x139] sm:$0xff] %vm332_vm1, %v471_v57  ;;  %504 = vst.msk [vmem:[#allocation2 + $0x141] sm:$0xff] %vm332_vm1, %v472_v63  ;;  %8920 = vmatprep.subr.msk.bf16.mxu0 %vm658_vm0, %v9414_v3  ;;  %v572_v20 = vld [vmem:[#allocation2 + $0x91] sm:$0xff]  ;;  %v573_v21 = vld [vmem:[#allocation2 + $0x99] sm:$0xff]  ;;  %v9432_v22 = vpack.c.bf16 %v571_v19, %v570_v18 }
  0x41   : > { %505 = vst.msk [vmem:[#allocation2 + $0x151] sm:$0xff] %vm332_vm1, %v473_v0  ;;  %506 = vst.msk [vmem:[#allocation2 + $0x159] sm:$0xff] %vm332_vm1, %v474_v1  ;;  %v9434_v23 = vpack.c.bf16 %v573_v21, %v572_v20  ;;  %v574_v24 = vld [vmem:[#allocation2 + $0xa9] sm:$0xff]  ;;  %v575_v25 = vld [vmem:[#allocation2 + $0xb1] sm:$0xff] }
  0x42   : > { %507 = vst.msk [vmem:[#allocation2 + $0x169] sm:$0xff] %vm332_vm1, %v475_v10  ;;  %508 = vst.msk [vmem:[#allocation2 + $0x171] sm:$0xff] %vm332_vm1, %v476_v11  ;;  %v576_v26 = vld [vmem:[#allocation2 + $0xc1] sm:$0xff]  ;;  %v577_v27 = vld [vmem:[#allocation2 + $0xc9] sm:$0xff]  ;;  %v9440_v28 = vpack.c.bf16 %v575_v25, %v574_v24 }
  0x43   : > { %v9442_v29 = vpack.c.bf16 %v577_v27, %v576_v26  ;;  %v578_v30 = vld [vmem:[#allocation2 + $0xd9] sm:$0xff]  ;;  %v579_v31 = vld [vmem:[#allocation2 + $0xe1] sm:$0xff]  ;;  %v515_v56 = vld [vmem:[#allocation2 + $0x30] sm:$0xff] }
  0x44   : > { %v580_v32 = vld [vmem:[#allocation2 + $0xf1] sm:$0xff]  ;;  %v581_v33 = vld [vmem:[#allocation2 + $0xf9] sm:$0xff]  ;;  %v9448_v34 = vpack.c.bf16 %v579_v31, %v578_v30  ;;  %v9486_v61 = vld [vmem:[%s10522_s1 + $0x6] sm:$0x3] }
  0x45   : > { %v9450_v35 = vpack.c.bf16 %v581_v33, %v580_v32  ;;  %v582_v36 = vld [vmem:[#allocation2 + $0x109] sm:$0xff]  ;;  %v583_v37 = vld [vmem:[#allocation2 + $0x111] sm:$0xff]  ;;  %v511_v50 = vld [vmem:[#allocation2] sm:$0xff] }
  0x46   : > { %7556 = vmatmul.mubr.msk.bf16.gmra.mrb[4].mxu0 %vm332_vm1, %v9424_v16  ;;  %v584_v38 = vld [vmem:[#allocation2 + $0x121] sm:$0xff]  ;;  %v585_v39 = vld [vmem:[#allocation2 + $0x129] sm:$0xff]  ;;  %v9456_v40 = vpack.c.bf16 %v583_v37, %v582_v36  ;;  %v543_v53 = vpack.c.bf16 %v512_v51, %v511_v50  ;;  %v513_v54 = vld [vmem:[#allocation2 + $0x18] sm:$0xff] }
  0x47   : > { %7559 = vmatprep.mubr.msk.bf16.mxu0 %vm332_vm1, %v9426_v17  ;;  %v9458_v41 = vpack.c.bf16 %v585_v39, %v584_v38  ;;  %v586_v42 = vld [vmem:[#allocation2 + $0x139] sm:$0xff]  ;;  %v587_v43 = vld [vmem:[#allocation2 + $0x141] sm:$0xff]  ;;  %v518_v63 = vld [vmem:[#allocation2 + $0x50] sm:$0xff] }
  0x48   : > { %v588_v44 = vld [vmem:[#allocation2 + $0x151] sm:$0xff]  ;;  %v589_v45 = vld [vmem:[#allocation2 + $0x159] sm:$0xff]  ;;  %v9464_v46 = vpack.c.bf16 %v587_v43, %v586_v42  ;;  %v517_v62 = vld [vmem:[#allocation2 + $0x48] sm:$0xff] }
  0x49   : > { %v9466_v47 = vpack.c.bf16 %v589_v45, %v588_v44  ;;  %v590_v48 = vld [vmem:[#allocation2 + $0x169] sm:$0xff]  ;;  %v591_v49 = vld [vmem:[#allocation2 + $0x171] sm:$0xff]  ;;  %v514_v55 = vld [vmem:[#allocation2 + $0x20] sm:$0xff]  ;;  %v9494_v5 = vpack.c.bf16 %v518_v63, %v517_v62 }
  0x4a   : > { %v9472_v52 = vpack.c.bf16 %v591_v49, %v590_v48  ;;  %v516_v57 = vld [vmem:[#allocation2 + $0x38] sm:$0xff]  ;;  %v9477_v58 = vpack.c.bf16 %v514_v55, %v513_v54  ;;  %v519_v0 = vld [vmem:[#allocation2 + $0x60] sm:$0xff]  ;;  %v520_v1 = vld [vmem:[#allocation2 + $0x68] sm:$0xff] }
  0x4b   : > { %v9479_v59 = vpack.c.bf16 %v516_v57, %v515_v56  ;;  %v9496_v6 = vpack.c.bf16 %v520_v1, %v519_v0  ;;  %v521_v7 = vld [vmem:[#allocation2 + $0x78] sm:$0xff]  ;;  %v522_v8 = vld [vmem:[#allocation2 + $0x80] sm:$0xff]  ;;  %v523_v10 = vld [vmem:[#allocation2 + $0x90] sm:$0xff] }
  0x4c   : > { %v524_v11 = vld [vmem:[#allocation2 + $0x98] sm:$0xff]  ;;  %v9502_v3 = vpack.c.bf16 %v522_v8, %v521_v7  ;;  %v525_v13 = vld [vmem:[#allocation2 + $0xa8] sm:$0xff]  ;;  %v526_v14 = vld [vmem:[#allocation2 + $0xb0] sm:$0xff] }
  0x4d   : > { %v9504_v12 = vpack.c.bf16 %v524_v11, %v523_v10  ;;  %v527_v15 = vld [vmem:[#allocation2 + $0xc0] sm:$0xff]  ;;  %v528_v18 = vld [vmem:[#allocation2 + $0xc8] sm:$0xff]  ;;  %v9510_v19 = vpack.c.bf16 %v526_v14, %v525_v13  ;;  %v529_v21 = vld [vmem:[#allocation2 + $0xd8] sm:$0xff]  ;;  %v1428_v11 = vsel %vm658_vm0, %v9486_v61, 0 }
  0x4e   : > { %7560 = vmatmul.mubr.msk.bf16.gmra.mrb[8].mxu0 %vm332_vm1, %v9432_v22  ;;  %v9512_v20 = vpack.c.bf16 %v528_v18, %v527_v15  ;;  %v530_v24 = vld [vmem:[#allocation2 + $0xe0] sm:$0xff]  ;;  %v531_v25 = vld [vmem:[#allocation2 + $0xf0] sm:$0xff]  ;;  %v532_v26 = vld [vmem:[#allocation2 + $0xf8] sm:$0xff] }
  0x4f   : > { %7563 = vmatprep.mubr.msk.bf16.mxu0 %vm332_vm1, %v9434_v23  ;;  %v9518_v27 = vpack.c.bf16 %v530_v24, %v529_v21  ;;  %v9520_v30 = vpack.c.bf16 %v532_v26, %v531_v25  ;;  %v533_v31 = vld [vmem:[#allocation2 + $0x108] sm:$0xff]  ;;  %v534_v32 = vld [vmem:[#allocation2 + $0x110] sm:$0xff]  ;;  %v535_v33 = vld [vmem:[#allocation2 + $0x120] sm:$0xff] }
  0x50   : > { %v536_v36 = vld [vmem:[#allocation2 + $0x128] sm:$0xff]  ;;  %v9526_v37 = vpack.c.bf16 %v534_v32, %v533_v31  ;;  %v537_v39 = vld [vmem:[#allocation2 + $0x138] sm:$0xff]  ;;  %v538_v42 = vld [vmem:[#allocation2 + $0x140] sm:$0xff] }
  0x51   : > { %v9528_v38 = vpack.c.bf16 %v536_v36, %v535_v33  ;;  %v539_v43 = vld [vmem:[#allocation2 + $0x150] sm:$0xff]  ;;  %v540_v44 = vld [vmem:[#allocation2 + $0x158] sm:$0xff]  ;;  %v9536_v49 = vpack.c.bf16 %v538_v42, %v537_v39  ;;  %v541_v54 = vld [vmem:[#allocation2 + $0x168] sm:$0xff] }
  0x52   : > { %v445_v45 = vld [vmem:[%s9344_s29 + $0xf0] sm:$0xff]  ;;  %v446_v48 = vld [vmem:[%s9344_s29 + $0xf8] sm:$0xff]  ;;  %v1035_v56 = vld [vmem:[#allocation2 + $0x2] sm:$0xff] }
  0x53   : > { %v477_v50 = vmax.f32 %v445_v45, 0.0  ;;  %v478_v51 = vmax.f32 %v446_v48, 0.0  ;;  %v542_v55 = vld [vmem:[#allocation2 + $0x170] sm:$0xff]  ;;  %v1037_v63 = vld [vmem:[#allocation2 + $0x1a] sm:$0xff]  ;;  %v1038_v0 = vld [vmem:[#allocation2 + $0x22] sm:$0xff] }
  0x54   : > { %v1036_v57 = vld [vmem:[#allocation2 + $0xa] sm:$0xff]  ;;  %v1039_v1 = vld [vmem:[#allocation2 + $0x32] sm:$0xff]  ;;  %v1040_v7 = vld [vmem:[#allocation2 + $0x3a] sm:$0xff]  ;;  %v9551_v8 = vpack.c.bf16 %v1038_v0, %v1037_v63 }
  0x55   : > { %509 = vst.msk [vmem:[#allocation2 + $0x181] sm:$0xff] %vm332_vm1, %v477_v50  ;;  %510 = vst.msk [vmem:[#allocation2 + $0x189] sm:$0xff] %vm332_vm1, %v478_v51  ;;  %v1067_v62 = vpack.c.bf16 %v1036_v57, %v1035_v56  ;;  %v9553_v10 = vpack.c.bf16 %v1040_v7, %v1039_v1  ;;  %v6915_v13 = vld [vmem:[%s10522_s1 + $0x8] sm:$0x3]  ;;  %v1041_v14 = vld [vmem:[#allocation2 + $0x4a] sm:$0xff] }
  0x56   : > { %7564 = vmatmul.mubr.msk.bf16.gmra.mrb[12].mxu0 %vm332_vm1, %v9440_v28  ;;  %v1042_v15 = vld [vmem:[#allocation2 + $0x52] sm:$0xff]  ;;  %v1043_v18 = vld [vmem:[#allocation2 + $0x62] sm:$0xff]  ;;  %v1044_v21 = vld [vmem:[#allocation2 + $0x6a] sm:$0xff] }
  0x57   : > { %7567 = vmatprep.mubr.msk.bf16.mxu0 %vm332_vm1, %v9442_v29  ;;  %v9565_v24 = vpack.c.bf16 %v1042_v15, %v1041_v14  ;;  %v1045_v25 = vld [vmem:[#allocation2 + $0x7a] sm:$0xff]  ;;  %v1046_v26 = vld [vmem:[#allocation2 + $0x82] sm:$0xff]  ;;  %v1047_v31 = vld [vmem:[#allocation2 + $0x92] sm:$0xff] }
  0x58   : > { %v1048_v32 = vld [vmem:[#allocation2 + $0x9a] sm:$0xff]  ;;  %v9573_v33 = vpack.c.bf16 %v1046_v26, %v1045_v25  ;;  %v1049_v39 = vld [vmem:[#allocation2 + $0xaa] sm:$0xff]  ;;  %v1050_v42 = vld [vmem:[#allocation2 + $0xb2] sm:$0xff] }
  0x59   : > { %v9575_v36 = vpack.c.bf16 %v1048_v32, %v1047_v31  ;;  %v9581_v45 = vpack.c.bf16 %v1050_v42, %v1049_v39  ;;  %v1053_v50 = vld [vmem:[#allocation2 + $0xda] sm:$0xff]  ;;  %v1054_v51 = vld [vmem:[#allocation2 + $0xe2] sm:$0xff]  ;;  %v1058_v63 = vld [vmem:[#allocation2 + $0x112] sm:$0xff]  ;;  %v1722_v42 = vsel %vm658_vm0, %v6915_v13, 0 }
  0x5a   : > { %v9589_v56 = vpack.c.bf16 %v1054_v51, %v1053_v50  ;;  %v1059_v0 = vld [vmem:[#allocation2 + $0x122] sm:$0xff]  ;;  %v1060_v1 = vld [vmem:[#allocation2 + $0x12a] sm:$0xff]  ;;  %v1061_v14 = vld [vmem:[#allocation2 + $0x13a] sm:$0xff] }
  0x5b   : > { %v1062_v15 = vld [vmem:[#allocation2 + $0x142] sm:$0xff]  ;;  %v1065_v31 = vld [vmem:[#allocation2 + $0x16a] sm:$0xff]  ;;  %v1066_v32 = vld [vmem:[#allocation2 + $0x172] sm:$0xff] }
  0x5c   : > { %v9605_v25 = vpack.c.bf16 %v1062_v15, %v1061_v14  ;;  %v9613_v39 = vpack.c.bf16 %v1066_v32, %v1065_v31  ;;  %v6949_v51 = vld [vmem:[%s10522_s1 + $0xc] sm:$0x3]  ;;  %v2521_v14 = vld [vmem:[#allocation2 + $0xe1] sm:$0xff]  ;;  %v2522_v15 = vld [vmem:[#allocation2 + $0xf1] sm:$0xff] }
  0x5d   : > { %v2524_v32 = vld [vmem:[#allocation2 + $0x109] sm:$0xff]  ;;  %vm10455_vm7 = vmpackc.low %vm6668_vm6, %vm6668_vm6 }
  0x5e   : > { %7568 = vmatmul.mubr.msk.bf16.gmra.mrb[16].mxu0 %vm332_vm1, %v9448_v34 }
  0x5f   : > { %7571 = vmatprep.mubr.msk.bf16.mxu0 %vm332_vm1, %v9450_v35 }
  0x66   : > { %7572 = vmatmul.mubr.msk.bf16.gmra.mrb[20].mxu0 %vm332_vm1, %v9456_v40 }
  0x67   : > { %7575 = vmatprep.mubr.msk.bf16.mxu0 %vm332_vm1, %v9458_v41 }
  0x6e   : > { %7576 = vmatmul.mubr.msk.bf16.gmra.mrb[24].mxu0 %vm332_vm1, %v9464_v46 }
  0x6f   : > { %7579 = vmatprep.mubr.msk.bf16.mxu0 %vm332_vm1, %v9466_v47 }
  0x76   : > { %7580 = vmatmul.mubr.msk.bf16.gmra.mrb[28].mxu0 %vm332_vm1, %v9472_v52 }
  0x77   : > { %7585 = vmatprep.mubr.msk.bf16.mxu0 %vm332_vm1, %v543_v53  ;;  %v9538_v53 = vpack.c.bf16 %v540_v44, %v539_v43  ;;  %v1051_v43 = vld [vmem:[#allocation2 + $0xc2] sm:$0xff]  ;;  %v1052_v44 = vld [vmem:[#allocation2 + $0xca] sm:$0xff] }
  0x78   : > { %v9583_v48 = vpack.c.bf16 %v1052_v44, %v1051_v43  ;;  %v6932_v43 = vld [vmem:[%s10522_s1 + $0xa] sm:$0x3] }
  0x79   : > { %v2016_v50 = vsel %vm658_vm0, %v6932_v43, 0 }
  0x7e   : > { %7586 = vmatmul.mubr.msk.bf16.vlgmr.msra.gmra.mrb[0].mxu0 %vm332_vm1, %v9477_v58 }
  0x7f   : > { %7589 = vmatprep.mubr.msk.bf16.mxu0 %vm332_vm1, %v9479_v59  ;;  %7618 = vmatpush3.bf16.msra.mxu0 %v1134_v60  ;;  %v9546_v60 = vpack.c.bf16 %v542_v55, %v541_v54  ;;  %v1055_v54 = vld [vmem:[#allocation2 + $0xf2] sm:$0xff]  ;;  %v1056_v55 = vld [vmem:[#allocation2 + $0xfa] sm:$0xff] }
  0x80   : > { %8921 = vmatprep.subr.msk.bf16.mxu0 %vm658_vm0, %v9486_v61  ;;  %v9567_v61 = vpack.c.bf16 %v1044_v21, %v1043_v18  ;;  %v9591_v57 = vpack.c.bf16 %v1056_v55, %v1055_v54  ;;  %v1063_v18 = vld [vmem:[#allocation2 + $0x152] sm:$0xff]  ;;  %v1064_v21 = vld [vmem:[#allocation2 + $0x15a] sm:$0xff] }
  0x81   : > { %v9607_v26 = vpack.c.bf16 %v1064_v21, %v1063_v18  ;;  %v2517_v54 = vld [vmem:[#allocation2 + $0xb1] sm:$0xff]  ;;  %v2518_v55 = vld [vmem:[#allocation2 + $0xc1] sm:$0xff]  ;;  %v2523_v18 = vld [vmem:[#allocation2 + $0xf9] sm:$0xff] }
  0x82   : > { %v2546_v31 = vpack.c.bf16 %v2523_v18, %v2522_v15 }
  0x86   : > { %7590 = vmatmul.mubr.msk.bf16.gmra.mrb[4].mxu0 %vm332_vm1, %v9494_v5 }
  0x87   : > { %7593 = vmatprep.mubr.msk.bf16.mxu0 %vm332_vm1, %v9496_v6 }
  0x8e   : > { %7594 = vmatmul.mubr.msk.bf16.gmra.mrb[8].mxu0 %vm332_vm1, %v9502_v3 }
  0x8f   : > { %7597 = vmatprep.mubr.msk.bf16.mxu0 %vm332_vm1, %v9504_v12 }
  0x96   : > { %7598 = vmatmul.mubr.msk.bf16.gmra.mrb[12].mxu0 %vm332_vm1, %v9510_v19 }
  0x97   : > { %7601 = vmatprep.mubr.msk.bf16.mxu0 %vm332_vm1, %v9512_v20 }
  0x9e   : > { %7602 = vmatmul.mubr.msk.bf16.gmra.mrb[16].mxu0 %vm332_vm1, %v9518_v27 }
  0x9f   : > { %7605 = vmatprep.mubr.msk.bf16.mxu0 %vm332_vm1, %v9520_v30 }
  0xa6   : > { %7606 = vmatmul.mubr.msk.bf16.gmra.mrb[20].mxu0 %vm332_vm1, %v9526_v37 }
  0xa7   : > { %7609 = vmatprep.mubr.msk.bf16.mxu0 %vm332_vm1, %v9528_v38 }
  0xae   : > { %7610 = vmatmul.mubr.msk.bf16.gmra.mrb[24].mxu0 %vm332_vm1, %v9536_v49 }
  0xaf   : > { %7613 = vmatprep.mubr.msk.bf16.mxu0 %vm332_vm1, %v9538_v53 }
  0xb6   : > { %7614 = vmatmul.mubr.msk.bf16.gmra.mrb[28].mxu0 %vm332_vm1, %v9546_v60 }
  0xb7   : > { %7619 = vmatprep.mubr.msk.bf16.mxu0 %vm332_vm1, %v1067_v62  ;;  %v1057_v62 = vld [vmem:[#allocation2 + $0x10a] sm:$0xff] }
  0xb8   : > { %v9597_v7 = vpack.c.bf16 %v1058_v63, %v1057_v62  ;;  %v2519_v62 = vld [vmem:[#allocation2 + $0xc9] sm:$0xff] }
  0xbe   : > { %7620 = vmatmul.mubr.msk.bf16.vlgmr.msra.gmra.mrb[0].mxu0 %vm332_vm1, %v9551_v8 }
  0xbf   : > { %7623 = vmatprep.mubr.msk.bf16.mxu0 %vm332_vm1, %v9553_v10  ;;  %7652 = vmatpush3.bf16.msra.mxu0 %v1428_v11  ;;  %v9599_v11 = vpack.c.bf16 %v1060_v1, %v1059_v0  ;;  %v2544_v0 = vpack.c.bf16 %v2519_v62, %v2518_v55  ;;  %v2520_v1 = vld [vmem:[#allocation2 + $0xd9] sm:$0xff] }
  0xc0   : > { %8922 = vmatprep.subr.msk.bf16.mxu0 %vm658_vm0, %v6915_v13  ;;  %v1360_v13 = vld [vmem:[#allocation2 + $0x188] sm:$0xff]  ;;  %v2545_v21 = vpack.c.bf16 %v2521_v14, %v2520_v1 }
  0xc6   : > { %7624 = vmatmul.mubr.msk.bf16.gmra.mrb[4].mxu0 %vm332_vm1, %v9565_v24 }
  0xc7   : > { %7627 = vmatprep.mubr.msk.bf16.mxu0 %vm332_vm1, %v9567_v61 }
  0xce   : > { %7628 = vmatmul.mubr.msk.bf16.gmra.mrb[8].mxu0 %vm332_vm1, %v9573_v33 }
  0xcf   : > { %7631 = vmatprep.mubr.msk.bf16.mxu0 %vm332_vm1, %v9575_v36 }
  0xd6   : > { %7632 = vmatmul.mubr.msk.bf16.gmra.mrb[12].mxu0 %vm332_vm1, %v9581_v45 }
  0xd7   : > { %7635 = vmatprep.mubr.msk.bf16.mxu0 %vm332_vm1, %v9583_v48 }
  0xde   : > { %7636 = vmatmul.mubr.msk.bf16.gmra.mrb[16].mxu0 %vm332_vm1, %v9589_v56 }
  0xdf   : > { %7639 = vmatprep.mubr.msk.bf16.mxu0 %vm332_vm1, %v9591_v57 }
  0xe6   : > { %7640 = vmatmul.mubr.msk.bf16.gmra.mrb[20].mxu0 %vm332_vm1, %v9597_v7 }
  0xe7   : > { %7643 = vmatprep.mubr.msk.bf16.mxu0 %vm332_vm1, %v9599_v11 }
  0xee   : > { %7644 = vmatmul.mubr.msk.bf16.gmra.mrb[24].mxu0 %vm332_vm1, %v9605_v25 }
  0xef   : > { %7647 = vmatprep.mubr.msk.bf16.mxu0 %vm332_vm1, %v9607_v26 }
  0xf6   : > { %7648 = vmatmul.mubr.msk.bf16.gmra.mrb[28].mxu0 %vm332_vm1, %v9613_v39 }
  0xf7   : > { %7653 = vmatprep.mubr.msk.bf16.mxu0 %vm332_vm1, %v9477_v58  ;;  %v1359_v58 = vld [vmem:[#allocation2 + $0x180] sm:$0xff] }
  0xf8   : > { %v9652_v44 = vpack.c.bf16 %v1360_v13, %v1359_v58  ;;  %v2527_v58 = vld [vmem:[#allocation2 + $0x129] sm:$0xff] }
  0xfe   : > { %7654 = vmatmul.mubr.msk.bf16.vlgmr.msra.gmra.mrb[0].mxu0 %vm332_vm1, %v9479_v59 }
  0xff   : > { %7657 = vmatprep.mubr.msk.bf16.mxu0 %vm332_vm1, %v9494_v5  ;;  %7686 = vmatpush3.bf16.msra.mxu0 %v1722_v42  ;;  %v2525_v42 = vld [vmem:[#allocation2 + $0x111] sm:$0xff] }
 0x100   : > { %8923 = vmatprep.subr.msk.bf16.mxu0 %vm658_vm0, %v6932_v43  ;;  %v2526_v43 = vld [vmem:[#allocation2 + $0x121] sm:$0xff]  ;;  %v2547_v13 = vpack.c.bf16 %v2525_v42, %v2524_v32 }
 0x106   : > { %7658 = vmatmul.mubr.msk.bf16.gmra.mrb[4].mxu0 %vm332_vm1, %v9496_v6 }
 0x107   : > { %7661 = vmatprep.mubr.msk.bf16.mxu0 %vm332_vm1, %v9502_v3 }
 0x10e   : > { %7662 = vmatmul.mubr.msk.bf16.gmra.mrb[8].mxu0 %vm332_vm1, %v9504_v12 }
 0x10f   : > { %7665 = vmatprep.mubr.msk.bf16.mxu0 %vm332_vm1, %v9510_v19 }
 0x116   : > { %7666 = vmatmul.mubr.msk.bf16.gmra.mrb[12].mxu0 %vm332_vm1, %v9512_v20 }
 0x117   : > { %7669 = vmatprep.mubr.msk.bf16.mxu0 %vm332_vm1, %v9518_v27 }
 0x11e   : > { %7670 = vmatmul.mubr.msk.bf16.gmra.mrb[16].mxu0 %vm332_vm1, %v9520_v30 }
 0x11f   : > { %7673 = vmatprep.mubr.msk.bf16.mxu0 %vm332_vm1, %v9526_v37 }
 0x126   : > { %7674 = vmatmul.mubr.msk.bf16.gmra.mrb[20].mxu0 %vm332_vm1, %v9528_v38 }
 0x127   : > { %7677 = vmatprep.mubr.msk.bf16.mxu0 %vm332_vm1, %v9536_v49 }
 0x12e   : > { %7678 = vmatmul.mubr.msk.bf16.gmra.mrb[24].mxu0 %vm332_vm1, %v9538_v53 }
 0x12f   : > { %7681 = vmatprep.mubr.msk.bf16.mxu0 %vm332_vm1, %v9546_v60 }
 0x136   : > { %7682 = vmatmul.mubr.msk.bf16.gmra.mrb[28].mxu0 %vm332_vm1, %v9652_v44 }
 0x137   : > { %7687 = vmatprep.mubr.msk.bf16.mxu0 %vm332_vm1, %v9397_v4  ;;  %v1653_v4 = vld [vmem:[#allocation2 + $0x181] sm:$0xff] }
 0x13e   : > { %7688 = vmatmul.mubr.msk.bf16.vlgmr.msra.gmra.mrb[0].mxu0 %vm332_vm1, %v9406_v9  ;;  %v1654_v9 = vld [vmem:[#allocation2 + $0x189] sm:$0xff] }
 0x13f   : > { %7691 = vmatprep.mubr.msk.bf16.mxu0 %vm332_vm1, %v9424_v16  ;;  %7720 = vmatpush3.bf16.msra.mxu0 %v2016_v50  ;;  %v9691_v16 = vpack.c.bf16 %v1654_v9, %v1653_v4  ;;  %v2528_v50 = vld [vmem:[#allocation2 + $0x139] sm:$0xff]  ;;  %v2530_v4 = vld [vmem:[#allocation2 + $0x151] sm:$0xff] }
 0x140   : > { %8924 = vmatprep.subr.msk.bf16.mxu0 %vm658_vm0, %v6949_v51  ;;  %v2531_v9 = vld [vmem:[#allocation2 + $0x159] sm:$0xff] }
 0x146   : > { %7692 = vmatmul.mubr.msk.bf16.gmra.mrb[4].mxu0 %vm332_vm1, %v9426_v17  ;;  %v2311_v17 = vsel %vm658_vm0, %v6949_v51, 0  ;;  %v2529_v51 = vld [vmem:[#allocation2 + $0x141] sm:$0xff] }
 0x147   : > { %7695 = vmatprep.mubr.msk.bf16.mxu0 %vm332_vm1, %v9432_v22  ;;  %v6966_v22 = vld [vmem:[%s10522_s1 + $0xe] sm:$0x3] }
 0x14e   : > { %7696 = vmatmul.mubr.msk.bf16.gmra.mrb[8].mxu0 %vm332_vm1, %v9434_v23  ;;  %v1947_v23 = vld [vmem:[#allocation2 + $0x182] sm:$0xff] }
 0x14f   : > { %7699 = vmatprep.mubr.msk.bf16.mxu0 %vm332_vm1, %v9440_v28  ;;  %v1948_v28 = vld [vmem:[#allocation2 + $0x18a] sm:$0xff] }
 0x156   : > { %7700 = vmatmul.mubr.msk.bf16.gmra.mrb[12].mxu0 %vm332_vm1, %v9442_v29  ;;  %v9730_v29 = vpack.c.bf16 %v1948_v28, %v1947_v23  ;;  %v2532_v23 = vld [vmem:[#allocation2 + $0x169] sm:$0xff]  ;;  %v2533_v28 = vld [vmem:[#allocation2 + $0x171] sm:$0xff] }
 0x157   : > { %7703 = vmatprep.mubr.msk.bf16.mxu0 %vm332_vm1, %v9448_v34  ;;  %v2605_v34 = vsel %vm658_vm0, %v6966_v22, 0 }
 0x15e   : > { %7704 = vmatmul.mubr.msk.bf16.gmra.mrb[16].mxu0 %vm332_vm1, %v9450_v35  ;;  %v6983_v35 = vld [vmem:[%s10522_s1 + $0x10] sm:$0x3] }
 0x15f   : > { %7707 = vmatprep.mubr.msk.bf16.mxu0 %vm332_vm1, %v9456_v40  ;;  %v2242_v40 = vld [vmem:[#allocation2 + $0x198] sm:$0xff] }
 0x166   : > { %7708 = vmatmul.mubr.msk.bf16.gmra.mrb[20].mxu0 %vm332_vm1, %v9458_v41  ;;  %v2243_v41 = vld [vmem:[#allocation2 + $0x1a0] sm:$0xff] }
 0x167   : > { %7711 = vmatprep.mubr.msk.bf16.mxu0 %vm332_vm1, %v9464_v46  ;;  %v2506_v46 = vld [vmem:[#allocation2 + $0x31] sm:$0xff] }
 0x16e   : > { %7712 = vmatmul.mubr.msk.bf16.gmra.mrb[24].mxu0 %vm332_vm1, %v9466_v47  ;;  %v2507_v47 = vld [vmem:[#allocation2 + $0x39] sm:$0xff] }
 0x16f   : > { %7715 = vmatprep.mubr.msk.bf16.mxu0 %vm332_vm1, %v9472_v52  ;;  %v2259_v52 = vpack.c.bf16 %v2243_v41, %v2242_v40  ;;  %v2537_v40 = vld [vmem:[#allocation2 + $0x1a1] sm:$0xff] }
 0x176   : > { %7716 = vmatmul.mubr.msk.bf16.gmra.mrb[28].mxu0 %vm332_vm1, %v9691_v16 }
 0x177   : > { %7721 = vmatprep.mubr.msk.bf16.mxu0 %vm332_vm1, %v9551_v8  ;;  %v2516_v8 = vld [vmem:[#allocation2 + $0xa9] sm:$0xff] }
 0x178   : > { %v2543_v63 = vpack.c.bf16 %v2517_v54, %v2516_v8 }
 0x17e   : > { %7722 = vmatmul.mubr.msk.bf16.vlgmr.msra.gmra.mrb[0].mxu0 %vm332_vm1, %v9553_v10 }
 0x17f   : > { %7725 = vmatprep.mubr.msk.bf16.mxu0 %vm332_vm1, %v9565_v24  ;;  %7754 = vmatpush3.bf16.msra.mxu0 %v2311_v17  ;;  %v2549_v17 = vpack.c.bf16 %v2529_v51, %v2528_v50 }
 0x180   : > { %8925 = vmatprep.subr.msk.bf16.mxu0 %vm658_vm0, %v6966_v22  ;;  %v2550_v22 = vpack.c.bf16 %v2531_v9, %v2530_v4 }
 0x186   : > { %7726 = vmatmul.mubr.msk.bf16.gmra.mrb[4].mxu0 %vm332_vm1, %v9567_v61 }
 0x187   : > { %7729 = vmatprep.mubr.msk.bf16.mxu0 %vm332_vm1, %v9573_v33 }
 0x18e   : > { %7730 = vmatmul.mubr.msk.bf16.gmra.mrb[8].mxu0 %vm332_vm1, %v9575_v36 }
 0x18f   : > { %7733 = vmatprep.mubr.msk.bf16.mxu0 %vm332_vm1, %v9581_v45 }
 0x196   : > { %7734 = vmatmul.mubr.msk.bf16.gmra.mrb[12].mxu0 %vm332_vm1, %v9583_v48 }
 0x197   : > { %7737 = vmatprep.mubr.msk.bf16.mxu0 %vm332_vm1, %v9589_v56 }
 0x19e   : > { %7738 = vmatmul.mubr.msk.bf16.gmra.mrb[16].mxu0 %vm332_vm1, %v9591_v57 }
 0x19f   : > { %7741 = vmatprep.mubr.msk.bf16.mxu0 %vm332_vm1, %v9597_v7 }
 0x1a6   : > { %7742 = vmatmul.mubr.msk.bf16.gmra.mrb[20].mxu0 %vm332_vm1, %v9599_v11 }
 0x1a7   : > { %7745 = vmatprep.mubr.msk.bf16.mxu0 %vm332_vm1, %v9605_v25 }
 0x1ae   : > { %7746 = vmatmul.mubr.msk.bf16.gmra.mrb[24].mxu0 %vm332_vm1, %v9607_v26 }
 0x1af   : > { %7749 = vmatprep.mubr.msk.bf16.mxu0 %vm332_vm1, %v9613_v39 }
 0x1b6   : > { %7750 = vmatmul.mubr.msk.bf16.gmra.mrb[28].mxu0 %vm332_vm1, %v9730_v29 }
 0x1b7   : > { %7755 = vmatprep.mubr.msk.bf16.mxu0 %vm332_vm1, %v9479_v59  ;;  %v2538_v59 = vpack.c.bf16 %v2507_v47, %v2506_v46 }
 0x1be   : > { %7756 = vmatmul.mubr.msk.bf16.vlgmr.msra.gmra.mrb[0].mxu0 %vm332_vm1, %v9494_v5  ;;  %v2508_v5 = vld [vmem:[#allocation2 + $0x49] sm:$0xff] }
 0x1bf   : > { %7759 = vmatprep.mubr.msk.bf16.mxu0 %vm332_vm1, %v9496_v6  ;;  %7788 = vmatpush3.bf16.msra.mxu0 %v2605_v34  ;;  %v2509_v6 = vld [vmem:[#allocation2 + $0x51] sm:$0xff]  ;;  %v2551_v34 = vpack.c.bf16 %v2533_v28, %v2532_v23 }
 0x1c0   : > { %8926 = vmatprep.subr.msk.bf16.mxu0 %vm658_vm0, %v6983_v35 }
 0x1c6   : > { %7760 = vmatmul.mubr.msk.bf16.gmra.mrb[4].mxu0 %vm332_vm1, %v9502_v3  ;;  %v2510_v3 = vld [vmem:[#allocation2 + $0x61] sm:$0xff] }
 0x1c7   : > { %7763 = vmatprep.mubr.msk.bf16.mxu0 %vm332_vm1, %v9504_v12  ;;  %v2511_v12 = vld [vmem:[#allocation2 + $0x69] sm:$0xff] }
 0x1ce   : > { %7764 = vmatmul.mubr.msk.bf16.gmra.mrb[8].mxu0 %vm332_vm1, %v9510_v19  ;;  %v2539_v19 = vpack.c.bf16 %v2509_v6, %v2508_v5 }
 0x1cf   : > { %7767 = vmatprep.mubr.msk.bf16.mxu0 %vm332_vm1, %v9512_v20  ;;  %v2540_v20 = vpack.c.bf16 %v2511_v12, %v2510_v3 }
 0x1d6   : > { %7768 = vmatmul.mubr.msk.bf16.gmra.mrb[12].mxu0 %vm332_vm1, %v9518_v27  ;;  %v2899_v27 = vsel %vm658_vm0, %v6983_v35, 0  ;;  %v2536_v35 = vld [vmem:[#allocation2 + $0x199] sm:$0xff] }
 0x1d7   : > { %7771 = vmatprep.mubr.msk.bf16.mxu0 %vm332_vm1, %v9520_v30  ;;  %v2512_v30 = vld [vmem:[#allocation2 + $0x79] sm:$0xff]  ;;  %v2553_v41 = vpack.c.bf16 %v2537_v40, %v2536_v35 }
 0x1de   : > { %7772 = vmatmul.mubr.msk.bf16.gmra.mrb[16].mxu0 %vm332_vm1, %v9526_v37  ;;  %v2513_v37 = vld [vmem:[#allocation2 + $0x81] sm:$0xff] }
 0x1df   : > { %7775 = vmatprep.mubr.msk.bf16.mxu0 %vm332_vm1, %v9528_v38  ;;  %v2514_v38 = vld [vmem:[#allocation2 + $0x91] sm:$0xff] }
 0x1e6   : > { %7776 = vmatmul.mubr.msk.bf16.gmra.mrb[20].mxu0 %vm332_vm1, %v9536_v49  ;;  %v2515_v49 = vld [vmem:[#allocation2 + $0x99] sm:$0xff] }
 0x1e7   : > { %7779 = vmatprep.mubr.msk.bf16.mxu0 %vm332_vm1, %v9538_v53  ;;  %v2541_v53 = vpack.c.bf16 %v2513_v37, %v2512_v30 }
 0x1ee   : > { %7780 = vmatmul.mubr.msk.bf16.gmra.mrb[24].mxu0 %vm332_vm1, %v9546_v60  ;;  %v2542_v60 = vpack.c.bf16 %v2515_v49, %v2514_v38 }
 0x1ef   : > { %7783 = vmatprep.mubr.msk.bf16.mxu0 %vm332_vm1, %v9652_v44  ;;  %v2548_v44 = vpack.c.bf16 %v2527_v58, %v2526_v43 }
 0x1f6   : > { %7784 = vmatmul.mubr.msk.bf16.gmra.mrb[28].mxu0 %vm332_vm1, %v2259_v52 }
 0x1f7   : > { %7789 = vmatprep.mubr.msk.bf16.mxu0 %vm332_vm1, %v2538_v59 }
 0x1fe   : > { %7790 = vmatmul.mubr.msk.bf16.vlgmr.msra.gmra.mrb[0].mxu0 %vm332_vm1, %v2539_v19 }
 0x1ff   : > { %7793 = vmatprep.mubr.msk.bf16.mxu0 %vm332_vm1, %v2540_v20  ;;  %7822 = vmatpush3.bf16.msra.mxu0 %v2899_v27 }
 0x206   : > { %7794 = vmatmul.mubr.msk.bf16.gmra.mrb[4].mxu0 %vm332_vm1, %v2541_v53 }
 0x207   : > { %7797 = vmatprep.mubr.msk.bf16.mxu0 %vm332_vm1, %v2542_v60 }
 0x20e   : > { %7798 = vmatmul.mubr.msk.bf16.gmra.mrb[8].mxu0 %vm332_vm1, %v2543_v63 }
 0x20f   : > { %7801 = vmatprep.mubr.msk.bf16.mxu0 %vm332_vm1, %v2544_v0 }
 0x216   : > { %7802 = vmatmul.mubr.msk.bf16.gmra.mrb[12].mxu0 %vm332_vm1, %v2545_v21 }
 0x217   : > { %7805 = vmatprep.mubr.msk.bf16.mxu0 %vm332_vm1, %v2546_v31  ;;  %v9859_v31 = vld [vmem:[%s10524_s3 + $0x4] sm:$0x3] }
 0x21e   : > { %7806 = vmatmul.mubr.msk.bf16.gmra.mrb[16].mxu0 %vm332_vm1, %v2547_v13 }
 0x21f   : > { %7809 = vmatprep.mubr.msk.bf16.mxu0 %vm332_vm1, %v2548_v44 }
 0x226   : > { %7810 = vmatmul.mubr.msk.bf16.gmra.mrb[20].mxu0 %vm332_vm1, %v2549_v17 }
 0x227   : > { %7813 = vmatprep.mubr.msk.bf16.mxu0 %vm332_vm1, %v2550_v22 }
 0x22e   : > { %7814 = vmatmul.mubr.msk.bf16.gmra.mrb[24].mxu0 %vm332_vm1, %v2551_v34 }
 0x22f   : > { %7817 = vmatprep.mubr.msk.bf16.mxu0 %vm332_vm1, %v9691_v16 }
 0x236   : > { %7818 = vmatmul.mubr.msk.bf16.gmra.mrb[28].mxu0 %vm332_vm1, %v2553_v41 }
 0x237   : > { %7823 = vmatprep.mubr.msk.bf16.mxu0 %vm332_vm1, %v9553_v10  ;;  %v2830_v10 = vld [vmem:[#allocation2 + $0x19a] sm:$0xff] }
 0x23e   : > { %7824 = vmatmul.mubr.msk.bf16.vlgmr.msra.gmra.mrb[0].mxu0 %vm332_vm1, %v9565_v24  ;;  %v2831_v24 = vld [vmem:[#allocation2 + $0x1a2] sm:$0xff] }
 0x23f   : > { %7827 = vmatprep.mubr.msk.bf16.mxu0 %vm332_vm1, %v9567_v61  ;;  %v2847_v61 = vpack.c.bf16 %v2831_v24, %v2830_v10 }
 0x246   : > { %7828 = vmatmul.mubr.msk.bf16.gmra.mrb[4].mxu0 %vm332_vm1, %v9573_v33  ;;  %v7001_v33 = vld [vmem:[%s10524_s3 + $0x2] sm:$0x3] }
 0x247   : > { %7831 = vmatprep.mubr.msk.bf16.mxu0 %vm332_vm1, %v9575_v36  ;;  %8927 = vmatprep.subr.msk.bf16.mxu1 %vm658_vm0, %v7001_v33  ;;  %v3345_v36 = vsel %vm658_vm0, %v7001_v33, 0 }
 0x248   : > { %7856 = vmatpush3.bf16.msra.mxu1 %v3345_v36 }
 0x24e   : > { %7832 = vmatmul.mubr.msk.bf16.gmra.mrb[8].mxu0 %vm332_vm1, %v9581_v45  ;;  %v3246_v45 = vld [vmem:[#allocation3 + $0x1] sm:$0xff] }
 0x24f   : > { %7835 = vmatprep.mubr.msk.bf16.mxu0 %vm332_vm1, %v9583_v48  ;;  %v3247_v48 = vld [vmem:[#allocation3 + $0x9] sm:$0xff] }
 0x256   : > { %7836 = vmatmul.mubr.msk.bf16.gmra.mrb[12].mxu0 %vm332_vm1, %v9589_v56  ;;  %v3278_v56 = vpack.c.bf16 %v3247_v48, %v3246_v45 }
 0x257   : > { %7839 = vmatprep.mubr.msk.bf16.mxu0 %vm332_vm1, %v9591_v57  ;;  %v3245_v57 = vld [vmem:[%s10524_s3] sm:$0x3] }
 0x258   : > { %7857 = vmatprep.mubr.msk.bf16.mxu1 %vm332_vm1, %v3278_v56  ;;  %8928 = vmatprep.subr.msk.bf16.mxu1 %vm658_vm0, %v3245_v57  ;;  %v3557_v14 = vsel %vm658_vm0, %v3245_v57, 0 }
 0x25e   : > { %7840 = vmatmul.mubr.msk.bf16.gmra.mrb[16].mxu0 %vm332_vm1, %v9597_v7  ;;  %v9832_v7 = vld [vmem:[%s10523_s2] ss:$0 sm:$0xff] }
 0x25f   : > { %7843 = vmatprep.mubr.msk.bf16.mxu0 %vm332_vm1, %v9599_v11 }
 0x266   : > { %7844 = vmatmul.mubr.msk.bf16.gmra.mrb[20].mxu0 %vm332_vm1, %v9605_v25 }
 0x267   : > { %7847 = vmatprep.mubr.msk.bf16.mxu0 %vm332_vm1, %v9607_v26 }
 0x26e   : > { %7848 = vmatmul.mubr.msk.bf16.gmra.mrb[24].mxu0 %vm332_vm1, %v9613_v39 }
 0x26f   : > { %7851 = vmatprep.mubr.msk.bf16.mxu0 %vm332_vm1, %v9730_v29 }
 0x276   : > { %7852 = vmatmul.mubr.msk.bf16.gmra.mrb[28].mxu0 %vm332_vm1, %v2847_v61 }
 0x277   : > { %8199 = vmatprep.mubr.msk.f32.mxu0 %vm9077_vm4, %v9075_v2 }
 0x311   : > { %v7825_v11 = vpop.f32.mrb[0].mxu0 }
 0x312   : > { %v3103_v25 = vadd.f32 %v7825_v11, %v9832_v7  ;;  %v2935_v26 = vpop.f32.mrb[1].mxu0 }
 0x313   : > { %v3101_v39 = vadd.f32 %v9832_v7, %v2935_v26  ;;  %v7826_v16 = vpop.f32.mrb[2].mxu0 }
 0x314   : > { %v3135_v29 = vmax.f32 %v3103_v25, 0.0  ;;  %v3104_v46 = vadd.f32 %v7826_v16, %v9832_v7  ;;  %v2938_v47 = vpop.f32.mrb[3].mxu0 }
 0x315   : > { %v3133_v52 = vmax.f32 %v3101_v39, 0.0  ;;  %v3102_v59 = vadd.f32 %v9832_v7, %v2938_v47 }
 0x316   : > { %3167 = vst.msk [vmem:[#allocation3 + $0x31] sm:$0xff] %vm332_vm1, %v3135_v29  ;;  %v3136_v5 = vmax.f32 %v3104_v46, 0.0 }
 0x317   : > { %3165 = vst.msk [vmem:[#allocation3 + $0x19] sm:$0xff] %vm332_vm1, %v3133_v52  ;;  %v3134_v6 = vmax.f32 %v3102_v59, 0.0 }
 0x318   : > { %3168 = vst.msk [vmem:[#allocation3 + $0x39] sm:$0xff] %vm332_vm1, %v3136_v5 }
 0x319   : > { %3166 = vst.msk [vmem:[#allocation3 + $0x21] sm:$0xff] %vm332_vm1, %v3134_v6  ;;  %v7829_v3 = vpop.f32.mrb[4].mxu0 }
 0x31a   : > { %v3107_v12 = vadd.f32 %v7829_v3, %v9832_v7  ;;  %v2951_v19 = vpop.f32.mrb[5].mxu0 }
 0x31b   : > { %v3105_v20 = vadd.f32 %v9832_v7, %v2951_v19  ;;  %v7830_v27 = vpop.f32.mrb[6].mxu0 }
 0x31c   : > { %v3139_v30 = vmax.f32 %v3107_v12, 0.0  ;;  %v3108_v37 = vadd.f32 %v7830_v27, %v9832_v7  ;;  %v2954_v38 = vpop.f32.mrb[7].mxu0 }
 0x31d   : > { %v3137_v49 = vmax.f32 %v3105_v20, 0.0  ;;  %v3106_v53 = vadd.f32 %v9832_v7, %v2954_v38  ;;  %v3250_v1 = vld [vmem:[#allocation3 + $0x31] sm:$0xff] }
 0x31e   : > { %3171 = vst.msk [vmem:[#allocation3 + $0x61] sm:$0xff] %vm332_vm1, %v3139_v30  ;;  %v3140_v60 = vmax.f32 %v3108_v37, 0.0  ;;  %v3248_v55 = vld [vmem:[#allocation3 + $0x19] sm:$0xff] }
 0x31f   : > { %3169 = vst.msk [vmem:[#allocation3 + $0x49] sm:$0xff] %vm332_vm1, %v3137_v49  ;;  %v3138_v8 = vmax.f32 %v3106_v53, 0.0  ;;  %v3251_v54 = vld [vmem:[#allocation3 + $0x39] sm:$0xff] }
 0x320   : > { %3172 = vst.msk [vmem:[#allocation3 + $0x69] sm:$0xff] %vm332_vm1, %v3140_v60  ;;  %v3249_v62 = vld [vmem:[#allocation3 + $0x21] sm:$0xff]  ;;  %v9854_v21 = vpack.c.bf16 %v3251_v54, %v3250_v1 }
 0x321   : > { %3170 = vst.msk [vmem:[#allocation3 + $0x51] sm:$0xff] %vm332_vm1, %v3138_v8  ;;  %v7833_v63 = vpop.f32.mrb[8].mxu0  ;;  %v9850_v0 = vpack.c.bf16 %v3249_v62, %v3248_v55 }
 0x322   : > { %v3111_v15 = vadd.f32 %v7833_v63, %v9832_v7  ;;  %v2967_v18 = vpop.f32.mrb[9].mxu0 }
 0x323   : > { %v3109_v32 = vadd.f32 %v9832_v7, %v2967_v18  ;;  %v7834_v42 = vpop.f32.mrb[10].mxu0  ;;  %7858 = vmatmul.mubr.msk.bf16.vlgmr.msra.gmra.mrb[0].mxu1 %vm332_vm1, %v9850_v0 }
 0x324   : > { %v3143_v43 = vmax.f32 %v3111_v15, 0.0  ;;  %v3112_v58 = vadd.f32 %v7834_v42, %v9832_v7  ;;  %v2970_v13 = vpop.f32.mrb[11].mxu0  ;;  %7861 = vmatprep.mubr.msk.bf16.mxu1 %vm332_vm1, %v9854_v21  ;;  %7890 = vmatpush3.bf16.msra.mxu1 %v3557_v14 }
 0x325   : > { %v3141_v44 = vmax.f32 %v3109_v32, 0.0  ;;  %v3110_v50 = vadd.f32 %v9832_v7, %v2970_v13  ;;  %8929 = vmatprep.subr.msk.bf16.mxu1 %vm658_vm0, %v9859_v31  ;;  %v3254_v34 = vld [vmem:[#allocation3 + $0x61] sm:$0xff] }
 0x326   : > { %3175 = vst.msk [vmem:[#allocation3 + $0x91] sm:$0xff] %vm332_vm1, %v3143_v43  ;;  %v3144_v51 = vmax.f32 %v3112_v58, 0.0  ;;  %v3252_v17 = vld [vmem:[#allocation3 + $0x49] sm:$0xff] }
 0x327   : > { %3173 = vst.msk [vmem:[#allocation3 + $0x79] sm:$0xff] %vm332_vm1, %v3141_v44  ;;  %v3142_v4 = vmax.f32 %v3110_v50, 0.0  ;;  %v3255_v9 = vld [vmem:[#allocation3 + $0x69] sm:$0xff] }
 0x328   : > { %3176 = vst.msk [vmem:[#allocation3 + $0x99] sm:$0xff] %vm332_vm1, %v3144_v51  ;;  %v3253_v22 = vld [vmem:[#allocation3 + $0x51] sm:$0xff]  ;;  %v9877_v41 = vpack.c.bf16 %v3255_v9, %v3254_v34 }
 0x329   : > { %3174 = vst.msk [vmem:[#allocation3 + $0x81] sm:$0xff] %vm332_vm1, %v3142_v4  ;;  %v7837_v23 = vpop.f32.mrb[12].mxu0  ;;  %v9874_v28 = vpack.c.bf16 %v3253_v22, %v3252_v17 }
 0x32a   : > { %v3115_v35 = vadd.f32 %v7837_v23, %v9832_v7  ;;  %v2983_v40 = vpop.f32.mrb[13].mxu0 }
 0x32b   : > { %v3113_v10 = vadd.f32 %v9832_v7, %v2983_v40  ;;  %v7838_v24 = vpop.f32.mrb[14].mxu0  ;;  %7862 = vmatmul.mubr.msk.bf16.gmra.mrb[4].mxu1 %vm332_vm1, %v9874_v28 }
 0x32c   : > { %v3147_v61 = vmax.f32 %v3115_v35, 0.0  ;;  %v3116_v33 = vadd.f32 %v7838_v24, %v9832_v7  ;;  %v2986_v36 = vpop.f32.mrb[15].mxu0  ;;  %7865 = vmatprep.mubr.msk.bf16.mxu1 %vm332_vm1, %v9877_v41 }
 0x32d   : > { %v3145_v45 = vmax.f32 %v3113_v10, 0.0  ;;  %v3114_v48 = vadd.f32 %v9832_v7, %v2986_v36  ;;  %v3258_v29 = vld [vmem:[#allocation3 + $0x91] sm:$0xff] }
 0x32e   : > { %3179 = vst.msk [vmem:[#allocation3 + $0xc1] sm:$0xff] %vm332_vm1, %v3147_v61  ;;  %v3148_v56 = vmax.f32 %v3116_v33, 0.0  ;;  %v3256_v25 = vld [vmem:[#allocation3 + $0x79] sm:$0xff] }
 0x32f   : > { %3177 = vst.msk [vmem:[#allocation3 + $0xa9] sm:$0xff] %vm332_vm1, %v3145_v45  ;;  %v3146_v57 = vmax.f32 %v3114_v48, 0.0  ;;  %v3259_v11 = vld [vmem:[#allocation3 + $0x99] sm:$0xff] }
 0x330   : > { %3180 = vst.msk [vmem:[#allocation3 + $0xc9] sm:$0xff] %vm332_vm1, %v3148_v56  ;;  %v3257_v26 = vld [vmem:[#allocation3 + $0x81] sm:$0xff]  ;;  %v9893_v52 = vpack.c.bf16 %v3259_v11, %v3258_v29 }
 0x331   : > { %3178 = vst.msk [vmem:[#allocation3 + $0xb1] sm:$0xff] %vm332_vm1, %v3146_v57  ;;  %v7841_v39 = vpop.f32.mrb[16].mxu0  ;;  %v9890_v16 = vpack.c.bf16 %v3257_v26, %v3256_v25 }
 0x332   : > { %v3119_v46 = vadd.f32 %v7841_v39, %v9832_v7  ;;  %v2999_v47 = vpop.f32.mrb[17].mxu0 }
 0x333   : > { %v3117_v59 = vadd.f32 %v9832_v7, %v2999_v47  ;;  %v7842_v5 = vpop.f32.mrb[18].mxu0  ;;  %7866 = vmatmul.mubr.msk.bf16.gmra.mrb[8].mxu1 %vm332_vm1, %v9890_v16 }
 0x334   : > { %v3151_v6 = vmax.f32 %v3119_v46, 0.0  ;;  %v3120_v3 = vadd.f32 %v7842_v5, %v9832_v7  ;;  %v3002_v12 = vpop.f32.mrb[19].mxu0  ;;  %7869 = vmatprep.mubr.msk.bf16.mxu1 %vm332_vm1, %v9893_v52 }
 0x335   : > { %v3149_v19 = vmax.f32 %v3117_v59, 0.0  ;;  %v3118_v20 = vadd.f32 %v9832_v7, %v3002_v12  ;;  %v3262_v8 = vld [vmem:[#allocation3 + $0xc1] sm:$0xff] }
 0x336   : > { %3183 = vst.msk [vmem:[#allocation3 + $0xf1] sm:$0xff] %vm332_vm1, %v3151_v6  ;;  %v3152_v27 = vmax.f32 %v3120_v3, 0.0  ;;  %v3260_v38 = vld [vmem:[#allocation3 + $0xa9] sm:$0xff] }
 0x337   : > { %3181 = vst.msk [vmem:[#allocation3 + $0xd9] sm:$0xff] %vm332_vm1, %v3149_v19  ;;  %v3150_v30 = vmax.f32 %v3118_v20, 0.0  ;;  %v3263_v37 = vld [vmem:[#allocation3 + $0xc9] sm:$0xff] }
 0x338   : > { %3184 = vst.msk [vmem:[#allocation3 + $0xf9] sm:$0xff] %vm332_vm1, %v3152_v27  ;;  %v3261_v49 = vld [vmem:[#allocation3 + $0xb1] sm:$0xff]  ;;  %v9909_v62 = vpack.c.bf16 %v3263_v37, %v3262_v8 }
 0x339   : > { %3182 = vst.msk [vmem:[#allocation3 + $0xe1] sm:$0xff] %vm332_vm1, %v3150_v30  ;;  %v7845_v53 = vpop.f32.mrb[20].mxu0  ;;  %v9906_v60 = vpack.c.bf16 %v3261_v49, %v3260_v38 }
 0x33a   : > { %v3123_v54 = vadd.f32 %v7845_v53, %v9832_v7  ;;  %v3015_v55 = vpop.f32.mrb[21].mxu0 }
 0x33b   : > { %v3121_v63 = vadd.f32 %v9832_v7, %v3015_v55  ;;  %v7846_v1 = vpop.f32.mrb[22].mxu0  ;;  %7870 = vmatmul.mubr.msk.bf16.gmra.mrb[12].mxu1 %vm332_vm1, %v9906_v60 }
 0x33c   : > { %v3155_v14 = vmax.f32 %v3123_v54, 0.0  ;;  %v3124_v15 = vadd.f32 %v7846_v1, %v9832_v7  ;;  %v3018_v18 = vpop.f32.mrb[23].mxu0  ;;  %7873 = vmatprep.mubr.msk.bf16.mxu1 %vm332_vm1, %v9909_v62  ;;  %v3198_v54 = vld [vmem:[#allocation3 + $0x8] sm:$0xff] }
 0x33d   : > { %v3153_v32 = vmax.f32 %v3121_v63, 0.0  ;;  %v3122_v42 = vadd.f32 %v9832_v7, %v3018_v18  ;;  %v3266_v9 = vld [vmem:[#allocation3 + $0xf1] sm:$0xff] }
 0x33e   : > { %3187 = vst.msk [vmem:[#allocation3 + $0x121] sm:$0xff] %vm332_vm1, %v3155_v14  ;;  %v3156_v43 = vmax.f32 %v3124_v15, 0.0  ;;  %v3264_v44 = vld [vmem:[#allocation3 + $0xd9] sm:$0xff] }
 0x33f   : > { %3185 = vst.msk [vmem:[#allocation3 + $0x109] sm:$0xff] %vm332_vm1, %v3153_v32  ;;  %v3154_v58 = vmax.f32 %v3122_v42, 0.0  ;;  %v3267_v13 = vld [vmem:[#allocation3 + $0xf9] sm:$0xff] }
 0x340   : > { %3188 = vst.msk [vmem:[#allocation3 + $0x129] sm:$0xff] %vm332_vm1, %v3156_v43  ;;  %v3265_v50 = vld [vmem:[#allocation3 + $0xe1] sm:$0xff]  ;;  %v9925_v23 = vpack.c.bf16 %v3267_v13, %v3266_v9  ;;  %v3202_v18 = vld [vmem:[#allocation3 + $0x38] sm:$0xff]  ;;  %v3201_v43 = vld [vmem:[#allocation3 + $0x30] sm:$0xff] }
 0x341   : > { %3186 = vst.msk [vmem:[#allocation3 + $0x111] sm:$0xff] %vm332_vm1, %v3154_v58  ;;  %v7849_v51 = vpop.f32.mrb[24].mxu0  ;;  %v9922_v4 = vpack.c.bf16 %v3265_v50, %v3264_v44  ;;  %v3200_v15 = vld [vmem:[#allocation3 + $0x20] sm:$0xff]  ;;  %v3199_v32 = vld [vmem:[#allocation3 + $0x18] sm:$0xff]  ;;  %v3819_v58 = vsel %vm658_vm0, %v9859_v31, 0  ;;  %v9971_v13 = vpack.c.bf16 %v3202_v18, %v3201_v43  ;;  %v3204_v50 = vld [vmem:[#allocation3 + $0x50] sm:$0xff] }
 0x342   : > { %v3127_v17 = vadd.f32 %v7849_v51, %v9832_v7  ;;  %v3031_v22 = vpop.f32.mrb[25].mxu0  ;;  %v9967_v42 = vpack.c.bf16 %v3200_v15, %v3199_v32  ;;  %v9976_v44 = vld [vmem:[%s10524_s3 + $0x6] sm:$0x3]  ;;  %v3206_v51 = vld [vmem:[#allocation3 + $0x68] sm:$0xff]  ;;  %v3722_v32 = vld [vmem:[#allocation3 + $0x1a] sm:$0xff] }
 0x343   : > { %v3125_v34 = vadd.f32 %v9832_v7, %v3031_v22  ;;  %v7850_v35 = vpop.f32.mrb[26].mxu0  ;;  %7874 = vmatmul.mubr.msk.bf16.gmra.mrb[16].mxu1 %vm332_vm1, %v9922_v4  ;;  %v3203_v31 = vld [vmem:[#allocation3 + $0x48] sm:$0xff] }
 0x344   : > { %v3159_v40 = vmax.f32 %v3127_v17, 0.0  ;;  %v3128_v10 = vadd.f32 %v7850_v35, %v9832_v7  ;;  %v3034_v24 = vpop.f32.mrb[27].mxu0  ;;  %7877 = vmatprep.mubr.msk.bf16.mxu1 %vm332_vm1, %v9925_v23  ;;  %v9984_v9 = vpack.c.bf16 %v3204_v50, %v3203_v31  ;;  %v3205_v17 = vld [vmem:[#allocation3 + $0x60] sm:$0xff]  ;;  %v3210_v35 = vld [vmem:[#allocation3 + $0x98] sm:$0xff]  ;;  %v4113_v31 = vsel %vm658_vm0, %v9976_v44, 0 }
 0x345   : > { %v3157_v61 = vmax.f32 %v3125_v34, 0.0  ;;  %v3126_v33 = vadd.f32 %v9832_v7, %v3034_v24  ;;  %v3270_v26 = vld [vmem:[#allocation3 + $0x121] sm:$0xff]  ;;  %v9986_v22 = vpack.c.bf16 %v3206_v51, %v3205_v17  ;;  %v3209_v24 = vld [vmem:[#allocation3 + $0x90] sm:$0xff] }
 0x346   : > { %3191 = vst.msk [vmem:[#allocation3 + $0x151] sm:$0xff] %vm332_vm1, %v3159_v40  ;;  %v3160_v36 = vmax.f32 %v3128_v10, 0.0  ;;  %v3268_v56 = vld [vmem:[#allocation3 + $0x109] sm:$0xff]  ;;  %v3208_v34 = vld [vmem:[#allocation3 + $0x80] sm:$0xff]  ;;  %v3207_v40 = vld [vmem:[#allocation3 + $0x78] sm:$0xff] }
 0x347   : > { %3189 = vst.msk [vmem:[#allocation3 + $0x139] sm:$0xff] %vm332_vm1, %v3157_v61  ;;  %v3158_v45 = vmax.f32 %v3126_v33, 0.0  ;;  %v3271_v48 = vld [vmem:[#allocation3 + $0x129] sm:$0xff]  ;;  %v9992_v10 = vpack.c.bf16 %v3208_v34, %v3207_v40  ;;  %v9994_v61 = vpack.c.bf16 %v3210_v35, %v3209_v24  ;;  %v3725_v50 = vld [vmem:[#allocation3 + $0x3a] sm:$0xff]  ;;  %v7068_v34 = vld [vmem:[%s10524_s3 + $0x8] sm:$0x3] }
 0x348   : > { %3192 = vst.msk [vmem:[#allocation3 + $0x159] sm:$0xff] %vm332_vm1, %v3160_v36  ;;  %v3269_v57 = vld [vmem:[#allocation3 + $0x111] sm:$0xff]  ;;  %v9941_v46 = vpack.c.bf16 %v3271_v48, %v3270_v26  ;;  %v3214_v36 = vld [vmem:[#allocation3 + $0xc8] sm:$0xff] }
 0x349   : > { %3190 = vst.msk [vmem:[#allocation3 + $0x141] sm:$0xff] %vm332_vm1, %v3158_v45  ;;  %v7853_v11 = vpop.f32.mrb[28].mxu0  ;;  %v9938_v25 = vpack.c.bf16 %v3269_v57, %v3268_v56  ;;  %v3212_v33 = vld [vmem:[#allocation3 + $0xb0] sm:$0xff]  ;;  %v3211_v45 = vld [vmem:[#allocation3 + $0xa8] sm:$0xff]  ;;  %v3213_v56 = vld [vmem:[#allocation3 + $0xc0] sm:$0xff] }
 0x34a   : > { %v3131_v39 = vadd.f32 %v7853_v11, %v9832_v7  ;;  %v3047_v29 = vpop.f32.mrb[29].mxu0  ;;  %v10000_v48 = vpack.c.bf16 %v3212_v33, %v3211_v45  ;;  %v10002_v57 = vpack.c.bf16 %v3214_v36, %v3213_v56  ;;  %v3216_v11 = vld [vmem:[#allocation3 + $0xe0] sm:$0xff]  ;;  %v3218_v26 = vld [vmem:[#allocation3 + $0xf8] sm:$0xff]  ;;  %v3726_v35 = vld [vmem:[#allocation3 + $0x4a] sm:$0xff] }
 0x34b   : > { %v3129_v47 = vadd.f32 %v9832_v7, %v3047_v29  ;;  %v7854_v59 = vpop.f32.mrb[30].mxu0  ;;  %7878 = vmatmul.mubr.msk.bf16.gmra.mrb[20].mxu1 %vm332_vm1, %v9938_v25  ;;  %v3723_v43 = vld [vmem:[#allocation3 + $0x22] sm:$0xff]  ;;  %v3727_v40 = vld [vmem:[#allocation3 + $0x52] sm:$0xff]  ;;  %v3729_v33 = vld [vmem:[#allocation3 + $0x6a] sm:$0xff] }
 0x34c   : > { %v3163_v5 = vmax.f32 %v3131_v39, 0.0  ;;  %v3132_v6 = vadd.f32 %v7854_v59, %v9832_v7  ;;  %v3050_v3 = vpop.f32.mrb[31].mxu0  ;;  %7881 = vmatprep.mubr.msk.bf16.mxu1 %vm332_vm1, %v9941_v46  ;;  %v3215_v39 = vld [vmem:[#allocation3 + $0xd8] sm:$0xff]  ;;  %v10037_v51 = vpack.c.bf16 %v3723_v43, %v3722_v32  ;;  %v3728_v24 = vld [vmem:[#allocation3 + $0x62] sm:$0xff] }
 0x34d   : > { %v3161_v12 = vmax.f32 %v3129_v47, 0.0  ;;  %v3130_v19 = vadd.f32 %v9832_v7, %v3050_v3  ;;  %v3274_v53 = vld [vmem:[#allocation3 + $0x151] sm:$0xff]  ;;  %v3197_v7 = vld [vmem:[#allocation3] sm:$0xff]  ;;  %v10008_v29 = vpack.c.bf16 %v3216_v11, %v3215_v39  ;;  %v3219_v3 = vld [vmem:[#allocation3 + $0x108] sm:$0xff]  ;;  %v10053_v36 = vpack.c.bf16 %v3729_v33, %v3728_v24 }
 0x34e   : > { %3195 = vst.msk [vmem:[#allocation3 + $0x181] sm:$0xff] %vm332_vm1, %v3163_v5  ;;  %v3164_v20 = vmax.f32 %v3132_v6, 0.0  ;;  %v3272_v37 = vld [vmem:[#allocation3 + $0x139] sm:$0xff]  ;;  %v3229_v1 = vpack.c.bf16 %v3198_v54, %v3197_v7  ;;  %v3217_v47 = vld [vmem:[#allocation3 + $0xf0] sm:$0xff]  ;;  %v3222_v6 = vld [vmem:[#allocation3 + $0x128] sm:$0xff] }
 0x34f   : > { %3193 = vst.msk [vmem:[#allocation3 + $0x169] sm:$0xff] %vm332_vm1, %v3161_v12  ;;  %v3162_v27 = vmax.f32 %v3130_v19, 0.0  ;;  %v3275_v30 = vld [vmem:[#allocation3 + $0x159] sm:$0xff]  ;;  %v10010_v59 = vpack.c.bf16 %v3218_v26, %v3217_v47  ;;  %v3220_v5 = vld [vmem:[#allocation3 + $0x110] sm:$0xff]  ;;  %v3720_v54 = vld [vmem:[#allocation3 + $0x2] sm:$0xff] }
 0x350   : > { %3196 = vst.msk [vmem:[#allocation3 + $0x189] sm:$0xff] %vm332_vm1, %v3164_v20  ;;  %v3273_v38 = vld [vmem:[#allocation3 + $0x141] sm:$0xff]  ;;  %v9956_v8 = vpack.c.bf16 %v3275_v30, %v3274_v53  ;;  %v10016_v12 = vpack.c.bf16 %v3220_v5, %v3219_v3  ;;  %v3226_v30 = vld [vmem:[#allocation3 + $0x158] sm:$0xff]  ;;  %v3225_v53 = vld [vmem:[#allocation3 + $0x150] sm:$0xff] }
 0x351   : > { %3194 = vst.msk [vmem:[#allocation3 + $0x171] sm:$0xff] %vm332_vm1, %v3162_v27  ;;  %v9954_v49 = vpack.c.bf16 %v3273_v38, %v3272_v37  ;;  %v3221_v19 = vld [vmem:[#allocation3 + $0x120] sm:$0xff]  ;;  %v3223_v37 = vld [vmem:[#allocation3 + $0x138] sm:$0xff]  ;;  %v10026_v7 = vpack.c.bf16 %v3226_v30, %v3225_v53  ;;  %v3734_v5 = vld [vmem:[#allocation3 + $0xaa] sm:$0xff] }
 0x352   : > { %v10018_v20 = vpack.c.bf16 %v3222_v6, %v3221_v19  ;;  %v3224_v27 = vld [vmem:[#allocation3 + $0x140] sm:$0xff]  ;;  %v3732_v11 = vld [vmem:[#allocation3 + $0x92] sm:$0xff]  ;;  %v3737_v19 = vld [vmem:[#allocation3 + $0xca] sm:$0xff] }
 0x353   : > { %7882 = vmatmul.mubr.msk.bf16.gmra.mrb[24].mxu1 %vm332_vm1, %v9954_v49  ;;  %v10024_v38 = vpack.c.bf16 %v3224_v27, %v3223_v37  ;;  %v3730_v45 = vld [vmem:[#allocation3 + $0x7a] sm:$0xff]  ;;  %v3731_v56 = vld [vmem:[#allocation3 + $0x82] sm:$0xff]  ;;  %v3735_v6 = vld [vmem:[#allocation3 + $0xb2] sm:$0xff] }
 0x354   : > { %7885 = vmatprep.mubr.msk.bf16.mxu1 %vm332_vm1, %v9956_v8  ;;  %v3733_v26 = vld [vmem:[#allocation3 + $0x9a] sm:$0xff]  ;;  %v10059_v39 = vpack.c.bf16 %v3731_v56, %v3730_v45  ;;  %v3736_v3 = vld [vmem:[#allocation3 + $0xc2] sm:$0xff]  ;;  %v10067_v27 = vpack.c.bf16 %v3735_v6, %v3734_v5  ;;  %v3743_v32 = vld [vmem:[#allocation3 + $0x112] sm:$0xff]  ;;  %v4407_v6 = vsel %vm658_vm0, %v7068_v34, 0 }
 0x355   : > { %v10061_v47 = vpack.c.bf16 %v3733_v26, %v3732_v11  ;;  %v10069_v30 = vpack.c.bf16 %v3737_v19, %v3736_v3  ;;  %v3738_v37 = vld [vmem:[#allocation3 + $0xda] sm:$0xff]  ;;  %v3739_v53 = vld [vmem:[#allocation3 + $0xe2] sm:$0xff]  ;;  %v3748_v24 = vld [vmem:[#allocation3 + $0x152] sm:$0xff] }
 0x356   : > { %v3276_v55 = vld [vmem:[#allocation3 + $0x169] sm:$0xff]  ;;  %v3749_v33 = vld [vmem:[#allocation3 + $0x15a] sm:$0xff] }
 0x357   : > { %v3744_v43 = vld [vmem:[#allocation3 + $0x122] sm:$0xff]  ;;  %v10093_v56 = vpack.c.bf16 %v3749_v33, %v3748_v24  ;;  %v7085_v3 = vld [vmem:[%s10524_s3 + $0xa] sm:$0x3] }
 0x358   : > { %v3277_v63 = vld [vmem:[#allocation3 + $0x171] sm:$0xff] }
 0x359   : > { %v9962_v14 = vpack.c.bf16 %v3277_v63, %v3276_v55  ;;  %v3721_v55 = vld [vmem:[#allocation3 + $0xa] sm:$0xff]  ;;  %v3751_v26 = vld [vmem:[#allocation3 + $0x172] sm:$0xff] }
 0x35a   : > { %v3228_v63 = vld [vmem:[#allocation3 + $0x170] sm:$0xff]  ;;  %v3752_v15 = vpack.c.bf16 %v3721_v55, %v3720_v54  ;;  %v3741_v55 = vld [vmem:[#allocation3 + $0xfa] sm:$0xff] }
 0x35b   : > { %7886 = vmatmul.mubr.msk.bf16.gmra.mrb[28].mxu1 %vm332_vm1, %v9962_v14  ;;  %v3740_v54 = vld [vmem:[#allocation3 + $0xf2] sm:$0xff]  ;;  %v3750_v11 = vld [vmem:[#allocation3 + $0x16a] sm:$0xff] }
 0x35c   : > { %7891 = vmatprep.mubr.msk.bf16.mxu1 %vm332_vm1, %v3229_v1  ;;  %v3227_v1 = vld [vmem:[#allocation3 + $0x168] sm:$0xff]  ;;  %v10099_v5 = vpack.c.bf16 %v3751_v26, %v3750_v11  ;;  %v8988_v33 = vld [vmem:[%s9344_s29 + $0x48] sm:$0xff] }
 0x35d   : > { %v10032_v18 = vpack.c.bf16 %v3228_v63, %v3227_v1  ;;  %v10075_v63 = vpack.c.bf16 %v3739_v53, %v3738_v37  ;;  %v10077_v1 = vpack.c.bf16 %v3741_v55, %v3740_v54  ;;  %v4701_v37 = vsel %vm658_vm0, %v7085_v3, 0  ;;  %v7102_v53 = vld [vmem:[%s10524_s3 + $0xc] sm:$0x3]  ;;  %v8990_v11 = vld [vmem:[%s9344_s29 + $0x58] sm:$0xff] }
 0x363   : > { %7892 = vmatmul.mubr.msk.bf16.vlgmr.msra.gmra.mrb[0].mxu1 %vm332_vm1, %v9967_v42 }
 0x364   : > { %7895 = vmatprep.mubr.msk.bf16.mxu1 %vm332_vm1, %v9971_v13  ;;  %7924 = vmatpush3.bf16.msra.mxu1 %v3819_v58  ;;  %v3724_v58 = vld [vmem:[#allocation3 + $0x32] sm:$0xff] }
 0x365   : > { %8930 = vmatprep.subr.msk.bf16.mxu1 %vm658_vm0, %v9976_v44  ;;  %v10041_v17 = vpack.c.bf16 %v3725_v50, %v3724_v58  ;;  %v10051_v44 = vpack.c.bf16 %v3727_v40, %v3726_v35  ;;  %v3745_v58 = vld [vmem:[#allocation3 + $0x12a] sm:$0xff]  ;;  %v3746_v35 = vld [vmem:[#allocation3 + $0x13a] sm:$0xff]  ;;  %v3747_v40 = vld [vmem:[#allocation3 + $0x142] sm:$0xff] }
 0x366   : > { %v10091_v45 = vpack.c.bf16 %v3747_v40, %v3746_v35  ;;  %v5199_v40 = vld [vmem:[#allocation3 + $0x91] sm:$0xff] }
 0x36b   : > { %7896 = vmatmul.mubr.msk.bf16.gmra.mrb[4].mxu1 %vm332_vm1, %v9984_v9 }
 0x36c   : > { %7899 = vmatprep.mubr.msk.bf16.mxu1 %vm332_vm1, %v9986_v22 }
 0x373   : > { %7900 = vmatmul.mubr.msk.bf16.gmra.mrb[8].mxu1 %vm332_vm1, %v9992_v10 }
 0x374   : > { %7903 = vmatprep.mubr.msk.bf16.mxu1 %vm332_vm1, %v9994_v61 }
 0x37b   : > { %7904 = vmatmul.mubr.msk.bf16.gmra.mrb[12].mxu1 %vm332_vm1, %v10000_v48 }
 0x37c   : > { %7907 = vmatprep.mubr.msk.bf16.mxu1 %vm332_vm1, %v10002_v57 }
 0x383   : > { %7908 = vmatmul.mubr.msk.bf16.gmra.mrb[16].mxu1 %vm332_vm1, %v10008_v29 }
 0x384   : > { %7911 = vmatprep.mubr.msk.bf16.mxu1 %vm332_vm1, %v10010_v59 }
 0x38b   : > { %7912 = vmatmul.mubr.msk.bf16.gmra.mrb[20].mxu1 %vm332_vm1, %v10016_v12 }
 0x38c   : > { %7915 = vmatprep.mubr.msk.bf16.mxu1 %vm332_vm1, %v10018_v20 }
 0x393   : > { %7916 = vmatmul.mubr.msk.bf16.gmra.mrb[24].mxu1 %vm332_vm1, %v10024_v38 }
 0x394   : > { %7919 = vmatprep.mubr.msk.bf16.mxu1 %vm332_vm1, %v10026_v7 }
 0x39b   : > { %7920 = vmatmul.mubr.msk.bf16.gmra.mrb[28].mxu1 %vm332_vm1, %v10032_v18 }
 0x39c   : > { %7925 = vmatprep.mubr.msk.bf16.mxu1 %vm332_vm1, %v3752_v15  ;;  %v3742_v15 = vld [vmem:[#allocation3 + $0x10a] sm:$0xff] }
 0x39d   : > { %v10083_v50 = vpack.c.bf16 %v3743_v32, %v3742_v15  ;;  %v7136_v15 = vld [vmem:[%s10524_s3 + $0x10] sm:$0x3] }
 0x39e   : > { %v5198_v32 = vld [vmem:[#allocation3 + $0x81] sm:$0xff] }
 0x3a3   : > { %7926 = vmatmul.mubr.msk.bf16.vlgmr.msra.gmra.mrb[0].mxu1 %vm332_vm1, %v10037_v51 }
 0x3a4   : > { %7929 = vmatprep.mubr.msk.bf16.mxu1 %vm332_vm1, %v10041_v17  ;;  %7958 = vmatpush3.bf16.msra.mxu1 %v4113_v31  ;;  %v10085_v31 = vpack.c.bf16 %v3745_v58, %v3744_v43  ;;  %v5200_v43 = vld [vmem:[#allocation3 + $0x99] sm:$0xff] }
 0x3a5   : > { %8931 = vmatprep.subr.msk.bf16.mxu1 %vm658_vm0, %v7068_v34  ;;  %v4044_v34 = vld [vmem:[#allocation3 + $0x180] sm:$0xff]  ;;  %v5227_v24 = vpack.c.bf16 %v5200_v43, %v5199_v40 }
 0x3a6   : > { %v5197_v58 = vld [vmem:[#allocation3 + $0x79] sm:$0xff] }
 0x3a7   : > { %v5226_v35 = vpack.c.bf16 %v5198_v32, %v5197_v58  ;;  %v7154_v32 = vld [vmem:[%s10527_s6] ss:$0 sm:$0xff] }
 0x3ab   : > { %7930 = vmatmul.mubr.msk.bf16.gmra.mrb[4].mxu1 %vm332_vm1, %v10051_v44 }
 0x3ac   : > { %7933 = vmatprep.mubr.msk.bf16.mxu1 %vm332_vm1, %v10053_v36 }
 0x3b3   : > { %7934 = vmatmul.mubr.msk.bf16.gmra.mrb[8].mxu1 %vm332_vm1, %v10059_v39 }
 0x3b4   : > { %7937 = vmatprep.mubr.msk.bf16.mxu1 %vm332_vm1, %v10061_v47 }
 0x3bb   : > { %7938 = vmatmul.mubr.msk.bf16.gmra.mrb[12].mxu1 %vm332_vm1, %v10067_v27 }
 0x3bc   : > { %7941 = vmatprep.mubr.msk.bf16.mxu1 %vm332_vm1, %v10069_v30 }
 0x3c3   : > { %7942 = vmatmul.mubr.msk.bf16.gmra.mrb[16].mxu1 %vm332_vm1, %v10075_v63 }
 0x3c4   : > { %7945 = vmatprep.mubr.msk.bf16.mxu1 %vm332_vm1, %v10077_v1 }
 0x3cb   : > { %7946 = vmatmul.mubr.msk.bf16.gmra.mrb[20].mxu1 %vm332_vm1, %v10083_v50 }
 0x3cc   : > { %7949 = vmatprep.mubr.msk.bf16.mxu1 %vm332_vm1, %v10085_v31 }
 0x3d3   : > { %7950 = vmatmul.mubr.msk.bf16.gmra.mrb[24].mxu1 %vm332_vm1, %v10091_v45 }
 0x3d4   : > { %7953 = vmatprep.mubr.msk.bf16.mxu1 %vm332_vm1, %v10093_v56 }
 0x3db   : > { %7954 = vmatmul.mubr.msk.bf16.gmra.mrb[28].mxu1 %vm332_vm1, %v10099_v5 }
 0x3dc   : > { %7959 = vmatprep.mubr.msk.bf16.mxu1 %vm332_vm1, %v9967_v42  ;;  %v4045_v42 = vld [vmem:[#allocation3 + $0x188] sm:$0xff] }
 0x3dd   : > { %v10138_v19 = vpack.c.bf16 %v4045_v42, %v4044_v34  ;;  %v8993_v42 = vld [vmem:[%s9344_s29 + $0x70] sm:$0xff]  ;;  %v8994_v34 = vld [vmem:[%s9344_s29 + $0x78] sm:$0xff] }
 0x3e3   : > { %7960 = vmatmul.mubr.msk.bf16.vlgmr.msra.gmra.mrb[0].mxu1 %vm332_vm1, %v9971_v13 }
 0x3e4   : > { %7963 = vmatprep.mubr.msk.bf16.mxu1 %vm332_vm1, %v9984_v9  ;;  %7992 = vmatpush3.bf16.msra.mxu1 %v4407_v6  ;;  %v8992_v6 = vld [vmem:[%s9344_s29 + $0x68] sm:$0xff] }
 0x3e5   : > { %8932 = vmatprep.subr.msk.bf16.mxu1 %vm658_vm0, %v7085_v3 }
 0x3eb   : > { %7964 = vmatmul.mubr.msk.bf16.gmra.mrb[4].mxu1 %vm332_vm1, %v9986_v22 }
 0x3ec   : > { %7967 = vmatprep.mubr.msk.bf16.mxu1 %vm332_vm1, %v9992_v10 }
 0x3f3   : > { %7968 = vmatmul.mubr.msk.bf16.gmra.mrb[8].mxu1 %vm332_vm1, %v9994_v61 }
 0x3f4   : > { %7971 = vmatprep.mubr.msk.bf16.mxu1 %vm332_vm1, %v10000_v48 }
 0x3fb   : > { %7972 = vmatmul.mubr.msk.bf16.gmra.mrb[12].mxu1 %vm332_vm1, %v10002_v57 }
 0x3fc   : > { %7975 = vmatprep.mubr.msk.bf16.mxu1 %vm332_vm1, %v10008_v29 }
 0x403   : > { %7976 = vmatmul.mubr.msk.bf16.gmra.mrb[16].mxu1 %vm332_vm1, %v10010_v59 }
 0x404   : > { %7979 = vmatprep.mubr.msk.bf16.mxu1 %vm332_vm1, %v10016_v12 }
 0x40b   : > { %7980 = vmatmul.mubr.msk.bf16.gmra.mrb[20].mxu1 %vm332_vm1, %v10018_v20 }
 0x40c   : > { %7983 = vmatprep.mubr.msk.bf16.mxu1 %vm332_vm1, %v10024_v38 }
 0x413   : > { %7984 = vmatmul.mubr.msk.bf16.gmra.mrb[24].mxu1 %vm332_vm1, %v10026_v7 }
 0x414   : > { %7987 = vmatprep.mubr.msk.bf16.mxu1 %vm332_vm1, %v10032_v18 }
 0x41b   : > { %7988 = vmatmul.mubr.msk.bf16.gmra.mrb[28].mxu1 %vm332_vm1, %v10138_v19 }
 0x41c   : > { %7993 = vmatprep.mubr.msk.bf16.mxu1 %vm332_vm1, %v9850_v0  ;;  %v4339_v0 = vld [vmem:[#allocation3 + $0x189] sm:$0xff] }
 0x423   : > { %7994 = vmatmul.mubr.msk.bf16.vlgmr.msra.gmra.mrb[0].mxu1 %vm332_vm1, %v9854_v21  ;;  %v4338_v21 = vld [vmem:[#allocation3 + $0x181] sm:$0xff] }
 0x424   : > { %7997 = vmatprep.mubr.msk.bf16.mxu1 %vm332_vm1, %v9874_v28  ;;  %8026 = vmatpush3.bf16.msra.mxu1 %v4701_v37  ;;  %v10177_v28 = vpack.c.bf16 %v4339_v0, %v4338_v21  ;;  %v8995_v37 = vld [vmem:[%s9344_s29 + $0x80] sm:$0xff]  ;;  %v8997_v21 = vld [vmem:[%s9344_s29 + $0x90] sm:$0xff] }
 0x425   : > { %8933 = vmatprep.subr.msk.bf16.mxu1 %vm658_vm0, %v7102_v53 }
 0x42b   : > { %7998 = vmatmul.mubr.msk.bf16.gmra.mrb[4].mxu1 %vm332_vm1, %v9877_v41  ;;  %v4996_v41 = vsel %vm658_vm0, %v7102_v53, 0  ;;  %v8996_v53 = vld [vmem:[%s9344_s29 + $0x88] sm:$0xff] }
 0x42c   : > { %8001 = vmatprep.mubr.msk.bf16.mxu1 %vm332_vm1, %v9890_v16  ;;  %v7119_v16 = vld [vmem:[%s10524_s3 + $0xe] sm:$0x3]  ;;  %v5826_v0 = vpack.c.bf16 %v8996_v53, %v8995_v37 }
 0x42d   : > { %v5290_v55 = vsel %vm658_vm0, %v7119_v16, 0 }
 0x433   : > { %8002 = vmatmul.mubr.msk.bf16.gmra.mrb[8].mxu1 %vm332_vm1, %v9893_v52  ;;  %v4632_v52 = vld [vmem:[#allocation3 + $0x182] sm:$0xff] }
 0x434   : > { %8005 = vmatprep.mubr.msk.bf16.mxu1 %vm332_vm1, %v9906_v60 }
 0x43b   : > { %8006 = vmatmul.mubr.msk.bf16.gmra.mrb[12].mxu1 %vm332_vm1, %v9909_v62 }
 0x43c   : > { %8009 = vmatprep.mubr.msk.bf16.mxu1 %vm332_vm1, %v9922_v4 }
 0x443   : > { %8010 = vmatmul.mubr.msk.bf16.gmra.mrb[16].mxu1 %vm332_vm1, %v9925_v23 }
 0x444   : > { %8013 = vmatprep.mubr.msk.bf16.mxu1 %vm332_vm1, %v9938_v25 }
 0x44b   : > { %8014 = vmatmul.mubr.msk.bf16.gmra.mrb[20].mxu1 %vm332_vm1, %v9941_v46 }
 0x44c   : > { %8017 = vmatprep.mubr.msk.bf16.mxu1 %vm332_vm1, %v9954_v49 }
 0x453   : > { %8018 = vmatmul.mubr.msk.bf16.gmra.mrb[24].mxu1 %vm332_vm1, %v9956_v8 }
 0x454   : > { %8021 = vmatprep.mubr.msk.bf16.mxu1 %vm332_vm1, %v9962_v14 }
 0x45b   : > { %8022 = vmatmul.mubr.msk.bf16.gmra.mrb[28].mxu1 %vm332_vm1, %v10177_v28 }
 0x45c   : > { %8027 = vmatprep.mubr.msk.bf16.mxu1 %vm332_vm1, %v10037_v51  ;;  %v4633_v51 = vld [vmem:[#allocation3 + $0x18a] sm:$0xff] }
 0x45d   : > { %v10216_v54 = vpack.c.bf16 %v4633_v51, %v4632_v52  ;;  %v9000_v52 = vld [vmem:[%s9344_s29 + $0xa8] sm:$0xff] }
 0x463   : > { %8028 = vmatmul.mubr.msk.bf16.vlgmr.msra.gmra.mrb[0].mxu1 %vm332_vm1, %v10041_v17 }
 0x464   : > { %8031 = vmatprep.mubr.msk.bf16.mxu1 %vm332_vm1, %v10051_v44  ;;  %8060 = vmatpush3.bf16.msra.mxu1 %v4996_v41 }
 0x465   : > { %8934 = vmatprep.subr.msk.bf16.mxu1 %vm658_vm0, %v7119_v16  ;;  %v8999_v16 = vld [vmem:[%s9344_s29 + $0xa0] sm:$0xff] }
 0x466   : > { %v5828_v51 = vpack.c.bf16 %v9000_v52, %v8999_v16 }
 0x46b   : > { %8032 = vmatmul.mubr.msk.bf16.gmra.mrb[4].mxu1 %vm332_vm1, %v10053_v36 }
 0x46c   : > { %8035 = vmatprep.mubr.msk.bf16.mxu1 %vm332_vm1, %v10059_v39 }
 0x473   : > { %8036 = vmatmul.mubr.msk.bf16.gmra.mrb[8].mxu1 %vm332_vm1, %v10061_v47 }
 0x474   : > { %8039 = vmatprep.mubr.msk.bf16.mxu1 %vm332_vm1, %v10067_v27 }
 0x47b   : > { %8040 = vmatmul.mubr.msk.bf16.gmra.mrb[12].mxu1 %vm332_vm1, %v10069_v30 }
 0x47c   : > { %8043 = vmatprep.mubr.msk.bf16.mxu1 %vm332_vm1, %v10075_v63 }
 0x483   : > { %8044 = vmatmul.mubr.msk.bf16.gmra.mrb[16].mxu1 %vm332_vm1, %v10077_v1 }
 0x484   : > { %8047 = vmatprep.mubr.msk.bf16.mxu1 %vm332_vm1, %v10083_v50 }
 0x48b   : > { %8048 = vmatmul.mubr.msk.bf16.gmra.mrb[20].mxu1 %vm332_vm1, %v10085_v31 }
 0x48c   : > { %8051 = vmatprep.mubr.msk.bf16.mxu1 %vm332_vm1, %v10091_v45 }
 0x493   : > { %8052 = vmatmul.mubr.msk.bf16.gmra.mrb[24].mxu1 %vm332_vm1, %v10093_v56 }
 0x494   : > { %8055 = vmatprep.mubr.msk.bf16.mxu1 %vm332_vm1, %v10099_v5 }
 0x49b   : > { %8056 = vmatmul.mubr.msk.bf16.gmra.mrb[28].mxu1 %vm332_vm1, %v10216_v54 }
 0x49c   : > { %8061 = vmatprep.mubr.msk.bf16.mxu1 %vm332_vm1, %v9971_v13  ;;  %v4927_v13 = vld [vmem:[#allocation3 + $0x198] sm:$0xff] }
 0x4a3   : > { %8062 = vmatmul.mubr.msk.bf16.vlgmr.msra.gmra.mrb[0].mxu1 %vm332_vm1, %v9984_v9  ;;  %v4928_v9 = vld [vmem:[#allocation3 + $0x1a0] sm:$0xff] }
 0x4a4   : > { %8065 = vmatprep.mubr.msk.bf16.mxu1 %vm332_vm1, %v9986_v22  ;;  %8094 = vmatpush3.bf16.msra.mxu1 %v5290_v55  ;;  %v4944_v22 = vpack.c.bf16 %v4928_v9, %v4927_v13  ;;  %v9002_v55 = vld [vmem:[%s9344_s29 + $0xb8] sm:$0xff]  ;;  %v9003_v13 = vld [vmem:[%s9344_s29 + $0xc0] sm:$0xff]  ;;  %v9004_v9 = vld [vmem:[%s9344_s29 + $0xc8] sm:$0xff] }
 0x4a5   : > { %8935 = vmatprep.subr.msk.bf16.mxu1 %vm658_vm0, %v7136_v15 }
 0x4ab   : > { %8066 = vmatmul.mubr.msk.bf16.gmra.mrb[4].mxu1 %vm332_vm1, %v9992_v10  ;;  %v5192_v10 = vld [vmem:[#allocation3 + $0x39] sm:$0xff] }
 0x4ac   : > { %8069 = vmatprep.mubr.msk.bf16.mxu1 %vm332_vm1, %v9994_v61  ;;  %v5191_v61 = vld [vmem:[#allocation3 + $0x31] sm:$0xff] }
 0x4b3   : > { %8070 = vmatmul.mubr.msk.bf16.gmra.mrb[8].mxu1 %vm332_vm1, %v10000_v48  ;;  %v5223_v48 = vpack.c.bf16 %v5192_v10, %v5191_v61  ;;  %v9005_v10 = vld [vmem:[%s9344_s29 + $0xd0] sm:$0xff]  ;;  %v9006_v61 = vld [vmem:[%s9344_s29 + $0xd8] sm:$0xff] }
 0x4b4   : > { %8073 = vmatprep.mubr.msk.bf16.mxu1 %vm332_vm1, %v10002_v57  ;;  %v5194_v57 = vld [vmem:[#allocation3 + $0x51] sm:$0xff] }
 0x4bb   : > { %8074 = vmatmul.mubr.msk.bf16.gmra.mrb[12].mxu1 %vm332_vm1, %v10008_v29  ;;  %v5196_v29 = vld [vmem:[#allocation3 + $0x69] sm:$0xff] }
 0x4bc   : > { %8077 = vmatprep.mubr.msk.bf16.mxu1 %vm332_vm1, %v10010_v59  ;;  %v5193_v59 = vld [vmem:[#allocation3 + $0x49] sm:$0xff] }
 0x4c3   : > { %8078 = vmatmul.mubr.msk.bf16.gmra.mrb[16].mxu1 %vm332_vm1, %v10016_v12  ;;  %v5224_v12 = vpack.c.bf16 %v5194_v57, %v5193_v59  ;;  %v9007_v57 = vld [vmem:[%s9344_s29 + $0xe0] sm:$0xff] }
 0x4c4   : > { %8081 = vmatprep.mubr.msk.bf16.mxu1 %vm332_vm1, %v10018_v20  ;;  %v5195_v20 = vld [vmem:[#allocation3 + $0x61] sm:$0xff] }
 0x4cb   : > { %8082 = vmatmul.mubr.msk.bf16.gmra.mrb[20].mxu1 %vm332_vm1, %v10024_v38  ;;  %v5584_v38 = vsel %vm658_vm0, %v7136_v15, 0 }
 0x4cc   : > { %8085 = vmatprep.mubr.msk.bf16.mxu1 %vm332_vm1, %v10026_v7  ;;  %v5225_v7 = vpack.c.bf16 %v5196_v29, %v5195_v20  ;;  %v9008_v29 = vld [vmem:[%s9344_s29 + $0xe8] sm:$0xff]  ;;  %v9010_v20 = vld [vmem:[%s9344_s29 + $0xf8] sm:$0xff] }
 0x4cd   : > { %v5832_v59 = vpack.c.bf16 %v9008_v29, %v9007_v57 }
 0x4d3   : > { %8086 = vmatmul.mubr.msk.bf16.gmra.mrb[24].mxu1 %vm332_vm1, %v10032_v18  ;;  %v5834_v18 = vld [vmem:[%s10526_s5] sm:$0x3] }
 0x4d4   : > { %8089 = vmatprep.mubr.msk.bf16.mxu1 %vm332_vm1, %v10138_v19  ;;  %v5825_v19 = vpack.c.bf16 %v8994_v34, %v8993_v42 }
 0x4db   : > { %8090 = vmatmul.mubr.msk.bf16.gmra.mrb[28].mxu1 %vm332_vm1, %v4944_v22  ;;  %v5830_v22 = vpack.c.bf16 %v9004_v9, %v9003_v13 }
 0x4dc   : > { %8095 = vmatprep.mubr.msk.bf16.mxu1 %vm332_vm1, %v5223_v48  ;;  %v5831_v48 = vpack.c.bf16 %v9006_v61, %v9005_v10 }
 0x4e3   : > { %8096 = vmatmul.mubr.msk.bf16.vlgmr.msra.gmra.mrb[0].mxu1 %vm332_vm1, %v5224_v12  ;;  %v9009_v12 = vld [vmem:[%s9344_s29 + $0xf0] sm:$0xff] }
 0x4e4   : > { %8099 = vmatprep.mubr.msk.bf16.mxu1 %vm332_vm1, %v5225_v7  ;;  %8128 = vmatpush3.bf16.msra.mxu1 %v5584_v38  ;;  %v5833_v38 = vpack.c.bf16 %v9010_v20, %v9009_v12  ;;  %v9076_v7 = vmov 0.0|0.0  }
 0x4e5   : > { %8936 = vmatprep.subr.msk.bf16.mxu1 %vm658_vm0, %v5834_v18  ;;  %8270 = vmatprep.subr.bf16.mxu0 %v9076_v7 }
 0x4eb   : > { %8100 = vmatmul.mubr.msk.bf16.gmra.mrb[4].mxu1 %vm332_vm1, %v5226_v35 }
 0x4ec   : > { %8103 = vmatprep.mubr.msk.bf16.mxu1 %vm332_vm1, %v5227_v24 }
 0x4f3   : > { %8104 = vmatmul.mubr.msk.bf16.gmra.mrb[8].mxu1 %vm332_vm1, %v9906_v60  ;;  %v5221_v60 = vld [vmem:[#allocation3 + $0x199] sm:$0xff] }
 0x4f4   : > { %8107 = vmatprep.mubr.msk.bf16.mxu1 %vm332_vm1, %v9909_v62  ;;  %v5222_v62 = vld [vmem:[#allocation3 + $0x1a1] sm:$0xff] }
 0x4fb   : > { %8108 = vmatmul.mubr.msk.bf16.gmra.mrb[12].mxu1 %vm332_vm1, %v9922_v4  ;;  %v5238_v4 = vpack.c.bf16 %v5222_v62, %v5221_v60 }
 0x4fc   : > { %8111 = vmatprep.mubr.msk.bf16.mxu1 %vm332_vm1, %v9925_v23  ;;  %v5891_v23 = vsel %vm658_vm0, %v5834_v18, 0  ;;  %v7153_v18 = vld [vmem:[%s10525_s4] ss:$0 sm:$0xff] }
 0x4fd   : > { %v10376_v43 = vadd.f32 %v7154_v32, %v7153_v18 }
 0x503   : > { %8112 = vmatmul.mubr.msk.bf16.gmra.mrb[16].mxu1 %vm332_vm1, %v9938_v25  ;;  %v5515_v25 = vld [vmem:[#allocation3 + $0x19a] sm:$0xff] }
 0x504   : > { %8115 = vmatprep.mubr.msk.bf16.mxu1 %vm332_vm1, %v9941_v46  ;;  %v5516_v46 = vld [vmem:[#allocation3 + $0x1a2] sm:$0xff] }
 0x50b   : > { %8116 = vmatmul.mubr.msk.bf16.gmra.mrb[20].mxu1 %vm332_vm1, %v9954_v49  ;;  %v5532_v49 = vpack.c.bf16 %v5516_v46, %v5515_v25 }
 0x50c   : > { %8119 = vmatprep.mubr.msk.bf16.mxu1 %vm332_vm1, %v9956_v8  ;;  %v8979_v8 = vld [vmem:[%s9344_s29] sm:$0xff] }
 0x513   : > { %8120 = vmatmul.mubr.msk.bf16.gmra.mrb[24].mxu1 %vm332_vm1, %v9962_v14  ;;  %v8980_v14 = vld [vmem:[%s9344_s29 + $0x8] sm:$0xff] }
 0x514   : > { %8123 = vmatprep.mubr.msk.bf16.mxu1 %vm332_vm1, %v10177_v28  ;;  %v8998_v28 = vld [vmem:[%s9344_s29 + $0x98] sm:$0xff] }
 0x515   : > { %v5827_v41 = vpack.c.bf16 %v8998_v28, %v8997_v21 }
 0x51b   : > { %8124 = vmatmul.mubr.msk.bf16.gmra.mrb[28].mxu1 %vm332_vm1, %v5238_v4 }
 0x51c   : > { %8129 = vmatprep.mubr.msk.bf16.mxu1 %vm332_vm1, %v10041_v17  ;;  %v5818_v17 = vpack.c.bf16 %v8980_v14, %v8979_v8 }
 0x523   : > { %8130 = vmatmul.mubr.msk.bf16.vlgmr.msra.gmra.mrb[0].mxu1 %vm332_vm1, %v10051_v44  ;;  %v8981_v44 = vld [vmem:[%s9344_s29 + $0x10] sm:$0xff] }
 0x524   : > { %8133 = vmatprep.mubr.msk.bf16.mxu1 %vm332_vm1, %v10053_v36  ;;  %8162 = vmatpush3.bf16.msra.mxu1 %v5891_v23  ;;  %v8982_v36 = vld [vmem:[%s9344_s29 + $0x18] sm:$0xff] }
 0x52b   : > { %8134 = vmatmul.mubr.msk.bf16.gmra.mrb[4].mxu1 %vm332_vm1, %v10059_v39  ;;  %v5819_v39 = vpack.c.bf16 %v8982_v36, %v8981_v44 }
 0x52c   : > { %8137 = vmatprep.mubr.msk.bf16.mxu1 %vm332_vm1, %v10061_v47  ;;  %v8983_v47 = vld [vmem:[%s9344_s29 + $0x20] sm:$0xff] }
 0x533   : > { %8138 = vmatmul.mubr.msk.bf16.gmra.mrb[8].mxu1 %vm332_vm1, %v10067_v27  ;;  %v8984_v27 = vld [vmem:[%s9344_s29 + $0x28] sm:$0xff] }
 0x534   : > { %8141 = vmatprep.mubr.msk.bf16.mxu1 %vm332_vm1, %v10069_v30  ;;  %v5820_v30 = vpack.c.bf16 %v8984_v27, %v8983_v47  ;;  %v10385_v27 = vld [vmem:[%s10528_s7] sm:$0xff] }
 0x53b   : > { %8142 = vmatmul.mubr.msk.bf16.gmra.mrb[12].mxu1 %vm332_vm1, %v10075_v63  ;;  %v8985_v63 = vld [vmem:[%s9344_s29 + $0x30] sm:$0xff] }
 0x53c   : > { %8145 = vmatprep.mubr.msk.bf16.mxu1 %vm332_vm1, %v10077_v1  ;;  %v8986_v1 = vld [vmem:[%s9344_s29 + $0x38] sm:$0xff] }
 0x543   : > { %8146 = vmatmul.mubr.msk.bf16.gmra.mrb[16].mxu1 %vm332_vm1, %v10083_v50  ;;  %v5821_v50 = vpack.c.bf16 %v8986_v1, %v8985_v63 }
 0x544   : > { %8149 = vmatprep.mubr.msk.bf16.mxu1 %vm332_vm1, %v10085_v31  ;;  %v8987_v31 = vld [vmem:[%s9344_s29 + $0x40] sm:$0xff] }
 0x54b   : > { %8150 = vmatmul.mubr.msk.bf16.gmra.mrb[20].mxu1 %vm332_vm1, %v10091_v45  ;;  %v5822_v45 = vpack.c.bf16 %v8988_v33, %v8987_v31 }
 0x54c   : > { %8153 = vmatprep.mubr.msk.bf16.mxu1 %vm332_vm1, %v10093_v56  ;;  %v8989_v56 = vld [vmem:[%s9344_s29 + $0x50] sm:$0xff] }
 0x54d   : > { %v5823_v26 = vpack.c.bf16 %v8990_v11, %v8989_v56 }
 0x553   : > { %8154 = vmatmul.mubr.msk.bf16.gmra.mrb[24].mxu1 %vm332_vm1, %v10099_v5  ;;  %v8991_v5 = vld [vmem:[%s9344_s29 + $0x60] sm:$0xff] }
 0x554   : > { %8157 = vmatprep.mubr.msk.bf16.mxu1 %vm332_vm1, %v10216_v54  ;;  %v5824_v3 = vpack.c.bf16 %v8992_v6, %v8991_v5  ;;  %v9001_v54 = vld [vmem:[%s9344_s29 + $0xb0] sm:$0xff]  ;;  %s6769_s29 = scalar_lea.sflag [#allocation5], %s323_s28 }
 0x555   : > { %v5829_v15 = vpack.c.bf16 %v9002_v55, %v9001_v54 }
 0x55b   : > { %8158 = vmatmul.mubr.msk.bf16.gmra.mrb[28].mxu1 %vm332_vm1, %v5532_v49 }
 0x55c   : > { %8163 = vmatprep.mubr.msk.bf16.mxu1 %vm332_vm1, %v5818_v17 }
 0x563   : > { %8164 = vmatmul.mubr.msk.bf16.vlgmr.msra.gmra.mrb[0].mxu1 %vm332_vm1, %v5819_v39 }
 0x564   : > { %8167 = vmatprep.mubr.msk.bf16.mxu1 %vm332_vm1, %v5820_v30 }
 0x56b   : > { %8168 = vmatmul.mubr.msk.bf16.gmra.mrb[4].mxu1 %vm332_vm1, %v5821_v50 }
 0x56c   : > { %8171 = vmatprep.mubr.msk.bf16.mxu1 %vm332_vm1, %v5822_v45 }
 0x573   : > { %8172 = vmatmul.mubr.msk.bf16.gmra.mrb[8].mxu1 %vm332_vm1, %v5823_v26 }
 0x574   : > { %8175 = vmatprep.mubr.msk.bf16.mxu1 %vm332_vm1, %v5824_v3 }
 0x57b   : > { %8176 = vmatmul.mubr.msk.bf16.gmra.mrb[12].mxu1 %vm332_vm1, %v5825_v19 }
 0x57c   : > { %8179 = vmatprep.mubr.msk.bf16.mxu1 %vm332_vm1, %v5826_v0 }
 0x583   : > { %8180 = vmatmul.mubr.msk.bf16.gmra.mrb[16].mxu1 %vm332_vm1, %v5827_v41 }
 0x584   : > { %8183 = vmatprep.mubr.msk.bf16.mxu1 %vm332_vm1, %v5828_v51 }
 0x58b   : > { %8184 = vmatmul.mubr.msk.bf16.gmra.mrb[20].mxu1 %vm332_vm1, %v5829_v15 }
 0x58c   : > { %8187 = vmatprep.mubr.msk.bf16.mxu1 %vm332_vm1, %v5830_v22 }
 0x593   : > { %8188 = vmatmul.mubr.msk.bf16.gmra.mrb[24].mxu1 %vm332_vm1, %v5831_v48 }
 0x594   : > { %8191 = vmatprep.mubr.msk.bf16.mxu1 %vm332_vm1, %v5832_v59 }
 0x59b   : > { %8192 = vmatmul.mubr.msk.bf16.gmra.mrb[28].mxu1 %vm332_vm1, %v5833_v38 }
 0x636   : > { %v8165_v58 = vpop.f32.mrb[0].mxu1 }
 0x637   : > { %v8310_v35 = vadd.f32 %v8165_v58, %v7153_v18  ;;  %v5927_v40 = vpop.f32.mrb[1].mxu1 }
 0x638   : > { %v8312_v24 = vadd.f32 %v7153_v18, %v5927_v40  ;;  %v8166_v60 = vpop.f32.mrb[2].mxu1 }
 0x639   : > { %v8311_v62 = vadd.f32 %v8310_v35, %v7154_v32  ;;  %v8315_v4 = vadd.f32 %v10376_v43, %v8166_v60  ;;  %v5930_v23 = vpop.f32.mrb[3].mxu1 }
 0x63a   : > { %v8313_v25 = vadd.f32 %v8312_v24, %v7154_v32  ;;  %v8317_v46 = vadd.f32 %v10376_v43, %v5930_v23 }
 0x63c   : > { %v6086_v49 = vadd.f32 %v8313_v25, %v8311_v62  ;;  %v6087_v8 = vadd.f32 %v8317_v46, %v8315_v4 }
 0x63e   : > { %v8271_v14 = vpack.c.bf16 %v6087_v8, %v6086_v49  ;;  %v8169_v17 = vpop.f32.mrb[4].mxu1 }
 0x63f   : > { %v8319_v44 = vadd.f32 %v10376_v43, %v8169_v17  ;;  %v5943_v36 = vpop.f32.mrb[5].mxu1 }
 0x640   : > { %v8321_v39 = vadd.f32 %v10376_v43, %v5943_v36  ;;  %v8170_v47 = vpop.f32.mrb[6].mxu1  ;;  %8272 = vmatpush3.bf16.msra.mxu0 %v8271_v14 }
 0x641   : > { %v8323_v30 = vadd.f32 %v10376_v43, %v8170_v47  ;;  %v5946_v63 = vpop.f32.mrb[7].mxu1  ;;  %8273 = vmatprep.subr.bf16.mxu0 %v9076_v7 }
 0x642   : > { %v6088_v1 = vadd.f32 %v8321_v39, %v8319_v44  ;;  %v8325_v50 = vadd.f32 %v10376_v43, %v5946_v63 }
 0x643   : > { %8200 = vmatmul.mubr.msk.f32.vlgmr.msra.gmra.mrb[32].mxu0 %vm6103_vm5, %v10385_v27 }
 0x644   : > { %v6089_v31 = vadd.f32 %v8325_v50, %v8323_v30  ;;  %8206 = vmatprep.mubr.msk.f32.mxu0 %vm9077_vm4, %v9075_v2 }
 0x646   : > { %v8274_v33 = vpack.c.bf16 %v6089_v31, %v6088_v1  ;;  %v8173_v45 = vpop.f32.mrb[8].mxu1 }
 0x647   : > { %v8327_v56 = vadd.f32 %v10376_v43, %v8173_v45  ;;  %v5959_v11 = vpop.f32.mrb[9].mxu1 }
 0x648   : > { %v8329_v26 = vadd.f32 %v10376_v43, %v5959_v11  ;;  %v8174_v5 = vpop.f32.mrb[10].mxu1  ;;  %8275 = vmatpush3.bf16.msra.mxu0 %v8274_v33 }
 0x649   : > { %v8331_v6 = vadd.f32 %v10376_v43, %v8174_v5  ;;  %v5962_v3 = vpop.f32.mrb[11].mxu1  ;;  %8276 = vmatprep.subr.bf16.mxu0 %v9076_v7 }
 0x64a   : > { %v6090_v42 = vadd.f32 %v8329_v26, %v8327_v56  ;;  %v8333_v34 = vadd.f32 %v10376_v43, %v5962_v3 }
 0x64b   : > { %8207 = vmatmul.mubr.msk.f32.vlgmr.msra.gmra.mrb[34].mxu0 %vm6103_vm5, %v10385_v27 }
 0x64c   : > { %v6091_v19 = vadd.f32 %v8333_v34, %v8331_v6  ;;  %8213 = vmatprep.mubr.msk.f32.mxu0 %vm9077_vm4, %v9075_v2 }
 0x64e   : > { %v8277_v37 = vpack.c.bf16 %v6091_v19, %v6090_v42  ;;  %v8177_v53 = vpop.f32.mrb[12].mxu1 }
 0x64f   : > { %v8335_v0 = vadd.f32 %v10376_v43, %v8177_v53  ;;  %v5975_v21 = vpop.f32.mrb[13].mxu1 }
 0x650   : > { %v8337_v28 = vadd.f32 %v10376_v43, %v5975_v21  ;;  %v8178_v41 = vpop.f32.mrb[14].mxu1  ;;  %8278 = vmatpush3.bf16.msra.mxu0 %v8277_v37 }
 0x651   : > { %v8339_v16 = vadd.f32 %v10376_v43, %v8178_v41  ;;  %v5978_v52 = vpop.f32.mrb[15].mxu1  ;;  %8279 = vmatprep.subr.bf16.mxu0 %v9076_v7 }
 0x652   : > { %v6092_v51 = vadd.f32 %v8337_v28, %v8335_v0  ;;  %v8341_v54 = vadd.f32 %v10376_v43, %v5978_v52 }
 0x653   : > { %8214 = vmatmul.mubr.msk.f32.vlgmr.msra.gmra.mrb[36].mxu0 %vm6103_vm5, %v10385_v27 }
 0x654   : > { %v6093_v55 = vadd.f32 %v8341_v54, %v8339_v16  ;;  %8220 = vmatprep.mubr.msk.f32.mxu0 %vm9077_vm4, %v9075_v2 }
 0x656   : > { %v8280_v15 = vpack.c.bf16 %v6093_v55, %v6092_v51  ;;  %v8181_v13 = vpop.f32.mrb[16].mxu1 }
 0x657   : > { %v8343_v9 = vadd.f32 %v10376_v43, %v8181_v13  ;;  %v5991_v22 = vpop.f32.mrb[17].mxu1 }
 0x658   : > { %v8345_v10 = vadd.f32 %v10376_v43, %v5991_v22  ;;  %v8182_v61 = vpop.f32.mrb[18].mxu1  ;;  %8281 = vmatpush3.bf16.msra.mxu0 %v8280_v15  ;;  %v6667_v22 = vld [vmem:[%s10529_s8] sm:$0xff] }
 0x659   : > { %v8347_v48 = vadd.f32 %v10376_v43, %v8182_v61  ;;  %v5994_v57 = vpop.f32.mrb[19].mxu1  ;;  %8282 = vmatprep.subr.bf16.mxu0 %v9076_v7 }
 0x65a   : > { %v6094_v29 = vadd.f32 %v8345_v10, %v8343_v9  ;;  %v8349_v59 = vadd.f32 %v10376_v43, %v5994_v57 }
 0x65b   : > { %8221 = vmatmul.mubr.msk.f32.vlgmr.msra.gmra.mrb[38].mxu0 %vm6103_vm5, %v10385_v27 }
 0x65c   : > { %v6095_v12 = vadd.f32 %v8349_v59, %v8347_v48  ;;  %8227 = vmatprep.mubr.msk.f32.mxu0 %vm9077_vm4, %v9075_v2 }
 0x65e   : > { %v8283_v20 = vpack.c.bf16 %v6095_v12, %v6094_v29  ;;  %v8185_v38 = vpop.f32.mrb[20].mxu1 }
 0x65f   : > { %v8351_v18 = vadd.f32 %v10376_v43, %v8185_v38  ;;  %v6007_v32 = vpop.f32.mrb[21].mxu1 }
 0x660   : > { %v8353_v58 = vadd.f32 %v10376_v43, %v6007_v32  ;;  %v8186_v35 = vpop.f32.mrb[22].mxu1  ;;  %8284 = vmatpush3.bf16.msra.mxu0 %v8283_v20 }
 0x661   : > { %v8355_v40 = vadd.f32 %v10376_v43, %v8186_v35  ;;  %v6010_v24 = vpop.f32.mrb[23].mxu1  ;;  %8285 = vmatprep.subr.bf16.mxu0 %v9076_v7 }
 0x662   : > { %v6096_v60 = vadd.f32 %v8353_v58, %v8351_v18  ;;  %v8357_v62 = vadd.f32 %v10376_v43, %v6010_v24 }
 0x663   : > { %8228 = vmatmul.mubr.msk.f32.vlgmr.msra.gmra.mrb[40].mxu0 %vm6103_vm5, %v10385_v27 }
 0x664   : > { %v6097_v4 = vadd.f32 %v8357_v62, %v8355_v40  ;;  %8234 = vmatprep.mubr.msk.f32.mxu0 %vm9077_vm4, %v9075_v2 }
 0x666   : > { %v8286_v23 = vpack.c.bf16 %v6097_v4, %v6096_v60  ;;  %v8189_v25 = vpop.f32.mrb[24].mxu1 }
 0x667   : > { %v8359_v46 = vadd.f32 %v10376_v43, %v8189_v25  ;;  %v6023_v49 = vpop.f32.mrb[25].mxu1 }
 0x668   : > { %v8361_v8 = vadd.f32 %v10376_v43, %v6023_v49  ;;  %v8190_v14 = vpop.f32.mrb[26].mxu1  ;;  %8287 = vmatpush3.bf16.msra.mxu0 %v8286_v23 }
 0x669   : > { %v8363_v17 = vadd.f32 %v10376_v43, %v8190_v14  ;;  %v6026_v44 = vpop.f32.mrb[27].mxu1  ;;  %8288 = vmatprep.subr.bf16.mxu0 %v9076_v7 }
 0x66a   : > { %v6098_v36 = vadd.f32 %v8361_v8, %v8359_v46  ;;  %v8365_v39 = vadd.f32 %v10376_v43, %v6026_v44 }
 0x66b   : > { %8235 = vmatmul.mubr.msk.f32.vlgmr.msra.gmra.mrb[42].mxu0 %vm6103_vm5, %v10385_v27 }
 0x66c   : > { %v6099_v47 = vadd.f32 %v8365_v39, %v8363_v17  ;;  %8241 = vmatprep.mubr.msk.f32.mxu0 %vm9077_vm4, %v9075_v2 }
 0x66e   : > { %v8289_v30 = vpack.c.bf16 %v6099_v47, %v6098_v36  ;;  %v8193_v63 = vpop.f32.mrb[28].mxu1 }
 0x66f   : > { %v8367_v1 = vadd.f32 %v10376_v43, %v8193_v63  ;;  %v6039_v50 = vpop.f32.mrb[29].mxu1 }
 0x670   : > { %v8369_v31 = vadd.f32 %v10376_v43, %v6039_v50  ;;  %v8194_v33 = vpop.f32.mrb[30].mxu1  ;;  %8290 = vmatpush3.bf16.msra.mxu0 %v8289_v30 }
 0x671   : > { %v8371_v45 = vadd.f32 %v10376_v43, %v8194_v33  ;;  %v6042_v56 = vpop.f32.mrb[31].mxu1  ;;  %8291 = vmatprep.subr.bf16.mxu0 %v9076_v7 }
 0x672   : > { %v6100_v11 = vadd.f32 %v8369_v31, %v8367_v1  ;;  %v8373_v26 = vadd.f32 %v10376_v43, %v6042_v56 }
 0x673   : > { %8242 = vmatmul.mubr.msk.f32.vlgmr.msra.gmra.mrb[44].mxu0 %vm6103_vm5, %v10385_v27 }
 0x674   : > { %v6101_v5 = vadd.f32 %v8373_v26, %v8371_v45  ;;  %8248 = vmatprep.mubr.msk.f32.mxu0 %vm9077_vm4, %v9075_v2 }
 0x676   : > { %v8292_v6 = vpack.c.bf16 %v6101_v5, %v6100_v11 }
 0x678   : > { %8293 = vmatpush3.bf16.msra.mxu0 %v8292_v6 }
 0x679   : > { %8294 = vmatprep.subr.bf16.mxu0 %v9076_v7 }
 0x67b   : > { %8249 = vmatmul.mubr.msk.f32.vlgmr.msra.gmra.mrb[46].mxu0 %vm6103_vm5, %v10385_v27 }
 0x67c   : > { %8267 = vmatprep.mubr.msk.f32.mxu0 %vm9077_vm4, %v9075_v2 }
 0x716   : > { %v6173_v3 = vpop.f32.mrb[32].mxu0 }
 0x717   : > { %v8201_v42 = vpop.f32.mrb[33].mxu0 }
 0x71e   : > { %v6243_v43 = vpop.f32.mrb[34].mxu0 }
 0x71f   : > { %v8295_v19 = vpack.c.bf16 %v6243_v43, %v6173_v3  ;;  %v8208_v37 = vpop.f32.mrb[35].mxu0 }
 0x721   : > { %8297 = vmatpush3.bf16.xpose.msk.msra.mxu0 %vm10455_vm7, %v8295_v19 }
 0x722   : > { %8298 = vmatprep.subr.bf16.mxu0 %v9076_v7 }
 0x726   : > { %v6313_v27 = vpop.f32.mrb[36].mxu0 }
 0x727   : > { %v8215_v53 = vpop.f32.mrb[37].mxu0 }
 0x72e   : > { %v6383_v2 = vpop.f32.mrb[38].mxu0 }
 0x72f   : > { %v8299_v0 = vpack.c.bf16 %v6383_v2, %v6313_v27  ;;  %v8222_v21 = vpop.f32.mrb[39].mxu0 }
 0x731   : > { %8301 = vmatpush3.bf16.xpose.msk.msra.mxu0 %vm10455_vm7, %v8299_v0 }
 0x732   : > { %8302 = vmatprep.subr.bf16.mxu0 %v9076_v7 }
 0x736   : > { %v6453_v28 = vpop.f32.mrb[40].mxu0 }
 0x737   : > { %v8229_v41 = vpop.f32.mrb[41].mxu0 }
 0x73e   : > { %v6523_v16 = vpop.f32.mrb[42].mxu0 }
 0x73f   : > { %v8303_v52 = vpack.c.bf16 %v6523_v16, %v6453_v28  ;;  %v8236_v51 = vpop.f32.mrb[43].mxu0 }
 0x741   : > { %8305 = vmatpush3.bf16.xpose.msk.msra.mxu0 %vm10455_vm7, %v8303_v52 }
 0x742   : > { %8306 = vmatprep.subr.bf16.mxu0 %v9076_v7 }
 0x746   : > { %v6593_v54 = vpop.f32.mrb[44].mxu0 }
 0x747   : > { %v8243_v55 = vpop.f32.mrb[45].mxu0 }
 0x74e   : > { %v6663_v15 = vpop.f32.mrb[46].mxu0 }
 0x74f   : > { %v8307_v13 = vpack.c.bf16 %v6663_v15, %v6593_v54  ;;  %v8250_v9 = vpop.f32.mrb[47].mxu0 }
 0x751   : > { %8309 = vmatpush3.bf16.xpose.msk.msra.mxu0 %vm10455_vm7, %v8307_v13 }
 0x758   : > { %8268 = vmatmul.mubr.msk.f32.vlgmr.msra.gmra.mrb[48].mxu0 %vm6668_vm6, %v6667_v22 }
 0x82b   : > { %v6762_v7 = vpop.f32.mrb[48].mxu0 }
 0x82c   : > { %6767 = vst.msk [vmem:[%s325_s17] sm:$0xff] %vm6766_vm8, %v6762_v7  ;;  %v8269_v10 = vpop.f32.mrb[49].mxu0 }
 0x82d   : > { %9024 = shalt.err (!%p9021_p3)
}
 0x82e   : > { %s9025_s28 = scalar_lea.hbm %s10479_s24, 128  ;;  %s9029_s17 = scalar_lea.hbm %s10530_s9, 256 }
 0x82f   : > { %p9026_p4 = scmp.ne.s32.totalorder %s10479_s24, %s9025_s28  ;;  %p9030_p9 = scmp.lt.u32.totalorder %s10479_s24, %s10530_s9 }
 0x830   : > { %p9031_p10 = scmp.lt.u32.totalorder %s9029_s17, %s9025_s28  ;;  %p9033_p12 = scmp.lt.u32.totalorder %s9025_s28, %s10479_s24 }
 0x831   : > { %p9027_p7 = pnand %p9026_p4, %p9167_p5 }
 0x832   : > { %p9032_p11 = por %p9031_p10, %p9030_p9 }
 0x833   : > { %p9028_p8 = pneg %p9027_p7 }
 0x834   : > { %p9034_p13 = por %p9033_p12, %p9032_p11 }
 0x836   : > { %p9035_p0 = pnand %p9034_p13, %p9028_p8 }
 0x838   : > { %9038 = shalt.err (!%p9035_p0)
}
 0x839   : > { %8937 = dma.vmem_to_hbm [thread:$0]  (%p9167_p5), %s10481_s21, 128, %s10479_s24, %s6769_s29  }
 0x83a PF: > { %p8943_p1 = scmp.ge.s32.totalorder %s9073_s12, 2  ;;  %s6794_s25 = sand.u32 1, %s9061_s30  }
 0x83b   : > { %s6795_s13 = scalar_lea.sflag [#allocation5], %s6794_s25 }
 0x83c   : > { %p8940_p2 = pnand %p8943_p1, %p9171_p6 }
 0x83e   : > { %9056 = dma.done.wait (!%p8940_p2), %s6795_s13, 128  }
 0x83f   : > { %9058 = vsyncadd (!%p8940_p2), %s6795_s13, 4294967168  ;;  %p19_p3 = scmp.ge.s32.totalorder %s9154_s15, 4   ;;  %s10535_s30 = smov %s9065_s10 }
 0x840   : > { %s10536_s10 = smov %s9069_s11  ;;  %s10537_s11 = smov %s9165_s18 }
 0x841   : > { %s10538_s12 = smov %s9154_s15  ;;  %21 = sbr.rel (!%p19_p3) target bundleno = 3 (0x3), region = 113 }
 0x848   :  { %6800 = vsyncpa [#allocation5], 1 }
 0x849   :  { %6802 = vsyncpa [#allocation5 + $0x1], 1 }

</bundles_post_ra>
